<compile_context>
chip_gen: v7x
topology: tpu7x:2x2x1
jax: 0.10.0
libtpu: 0.0.40
codegen_flags: <defaults>
</compile_context>

<pallas_src>
import functools
import math

import jax
import jax.numpy as jnp
from jax.experimental import pallas as pl
from jax.experimental.pallas import tpu as pltpu


# Flip to jnp.bfloat16 on v6e/v7x for 2-4x MXU throughput after validating tolerance
# against the PyTorch reference (accumulation stays f32 via preferred_element_type).
MATMUL_INPUT_DTYPE = jnp.float32


def _mm(a, b):
    return jnp.dot(a.astype(MATMUL_INPUT_DTYPE), b.astype(MATMUL_INPUT_DTYPE),
                   preferred_element_type=jnp.float32)


def _mm_nt(a, b):
    # a @ b.T without materializing the transpose.
    return jnp.einsum('md,nd->mn', a.astype(MATMUL_INPUT_DTYPE),
                      b.astype(MATMUL_INPUT_DTYPE),
                      preferred_element_type=jnp.float32)


def _layernorm(x, a, b, eps=1e-6):
    # Spec's custom LayerNorm: a*(x-mean)/(x.std(-1, unbiased) + eps) + b
    d = x.shape[-1]
    mean = jnp.mean(x, axis=-1, keepdims=True)
    var = jnp.sum((x - mean) ** 2, axis=-1, keepdims=True) * (1.0 / (d - 1))
    inv = pl.reciprocal(jnp.sqrt(var) + eps, approx=False)   # one recip per row
    return a * (x - mean) * inv + b


def _softmax_last(x):
    m = jnp.max(x, axis=-1, keepdims=True)
    e = jnp.exp(x - m)
    return e * pl.reciprocal(jnp.sum(e, axis=-1, keepdims=True), approx=False)


_LAYER_PARAM_ORDER = ("wq", "bq", "wk", "bk", "wv", "bv", "wo", "bo",
                      "ln1a", "ln1b", "w1", "b1", "w2", "b2", "ln2a", "ln2b")


# ----------------------------------------------------------------------------
# Fused kernel: BiGRU (at layer 0) + N pre-norm transformer encoder layers.
# grid = (batch, layer); x stays resident in a VMEM scratch across layers.
# ----------------------------------------------------------------------------
def encoder_kernel(x_ref, mask_ref,
                   gwih_ref, gwhh_ref, gbih_ref, gbhh_ref,
                   wq_ref, bq_ref, wk_ref, bk_ref, wv_ref, bv_ref,
                   wo_ref, bo_ref, ln1a_ref, ln1b_ref,
                   w1_ref, b1_ref, w2_ref, b2_ref, ln2a_ref, ln2b_ref,
                   out_x_ref, out_attn_ref,
                   x_scr, gx_scr, ctx_scr):
    l = pl.program_id(1)
    is_last = l == pl.num_programs(1) - 1
    n_heads = out_attn_ref.shape[1]
    S, D = x_scr.shape
    d_h = D // 2
    d_k = D // n_heads
    scale = 1.0 / math.sqrt(d_k)

    # ------------------------- BiGRU (once per batch element) -------------------------
    @pl.when(l == 0)
    def _run_bigru():
        x_in = x_ref[0]                                               # (S, d_in)
        # Hoisted input projection: ONE matmul for both directions and all gates.
        # Column layout is gate-major: [r_f | r_b | z_f | z_b | n_f | n_b].
        gx_scr[...] = _mm(x_in, gwih_ref[...]) + gbih_ref[...]        # (S, 6*d_h)

        # Hoist recurrent weights/bias and the fwd/bwd lane-select mask out of the loop.
        whh = gwhh_ref[...]                                           # (2*d_h, 6*d_h) blockdiag
        bhh = gbhh_ref[...]                                           # (1, 6*d_h)
        lane = jax.lax.broadcasted_iota(jnp.int32, (1, 6 * d_h), 1)
        is_fwd = (lane % (2 * d_h)) < d_h                             # fwd lanes of every gate slab

        def step(t, h):                                               # h: (1, 2*d_h) = [h_f | h_b]
            tb = S - 1 - t
            gx_t = gx_scr[pl.ds(t, 1), :]                             # fwd gate inputs @ time t
            gx_tb = gx_scr[pl.ds(tb, 1), :]                           # bwd gate inputs @ time tb
            gx = jnp.where(is_fwd, gx_t, gx_tb)                       # one select per step
            gh = _mm(h, whh) + bhh                                    # ONE recurrence matmul
            r = jax.nn.sigmoid(gx[:, 0:2 * d_h] + gh[:, 0:2 * d_h])
            z = jax.nn.sigmoid(gx[:, 2 * d_h:4 * d_h] + gh[:, 2 * d_h:4 * d_h])
            n = jnp.tanh(gx[:, 4 * d_h:6 * d_h] + r * gh[:, 4 * d_h:6 * d_h])
            h_new = (1.0 - z) * n + z * h
            # Write both directions straight into the resident x scratch (no concat).
            x_scr[pl.ds(t, 1), 0:d_h] = h_new[:, 0:d_h]
            x_scr[pl.ds(tb, 1), d_h:2 * d_h] = h_new[:, d_h:2 * d_h]
            return h_new

        h0 = jnp.zeros((1, 2 * d_h), jnp.float32)
        jax.lax.fori_loop(0, S, step, h0, unroll=min(S, 8))

    # ------------------------- transformer encoder layer l -------------------------
    x = x_scr[...]                                                    # (S, D), resident
    keymask = mask_ref[0] == 0.0                                      # (1, S), hoisted

    # Sublayer 1: pre-norm residual multi-head self-attention.
    xn = _layernorm(x, ln1a_ref[l], ln1b_ref[l])
    q = _mm(xn, wq_ref[l]) + bq_ref[l]
    k = _mm(xn, wk_ref[l]) + bk_ref[l]
    v = _mm(xn, wv_ref[l]) + bv_ref[l]

    for h in range(n_heads):                                          # static head loop
        qh = q[:, h * d_k:(h + 1) * d_k]
        kh = k[:, h * d_k:(h + 1) * d_k]
        vh = v[:, h * d_k:(h + 1) * d_k]
        scores = _mm_nt(qh, kh) * scale                               # (S, S)
        scores = jnp.where(keymask, -1e9, scores)
        p = _softmax_last(scores)

        @pl.when(is_last)                                             # only last layer stored
        def _store_attn(h=h, p=p):
            out_attn_ref[0, h] = p

        ctx_scr[:, h * d_k:(h + 1) * d_k] = _mm(p, vh)                # no concat / head list

    attn_out = _mm(ctx_scr[...], wo_ref[l]) + bo_ref[l]
    x = x + attn_out                                                  # dropout == identity

    # Sublayer 2: pre-norm residual position-wise FFN.
    xn2 = _layernorm(x, ln2a_ref[l], ln2b_ref[l])
    hid = jnp.maximum(_mm(xn2, w1_ref[l]) + b1_ref[l], 0.0)
    x = x + _mm(hid, w2_ref[l]) + b2_ref[l]

    x_scr[...] = x

    @pl.when(is_last)
    def _():
        out_x_ref[0] = x


# ----------------------------------------------------------------------------
# Wrapper
# ----------------------------------------------------------------------------
def _build_bigru_params(fwd, bwd, d_h):
    """Fuse per-direction GRU params into gate-major combined tensors.

    Columns: [r_f | r_b | z_f | z_b | n_f | n_b] (each d_h wide).
    W_hh is block-diagonal over the [h_f | h_b] hidden layout (the zero blocks are
    free -- the MXU pads K to 128 anyway) so the recurrence is ONE matmul per step.
    """
    def gates(w):
        return [w[..., g * d_h:(g + 1) * d_h] for g in range(3)]

    wif, wib = gates(fwd["wih_t"]), gates(bwd["wih_t"])
    bif, bib = gates(fwd["bih"]), gates(bwd["bih"])
    bhf, bhb = gates(fwd["bhh"]), gates(bwd["bhh"])
    whf, whb = gates(fwd["whh_t"]), gates(bwd["whh_t"])

    wih = jnp.concatenate([wif[0], wib[0], wif[1], wib[1], wif[2], wib[2]], axis=-1)
    bih = jnp.concatenate([bif[0], bib[0], bif[1], bib[1], bif[2], bib[2]], axis=-1)
    bhh = jnp.concatenate([bhf[0], bhb[0], bhf[1], bhb[1], bhf[2], bhb[2]], axis=-1)

    whh = jnp.zeros((2 * d_h, 6 * d_h), jnp.float32)
    for g in range(3):
        whh = whh.at[0:d_h, (2 * g) * d_h:(2 * g + 1) * d_h].set(whf[g])
        whh = whh.at[d_h:2 * d_h, (2 * g + 1) * d_h:(2 * g + 2) * d_h].set(whb[g])
    return wih, whh, bih, bhh


@functools.partial(jax.jit, static_argnames=("n_heads",))
def encoder_forward(X, mask, gru_fwd, gru_bwd, layers_stacked, n_heads):
    B, S, d_in = X.shape
    d_h = gru_fwd["whh_t"].shape[0]
    D = 2 * d_h
    n_heads = int(n_heads)

    wih_c, whh_c, bih_c, bhh_c = _build_bigru_params(gru_fwd, gru_bwd, d_h)
    weights = [layers_stacked[k] for k in _LAYER_PARAM_ORDER]
    n_layers = weights[0].shape[0]

    def resident(arr):
        # Full-array block, constant index_map -> DMA'd once, never re-streamed.
        nd = arr.ndim
        return pl.BlockSpec(arr.shape, lambda b, l, nd=nd: (0,) * nd)

    in_specs = [
        pl.BlockSpec((1, S, d_in), lambda b, l: (b, 0, 0)),
        pl.BlockSpec((1, 1, S), lambda b, l: (b, 0, 0)),
        resident(wih_c), resident(whh_c), resident(bih_c), resident(bhh_c),
    ] + [resident(w) for w in weights]

    grid_spec = pltpu.PrefetchScalarGridSpec(
        num_scalar_prefetch=0,
        grid=(B, n_layers),
        in_specs=in_specs,
        out_specs=[
            pl.BlockSpec((1, S, D), lambda b, l: (b, 0, 0)),
            pl.BlockSpec((1, n_heads, S, S), lambda b, l: (b, 0, 0, 0)),
        ],
        scratch_shapes=[
            pltpu.VMEM((S, D), jnp.float32),        # x, resident across layers
            pltpu.VMEM((S, 3 * D), jnp.float32),    # GRU gate pre-activations (6*d_h)
            pltpu.VMEM((S, D), jnp.float32),        # attention context (per-head writes)
        ],
    )
    return pl.pallas_call(
        encoder_kernel,
        out_shape=(jax.ShapeDtypeStruct((B, S, D), jnp.float32),
                   jax.ShapeDtypeStruct((B, n_heads, S, S), jnp.float32)),
        grid_spec=grid_spec,
        compiler_params=pltpu.CompilerParams(
            dimension_semantics=("parallel", "arbitrary"),
            vmem_limit_bytes=64 * 1024 * 1024),
    )(X, mask, wih_c, whh_c, bih_c, bhh_c, *weights)


# ----------------------------------------------------------------------------
# Pure-JAX reference (eval mode) for correctness checking.
# ----------------------------------------------------------------------------
def reference_forward(X, mask, gru_fwd, gru_bwd, layers, n_heads):
    B, S, d_in = X.shape
    d_h = gru_fwd["whh_t"].shape[0]

    def run_dir(p, xs):
        h = jnp.zeros((B, d_h), jnp.float32)
        outs = []
        for t in range(S):
            gx = xs[:, t] @ p["wih_t"] + p["bih"]
            gh = h @ p["whh_t"] + p["bhh"]
            r = jax.nn.sigmoid(gx[:, :d_h] + gh[:, :d_h])
            z = jax.nn.sigmoid(gx[:, d_h:2 * d_h] + gh[:, d_h:2 * d_h])
            n = jnp.tanh(gx[:, 2 * d_h:] + r * gh[:, 2 * d_h:])
            h = (1.0 - z) * n + z * h
            outs.append(h)
        return jnp.stack(outs, axis=1)

    fwd = run_dir(gru_fwd, X)
    bwd = run_dir(gru_bwd, X[:, ::-1])[:, ::-1]
    x = jnp.concatenate([fwd, bwd], axis=-1)
    D = x.shape[-1]
    d_k = D // n_heads
    keymask = (mask == 0.0)[:, :, None, :]                       # (B,1,1,S)

    def layer_norm(x, a, b, eps=1e-6):
        mean = x.mean(-1, keepdims=True)
        var = ((x - mean) ** 2).sum(-1, keepdims=True) / (x.shape[-1] - 1)
        return a * (x - mean) / (jnp.sqrt(var) + eps) + b

    attn = None
    for i in range(layers["wq"].shape[0]):
        p = {k: v[i] for k, v in layers.items()}
        xn = layer_norm(x, p["ln1a"], p["ln1b"])
        q = xn @ p["wq"] + p["bq"]
        k = xn @ p["wk"] + p["bk"]
        v = xn @ p["wv"] + p["bv"]
        split = lambda t: t.reshape(B, S, n_heads, d_k).transpose(0, 2, 1, 3)
        qh, kh, vh = split(q), split(k), split(v)
        scores = jnp.einsum('bhqd,bhkd->bhqk', qh, kh) / math.sqrt(d_k)
        scores = jnp.where(keymask, -1e9, scores)
        attn = jax.nn.softmax(scores, axis=-1)
        ctx = jnp.einsum('bhqk,bhkd->bhqd', attn, vh).transpose(0, 2, 1, 3).reshape(B, S, D)
        x = x + (ctx @ p["wo"] + p["bo"])
        xn2 = layer_norm(x, p["ln2a"], p["ln2b"])
        x = x + (jnp.maximum(xn2 @ p["w1"] + p["b1"], 0.0) @ p["w2"] + p["b2"])
    return x, attn


# ----------------------------------------------------------------------------
# Deterministic synthetic parameter init
# ----------------------------------------------------------------------------
def _dense_init(key, d_in, d_out, scale=0.1):
    kw, kb = jax.random.split(key)
    w = jax.random.normal(kw, (d_in, d_out), jnp.float32) * scale
    b = jax.random.normal(kb, (1, d_out), jnp.float32) * scale
    return w, b


def init_params(key, d_in, d_h, d_model, n_heads, d_ff, n_layers):
    keys = jax.random.split(key, 2 + n_layers)

    def gru_dir(k):
        k1, k2, k3, k4 = jax.random.split(k, 4)
        s = 1.0 / math.sqrt(d_h)
        return dict(
            wih_t=jax.random.uniform(k1, (d_in, 3 * d_h), jnp.float32, -s, s),
            whh_t=jax.random.uniform(k2, (d_h, 3 * d_h), jnp.float32, -s, s),
            bih=jax.random.uniform(k3, (1, 3 * d_h), jnp.float32, -s, s),
            bhh=jax.random.uniform(k4, (1, 3 * d_h), jnp.float32, -s, s),
        )

    layers = []
    for i in range(n_layers):
        lk = jax.random.split(keys[2 + i], 6)
        wq, bq = _dense_init(lk[0], d_model, d_model)
        wk, bk = _dense_init(lk[1], d_model, d_model)
        wv, bv = _dense_init(lk[2], d_model, d_model)
        wo, bo = _dense_init(lk[3], d_model, d_model)
        w1, b1 = _dense_init(lk[4], d_model, d_ff)
        w2, b2 = _dense_init(lk[5], d_ff, d_model)
        layers.append(dict(
            wq=wq, bq=bq, wk=wk, bk=bk, wv=wv, bv=bv, wo=wo, bo=bo,
            ln1a=jnp.ones((1, d_model), jnp.float32),
            ln1b=jnp.zeros((1, d_model), jnp.float32),
            w1=w1, b1=b1, w2=w2, b2=b2,
            ln2a=jnp.ones((1, d_model), jnp.float32),
            ln2b=jnp.zeros((1, d_model), jnp.float32),
        ))
    layers_stacked = {k: jnp.stack([lp[k] for lp in layers], axis=0)
                      for k in _LAYER_PARAM_ORDER}
    return dict(gru_fwd=gru_dir(keys[0]), gru_bwd=gru_dir(keys[1]),
                layers_stacked=layers_stacked)


if __name__ == "__main__":
    # GRU(d_in -> d_h, bidirectional) so the transformer layer size D = 2*d_h.
    B, S, d_in, d_h = 2, 8, 16, 16
    D = 2 * d_h            # 32
    n_heads, d_ff, N = 4, 64, 2

    key = jax.random.PRNGKey(0)
    kx, kp = jax.random.split(key)
    X = jax.random.normal(kx, (B, S, d_in), jnp.float32)
    # mask: (B, 1, S) key mask; 0 => masked key position
    mask = jnp.ones((B, 1, S), jnp.float32)
    mask = mask.at[1, 0, S - 2:].set(0.0)

    params = init_params(kp, d_in, d_h, D, n_heads, d_ff, N)

    x_out, attn = encoder_forward(X, mask, params["gru_fwd"], params["gru_bwd"],
                                  params["layers_stacked"], n_heads)
    x_out, attn = jax.block_until_ready((x_out, attn))

    assert x_out.shape == (B, S, D), x_out.shape
    assert attn.shape == (B, n_heads, S, S), attn.shape
    assert bool(jnp.all(jnp.isfinite(x_out))) and bool(jnp.all(jnp.isfinite(attn)))
    assert bool(jnp.allclose(jnp.sum(attn, axis=-1), 1.0, atol=1e-4))

    # Pure-JAX reference check (eval-mode semantics).
    with jax.default_matmul_precision("highest"):
        x_ref, attn_ref = reference_forward(X, mask, params["gru_fwd"],
                                            params["gru_bwd"],
                                            params["layers_stacked"], n_heads)
    assert bool(jnp.allclose(x_out, x_ref, atol=2e-2, rtol=2e-2)), \
        float(jnp.max(jnp.abs(x_out - x_ref)))
    assert bool(jnp.allclose(attn, attn_ref, atol=2e-2, rtol=2e-2)), \
        float(jnp.max(jnp.abs(attn - attn_ref)))

    # TODO(synk): dropout (GRU dropout=0.1, sublayer dropout) is modeled as eval-mode identity.
    print("KERNEL_OK")
</pallas_src>

<mosaic_0001>
module attributes {stable_mosaic.version = 11 : i64} {
  func.func @encoder_kernel(%arg0: i32, %arg1: i32, %arg2: memref<1x8x16xf32, #tpu.memory_space<vmem>>, %arg3: memref<1x1x8xf32, #tpu.memory_space<vmem>>, %arg4: memref<16x96xf32, #tpu.memory_space<vmem>>, %arg5: memref<32x96xf32, #tpu.memory_space<vmem>>, %arg6: memref<1x96xf32, #tpu.memory_space<vmem>>, %arg7: memref<1x96xf32, #tpu.memory_space<vmem>>, %arg8: memref<2x32x32xf32, #tpu.memory_space<vmem>>, %arg9: memref<2x1x32xf32, #tpu.memory_space<vmem>>, %arg10: memref<2x32x32xf32, #tpu.memory_space<vmem>>, %arg11: memref<2x1x32xf32, #tpu.memory_space<vmem>>, %arg12: memref<2x32x32xf32, #tpu.memory_space<vmem>>, %arg13: memref<2x1x32xf32, #tpu.memory_space<vmem>>, %arg14: memref<2x32x32xf32, #tpu.memory_space<vmem>>, %arg15: memref<2x1x32xf32, #tpu.memory_space<vmem>>, %arg16: memref<2x1x32xf32, #tpu.memory_space<vmem>>, %arg17: memref<2x1x32xf32, #tpu.memory_space<vmem>>, %arg18: memref<2x32x64xf32, #tpu.memory_space<vmem>>, %arg19: memref<2x1x64xf32, #tpu.memory_space<vmem>>, %arg20: memref<2x64x32xf32, #tpu.memory_space<vmem>>, %arg21: memref<2x1x32xf32, #tpu.memory_space<vmem>>, %arg22: memref<2x1x32xf32, #tpu.memory_space<vmem>>, %arg23: memref<2x1x32xf32, #tpu.memory_space<vmem>>, %arg24: memref<1x8x32xf32, #tpu.memory_space<vmem>>, %arg25: memref<1x4x8x8xf32, #tpu.memory_space<vmem>>, %arg26: memref<8x32xf32, #tpu.memory_space<vmem>>, %arg27: memref<8x96xf32, #tpu.memory_space<vmem>>, %arg28: memref<8x32xf32, #tpu.memory_space<vmem>>) attributes {dimension_semantics = [#tpu.dimension_semantics<parallel>, #tpu.dimension_semantics<arbitrary>], iteration_bounds = array<i64: 2, 2>, scalar_prefetch = 0 : i64, scratch_operands = 3 : i64, tpu.core_type = #tpu.core_type<tc>, window_params = [{transform_indices = @transform_0, window_bounds = array<i64: 1, 8, 16>}, {transform_indices = @transform_1, window_bounds = array<i64: 1, 1, 8>}, {pipeline_mode = #tpu.pipeline_mode<synchronous>, transform_indices = @transform_2, window_bounds = array<i64: 16, 96>}, {pipeline_mode = #tpu.pipeline_mode<synchronous>, transform_indices = @transform_3, window_bounds = array<i64: 32, 96>}, {pipeline_mode = #tpu.pipeline_mode<synchronous>, transform_indices = @transform_4, window_bounds = array<i64: 1, 96>}, {pipeline_mode = #tpu.pipeline_mode<synchronous>, transform_indices = @transform_5, window_bounds = array<i64: 1, 96>}, {pipeline_mode = #tpu.pipeline_mode<synchronous>, transform_indices = @transform_6, window_bounds = array<i64: 2, 32, 32>}, {pipeline_mode = #tpu.pipeline_mode<synchronous>, transform_indices = @transform_7, window_bounds = array<i64: 2, 1, 32>}, {pipeline_mode = #tpu.pipeline_mode<synchronous>, transform_indices = @transform_8, window_bounds = array<i64: 2, 32, 32>}, {pipeline_mode = #tpu.pipeline_mode<synchronous>, transform_indices = @transform_9, window_bounds = array<i64: 2, 1, 32>}, {pipeline_mode = #tpu.pipeline_mode<synchronous>, transform_indices = @transform_10, window_bounds = array<i64: 2, 32, 32>}, {pipeline_mode = #tpu.pipeline_mode<synchronous>, transform_indices = @transform_11, window_bounds = array<i64: 2, 1, 32>}, {pipeline_mode = #tpu.pipeline_mode<synchronous>, transform_indices = @transform_12, window_bounds = array<i64: 2, 32, 32>}, {pipeline_mode = #tpu.pipeline_mode<synchronous>, transform_indices = @transform_13, window_bounds = array<i64: 2, 1, 32>}, {pipeline_mode = #tpu.pipeline_mode<synchronous>, transform_indices = @transform_14, window_bounds = array<i64: 2, 1, 32>}, {pipeline_mode = #tpu.pipeline_mode<synchronous>, transform_indices = @transform_15, window_bounds = array<i64: 2, 1, 32>}, {pipeline_mode = #tpu.pipeline_mode<synchronous>, transform_indices = @transform_16, window_bounds = array<i64: 2, 32, 64>}, {pipeline_mode = #tpu.pipeline_mode<synchronous>, transform_indices = @transform_17, window_bounds = array<i64: 2, 1, 64>}, {pipeline_mode = #tpu.pipeline_mode<synchronous>, transform_indices = @transform_18, window_bounds = array<i64: 2, 64, 32>}, {pipeline_mode = #tpu.pipeline_mode<synchronous>, transform_indices = @transform_19, window_bounds = array<i64: 2, 1, 32>}, {pipeline_mode = #tpu.pipeline_mode<synchronous>, transform_indices = @transform_20, window_bounds = array<i64: 2, 1, 32>}, {pipeline_mode = #tpu.pipeline_mode<synchronous>, transform_indices = @transform_21, window_bounds = array<i64: 2, 1, 32>}, {transform_indices = @transform_22, window_bounds = array<i64: 1, 8, 32>}, {transform_indices = @transform_23, window_bounds = array<i64: 1, 4, 8, 8>}]} {
    %c1_i32 = arith.constant 1 : i32
    %0 = arith.cmpi eq, %arg1, %c1_i32 : i32
    %c0_i32 = arith.constant 0 : i32
    %1 = arith.cmpi eq, %arg1, %c0_i32 : i32
    %2 = arith.extui %1 : i1 to i32
    %c0_i32_0 = arith.constant 0 : i32
    %3 = arith.cmpi ne, %2, %c0_i32_0 : i32
    scf.if %3 {
      %c0_92 = arith.constant 0 : index
      %c0_93 = arith.constant 0 : index
      %c0_94 = arith.constant 0 : index
      %225 = vector.load %arg2[%c0_92, %c0_93, %c0_94] : memref<1x8x16xf32, #tpu.memory_space<vmem>>, vector<1x8x16xf32>
      %226 = vector.shape_cast %225 : vector<1x8x16xf32> to vector<8x16xf32>
      %c0_95 = arith.constant 0 : index
      %c0_96 = arith.constant 0 : index
      %227 = vector.load %arg4[%c0_95, %c0_96] : memref<16x96xf32, #tpu.memory_space<vmem>>, vector<16x96xf32>
      %cst_97 = arith.constant dense<0.000000e+00> : vector<8x96xf32>
      %228 = tpu.matmul %226, %227, %cst_97 {dimension_numbers = #tpu.dot_dimension_numbers<[1], [0], [0], [1], [0, 0, 1, 1], [], []>} : vector<8x16xf32>, vector<16x96xf32>, vector<8x96xf32> -> vector<8x96xf32>
      %c0_98 = arith.constant 0 : index
      %c0_99 = arith.constant 0 : index
      %229 = vector.load %arg6[%c0_98, %c0_99] : memref<1x96xf32, #tpu.memory_space<vmem>>, vector<1x96xf32>
      %230 = vector.broadcast %229 : vector<1x96xf32> to vector<8x96xf32>
      %231 = arith.addf %228, %230 : vector<8x96xf32>
      %c0_100 = arith.constant 0 : index
      %c0_101 = arith.constant 0 : index
      %232 = vector.load %arg27[%c0_100, %c0_101] : memref<8x96xf32, #tpu.memory_space<vmem>>, vector<8x96xf32>
      tpu.vector_store %arg27[%c0_100, %c0_101], %231 {strides = array<i32>} : memref<8x96xf32, #tpu.memory_space<vmem>>, vector<8x96xf32>,
      %c0_102 = arith.constant 0 : index
      %c0_103 = arith.constant 0 : index
      %233 = vector.load %arg5[%c0_102, %c0_103] : memref<32x96xf32, #tpu.memory_space<vmem>>, vector<32x96xf32>
      %c0_104 = arith.constant 0 : index
      %c0_105 = arith.constant 0 : index
      %234 = vector.load %arg7[%c0_104, %c0_105] : memref<1x96xf32, #tpu.memory_space<vmem>>, vector<1x96xf32>
      %235 = tpu.iota {dimensions = array<i32: 1>} : vector<1x96xi32>
      %c32_i32 = arith.constant 32 : i32
      %c0_i32_106 = arith.constant 0 : i32
      %236 = arith.cmpi eq, %c32_i32, %c0_i32_106 : i32
      %c1_i32_107 = arith.constant 1 : i32
      %237 = arith.select %236, %c1_i32_107, %c32_i32 : i32
      %238 = vector.broadcast %237 : i32 to vector<1x96xi32>
      %239 = arith.remsi %235, %238 : vector<1x96xi32>
      %c0_i32_108 = arith.constant 0 : i32
      %240 = vector.broadcast %c0_i32_108 : i32 to vector<1x96xi32>
      %241 = arith.cmpi ne, %239, %240 : vector<1x96xi32>
      %c0_i32_109 = arith.constant 0 : i32
      %242 = vector.broadcast %c0_i32_109 : i32 to vector<1x96xi32>
      %243 = arith.cmpi slt, %239, %242 : vector<1x96xi32>
      %c0_i32_110 = arith.constant 0 : i32
      %244 = arith.cmpi slt, %237, %c0_i32_110 : i32
      %245 = vector.broadcast %244 : i1 to vector<1x96xi1>
      %246 = vector.broadcast %245 : vector<1x96xi1> to vector<1x96xi1>
      %247 = arith.xori %243, %246 : vector<1x96xi1>
      %248 = arith.andi %247, %241 : vector<1x96xi1>
      %249 = vector.broadcast %237 : i32 to vector<1x96xi32>
      %250 = arith.addi %239, %249 : vector<1x96xi32>
      %251 = arith.select %248, %250, %239 : vector<1x96xi1>, vector<1x96xi32>
      %c16_i32 = arith.constant 16 : i32
      %252 = vector.broadcast %c16_i32 : i32 to vector<1x96xi32>
      %253 = arith.cmpi slt, %251, %252 : vector<1x96xi32>
      %cst_111 = arith.constant 0.000000e+00 : f32
      %254 = vector.broadcast %cst_111 : f32 to vector<1x32xf32>
      %c0_i32_112 = arith.constant 0 : i32
      %c7_i32 = arith.constant 7 : i32
      %255 = arith.subi %c7_i32, %c0_i32_112 : i32
      %256 = arith.index_cast %c0_i32_112 : i32 to index
      %c0_113 = arith.constant 0 : index
      %257 = vector.load %arg27[%256, %c0_113] : memref<8x96xf32, #tpu.memory_space<vmem>>, vector<1x96xf32>
      %258 = arith.index_cast %255 : i32 to index
      %c0_114 = arith.constant 0 : index
      %259 = vector.load %arg27[%258, %c0_114] : memref<8x96xf32, #tpu.memory_space<vmem>>, vector<1x96xf32>
      %260 = arith.select %253, %257, %259 : vector<1x96xi1>, vector<1x96xf32>
      %cst_115 = arith.constant dense<0.000000e+00> : vector<1x96xf32>
      %261 = tpu.matmul %254, %233, %cst_115 {dimension_numbers = #tpu.dot_dimension_numbers<[1], [0], [0], [1], [0, 0, 1, 1], [], []>} : vector<1x32xf32>, vector<32x96xf32>, vector<1x96xf32> -> vector<1x96xf32>
      %262 = arith.addf %261, %234 : vector<1x96xf32>
      %263 = vector.extract_strided_slice %260 {offsets = [0, 0], sizes = [1, 32], strides = [1, 1]} : vector<1x96xf32> to vector<1x32xf32>
      %264 = vector.extract_strided_slice %262 {offsets = [0, 0], sizes = [1, 32], strides = [1, 1]} : vector<1x96xf32> to vector<1x32xf32>
      %265 = arith.addf %263, %264 : vector<1x32xf32>
      %266 = arith.negf %265 : vector<1x32xf32>
      %267 = math.exp %266 : vector<1x32xf32>
      %cst_116 = arith.constant 1.000000e+00 : f32
      %268 = vector.broadcast %cst_116 : f32 to vector<1x32xf32>
      %269 = arith.addf %268, %267 : vector<1x32xf32>
      %270 = arith.divf %268, %269 : vector<1x32xf32>
      %271 = vector.extract_strided_slice %260 {offsets = [0, 32], sizes = [1, 32], strides = [1, 1]} : vector<1x96xf32> to vector<1x32xf32>
      %272 = vector.extract_strided_slice %262 {offsets = [0, 32], sizes = [1, 32], strides = [1, 1]} : vector<1x96xf32> to vector<1x32xf32>
      %273 = arith.addf %271, %272 : vector<1x32xf32>
      %274 = arith.negf %273 : vector<1x32xf32>
      %275 = math.exp %274 : vector<1x32xf32>
      %cst_117 = arith.constant 1.000000e+00 : f32
      %276 = vector.broadcast %cst_117 : f32 to vector<1x32xf32>
      %277 = arith.addf %276, %275 : vector<1x32xf32>
      %278 = arith.divf %276, %277 : vector<1x32xf32>
      %279 = vector.extract_strided_slice %260 {offsets = [0, 64], sizes = [1, 32], strides = [1, 1]} : vector<1x96xf32> to vector<1x32xf32>
      %280 = vector.extract_strided_slice %262 {offsets = [0, 64], sizes = [1, 32], strides = [1, 1]} : vector<1x96xf32> to vector<1x32xf32>
      %281 = arith.mulf %270, %280 : vector<1x32xf32>
      %282 = arith.addf %279, %281 : vector<1x32xf32>
      %283 = math.tanh %282 : vector<1x32xf32>
      %cst_118 = arith.constant 1.000000e+00 : f32
      %284 = vector.broadcast %cst_118 : f32 to vector<1x32xf32>
      %285 = arith.subf %284, %278 : vector<1x32xf32>
      %286 = arith.mulf %285, %283 : vector<1x32xf32>
      %287 = arith.mulf %278, %254 : vector<1x32xf32>
      %288 = arith.addf %286, %287 : vector<1x32xf32>
      %289 = vector.extract_strided_slice %288 {offsets = [0, 0], sizes = [1, 16], strides = [1, 1]} : vector<1x32xf32> to vector<1x16xf32>
      %290 = arith.index_cast %c0_i32_112 : i32 to index
      %c0_119 = arith.constant 0 : index
      %291 = vector.load %arg26[%290, %c0_119] : memref<8x32xf32, #tpu.memory_space<vmem>>, vector<1x16xf32>
      tpu.vector_store %arg26[%290, %c0_119], %289 {strides = array<i32>} : memref<8x32xf32, #tpu.memory_space<vmem>>, vector<1x16xf32>,
      %292 = vector.extract_strided_slice %288 {offsets = [0, 16], sizes = [1, 16], strides = [1, 1]} : vector<1x32xf32> to vector<1x16xf32>
      %293 = arith.index_cast %255 : i32 to index
      %c16_120 = arith.constant 16 : index
      %294 = vector.load %arg26[%293, %c16_120] : memref<8x32xf32, #tpu.memory_space<vmem>>, vector<1x16xf32>
      tpu.vector_store %arg26[%293, %c16_120], %292 {strides = array<i32>} : memref<8x32xf32, #tpu.memory_space<vmem>>, vector<1x16xf32>,
      %c1_i32_121 = arith.constant 1 : i32
      %c7_i32_122 = arith.constant 7 : i32
      %295 = arith.subi %c7_i32_122, %c1_i32_121 : i32
      %296 = arith.index_cast %c1_i32_121 : i32 to index
      %c0_123 = arith.constant 0 : index
      %297 = vector.load %arg27[%296, %c0_123] : memref<8x96xf32, #tpu.memory_space<vmem>>, vector<1x96xf32>
      %298 = arith.index_cast %295 : i32 to index
      %c0_124 = arith.constant 0 : index
      %299 = vector.load %arg27[%298, %c0_124] : memref<8x96xf32, #tpu.memory_space<vmem>>, vector<1x96xf32>
      %300 = arith.select %253, %297, %299 : vector<1x96xi1>, vector<1x96xf32>
      %cst_125 = arith.constant dense<0.000000e+00> : vector<1x96xf32>
      %301 = tpu.matmul %288, %233, %cst_125 {dimension_numbers = #tpu.dot_dimension_numbers<[1], [0], [0], [1], [0, 0, 1, 1], [], []>} : vector<1x32xf32>, vector<32x96xf32>, vector<1x96xf32> -> vector<1x96xf32>
      %302 = arith.addf %301, %234 : vector<1x96xf32>
      %303 = vector.extract_strided_slice %300 {offsets = [0, 0], sizes = [1, 32], strides = [1, 1]} : vector<1x96xf32> to vector<1x32xf32>
      %304 = vector.extract_strided_slice %302 {offsets = [0, 0], sizes = [1, 32], strides = [1, 1]} : vector<1x96xf32> to vector<1x32xf32>
      %305 = arith.addf %303, %304 : vector<1x32xf32>
      %306 = arith.negf %305 : vector<1x32xf32>
      %307 = math.exp %306 : vector<1x32xf32>
      %cst_126 = arith.constant 1.000000e+00 : f32
      %308 = vector.broadcast %cst_126 : f32 to vector<1x32xf32>
      %309 = arith.addf %308, %307 : vector<1x32xf32>
      %310 = arith.divf %308, %309 : vector<1x32xf32>
      %311 = vector.extract_strided_slice %300 {offsets = [0, 32], sizes = [1, 32], strides = [1, 1]} : vector<1x96xf32> to vector<1x32xf32>
      %312 = vector.extract_strided_slice %302 {offsets = [0, 32], sizes = [1, 32], strides = [1, 1]} : vector<1x96xf32> to vector<1x32xf32>
      %313 = arith.addf %311, %312 : vector<1x32xf32>
      %314 = arith.negf %313 : vector<1x32xf32>
      %315 = math.exp %314 : vector<1x32xf32>
      %cst_127 = arith.constant 1.000000e+00 : f32
      %316 = vector.broadcast %cst_127 : f32 to vector<1x32xf32>
      %317 = arith.addf %316, %315 : vector<1x32xf32>
      %318 = arith.divf %316, %317 : vector<1x32xf32>
      %319 = vector.extract_strided_slice %300 {offsets = [0, 64], sizes = [1, 32], strides = [1, 1]} : vector<1x96xf32> to vector<1x32xf32>
      %320 = vector.extract_strided_slice %302 {offsets = [0, 64], sizes = [1, 32], strides = [1, 1]} : vector<1x96xf32> to vector<1x32xf32>
      %321 = arith.mulf %310, %320 : vector<1x32xf32>
      %322 = arith.addf %319, %321 : vector<1x32xf32>
      %323 = math.tanh %322 : vector<1x32xf32>
      %cst_128 = arith.constant 1.000000e+00 : f32
      %324 = vector.broadcast %cst_128 : f32 to vector<1x32xf32>
      %325 = arith.subf %324, %318 : vector<1x32xf32>
      %326 = arith.mulf %325, %323 : vector<1x32xf32>
      %327 = arith.mulf %318, %288 : vector<1x32xf32>
      %328 = arith.addf %326, %327 : vector<1x32xf32>
      %329 = vector.extract_strided_slice %328 {offsets = [0, 0], sizes = [1, 16], strides = [1, 1]} : vector<1x32xf32> to vector<1x16xf32>
      %330 = arith.index_cast %c1_i32_121 : i32 to index
      %c0_129 = arith.constant 0 : index
      %331 = vector.load %arg26[%330, %c0_129] : memref<8x32xf32, #tpu.memory_space<vmem>>, vector<1x16xf32>
      tpu.vector_store %arg26[%330, %c0_129], %329 {strides = array<i32>} : memref<8x32xf32, #tpu.memory_space<vmem>>, vector<1x16xf32>,
      %332 = vector.extract_strided_slice %328 {offsets = [0, 16], sizes = [1, 16], strides = [1, 1]} : vector<1x32xf32> to vector<1x16xf32>
      %333 = arith.index_cast %295 : i32 to index
      %c16_130 = arith.constant 16 : index
      %334 = vector.load %arg26[%333, %c16_130] : memref<8x32xf32, #tpu.memory_space<vmem>>, vector<1x16xf32>
      tpu.vector_store %arg26[%333, %c16_130], %332 {strides = array<i32>} : memref<8x32xf32, #tpu.memory_space<vmem>>, vector<1x16xf32>,
      %c2_i32 = arith.constant 2 : i32
      %c7_i32_131 = arith.constant 7 : i32
      %335 = arith.subi %c7_i32_131, %c2_i32 : i32
      %336 = arith.index_cast %c2_i32 : i32 to index
      %c0_132 = arith.constant 0 : index
      %337 = vector.load %arg27[%336, %c0_132] : memref<8x96xf32, #tpu.memory_space<vmem>>, vector<1x96xf32>
      %338 = arith.index_cast %335 : i32 to index
      %c0_133 = arith.constant 0 : index
      %339 = vector.load %arg27[%338, %c0_133] : memref<8x96xf32, #tpu.memory_space<vmem>>, vector<1x96xf32>
      %340 = arith.select %253, %337, %339 : vector<1x96xi1>, vector<1x96xf32>
      %cst_134 = arith.constant dense<0.000000e+00> : vector<1x96xf32>
      %341 = tpu.matmul %328, %233, %cst_134 {dimension_numbers = #tpu.dot_dimension_numbers<[1], [0], [0], [1], [0, 0, 1, 1], [], []>} : vector<1x32xf32>, vector<32x96xf32>, vector<1x96xf32> -> vector<1x96xf32>
      %342 = arith.addf %341, %234 : vector<1x96xf32>
      %343 = vector.extract_strided_slice %340 {offsets = [0, 0], sizes = [1, 32], strides = [1, 1]} : vector<1x96xf32> to vector<1x32xf32>
      %344 = vector.extract_strided_slice %342 {offsets = [0, 0], sizes = [1, 32], strides = [1, 1]} : vector<1x96xf32> to vector<1x32xf32>
      %345 = arith.addf %343, %344 : vector<1x32xf32>
      %346 = arith.negf %345 : vector<1x32xf32>
      %347 = math.exp %346 : vector<1x32xf32>
      %cst_135 = arith.constant 1.000000e+00 : f32
      %348 = vector.broadcast %cst_135 : f32 to vector<1x32xf32>
      %349 = arith.addf %348, %347 : vector<1x32xf32>
      %350 = arith.divf %348, %349 : vector<1x32xf32>
      %351 = vector.extract_strided_slice %340 {offsets = [0, 32], sizes = [1, 32], strides = [1, 1]} : vector<1x96xf32> to vector<1x32xf32>
      %352 = vector.extract_strided_slice %342 {offsets = [0, 32], sizes = [1, 32], strides = [1, 1]} : vector<1x96xf32> to vector<1x32xf32>
      %353 = arith.addf %351, %352 : vector<1x32xf32>
      %354 = arith.negf %353 : vector<1x32xf32>
      %355 = math.exp %354 : vector<1x32xf32>
      %cst_136 = arith.constant 1.000000e+00 : f32
      %356 = vector.broadcast %cst_136 : f32 to vector<1x32xf32>
      %357 = arith.addf %356, %355 : vector<1x32xf32>
      %358 = arith.divf %356, %357 : vector<1x32xf32>
      %359 = vector.extract_strided_slice %340 {offsets = [0, 64], sizes = [1, 32], strides = [1, 1]} : vector<1x96xf32> to vector<1x32xf32>
      %360 = vector.extract_strided_slice %342 {offsets = [0, 64], sizes = [1, 32], strides = [1, 1]} : vector<1x96xf32> to vector<1x32xf32>
      %361 = arith.mulf %350, %360 : vector<1x32xf32>
      %362 = arith.addf %359, %361 : vector<1x32xf32>
      %363 = math.tanh %362 : vector<1x32xf32>
      %cst_137 = arith.constant 1.000000e+00 : f32
      %364 = vector.broadcast %cst_137 : f32 to vector<1x32xf32>
      %365 = arith.subf %364, %358 : vector<1x32xf32>
      %366 = arith.mulf %365, %363 : vector<1x32xf32>
      %367 = arith.mulf %358, %328 : vector<1x32xf32>
      %368 = arith.addf %366, %367 : vector<1x32xf32>
      %369 = vector.extract_strided_slice %368 {offsets = [0, 0], sizes = [1, 16], strides = [1, 1]} : vector<1x32xf32> to vector<1x16xf32>
      %370 = arith.index_cast %c2_i32 : i32 to index
      %c0_138 = arith.constant 0 : index
      %371 = vector.load %arg26[%370, %c0_138] : memref<8x32xf32, #tpu.memory_space<vmem>>, vector<1x16xf32>
      tpu.vector_store %arg26[%370, %c0_138], %369 {strides = array<i32>} : memref<8x32xf32, #tpu.memory_space<vmem>>, vector<1x16xf32>,
      %372 = vector.extract_strided_slice %368 {offsets = [0, 16], sizes = [1, 16], strides = [1, 1]} : vector<1x32xf32> to vector<1x16xf32>
      %373 = arith.index_cast %335 : i32 to index
      %c16_139 = arith.constant 16 : index
      %374 = vector.load %arg26[%373, %c16_139] : memref<8x32xf32, #tpu.memory_space<vmem>>, vector<1x16xf32>
      tpu.vector_store %arg26[%373, %c16_139], %372 {strides = array<i32>} : memref<8x32xf32, #tpu.memory_space<vmem>>, vector<1x16xf32>,
      %c3_i32 = arith.constant 3 : i32
      %c7_i32_140 = arith.constant 7 : i32
      %375 = arith.subi %c7_i32_140, %c3_i32 : i32
      %376 = arith.index_cast %c3_i32 : i32 to index
      %c0_141 = arith.constant 0 : index
      %377 = vector.load %arg27[%376, %c0_141] : memref<8x96xf32, #tpu.memory_space<vmem>>, vector<1x96xf32>
      %378 = arith.index_cast %375 : i32 to index
      %c0_142 = arith.constant 0 : index
      %379 = vector.load %arg27[%378, %c0_142] : memref<8x96xf32, #tpu.memory_space<vmem>>, vector<1x96xf32>
      %380 = arith.select %253, %377, %379 : vector<1x96xi1>, vector<1x96xf32>
      %cst_143 = arith.constant dense<0.000000e+00> : vector<1x96xf32>
      %381 = tpu.matmul %368, %233, %cst_143 {dimension_numbers = #tpu.dot_dimension_numbers<[1], [0], [0], [1], [0, 0, 1, 1], [], []>} : vector<1x32xf32>, vector<32x96xf32>, vector<1x96xf32> -> vector<1x96xf32>
      %382 = arith.addf %381, %234 : vector<1x96xf32>
      %383 = vector.extract_strided_slice %380 {offsets = [0, 0], sizes = [1, 32], strides = [1, 1]} : vector<1x96xf32> to vector<1x32xf32>
      %384 = vector.extract_strided_slice %382 {offsets = [0, 0], sizes = [1, 32], strides = [1, 1]} : vector<1x96xf32> to vector<1x32xf32>
      %385 = arith.addf %383, %384 : vector<1x32xf32>
      %386 = arith.negf %385 : vector<1x32xf32>
      %387 = math.exp %386 : vector<1x32xf32>
      %cst_144 = arith.constant 1.000000e+00 : f32
      %388 = vector.broadcast %cst_144 : f32 to vector<1x32xf32>
      %389 = arith.addf %388, %387 : vector<1x32xf32>
      %390 = arith.divf %388, %389 : vector<1x32xf32>
      %391 = vector.extract_strided_slice %380 {offsets = [0, 32], sizes = [1, 32], strides = [1, 1]} : vector<1x96xf32> to vector<1x32xf32>
      %392 = vector.extract_strided_slice %382 {offsets = [0, 32], sizes = [1, 32], strides = [1, 1]} : vector<1x96xf32> to vector<1x32xf32>
      %393 = arith.addf %391, %392 : vector<1x32xf32>
      %394 = arith.negf %393 : vector<1x32xf32>
      %395 = math.exp %394 : vector<1x32xf32>
      %cst_145 = arith.constant 1.000000e+00 : f32
      %396 = vector.broadcast %cst_145 : f32 to vector<1x32xf32>
      %397 = arith.addf %396, %395 : vector<1x32xf32>
      %398 = arith.divf %396, %397 : vector<1x32xf32>
      %399 = vector.extract_strided_slice %380 {offsets = [0, 64], sizes = [1, 32], strides = [1, 1]} : vector<1x96xf32> to vector<1x32xf32>
      %400 = vector.extract_strided_slice %382 {offsets = [0, 64], sizes = [1, 32], strides = [1, 1]} : vector<1x96xf32> to vector<1x32xf32>
      %401 = arith.mulf %390, %400 : vector<1x32xf32>
      %402 = arith.addf %399, %401 : vector<1x32xf32>
      %403 = math.tanh %402 : vector<1x32xf32>
      %cst_146 = arith.constant 1.000000e+00 : f32
      %404 = vector.broadcast %cst_146 : f32 to vector<1x32xf32>
      %405 = arith.subf %404, %398 : vector<1x32xf32>
      %406 = arith.mulf %405, %403 : vector<1x32xf32>
      %407 = arith.mulf %398, %368 : vector<1x32xf32>
      %408 = arith.addf %406, %407 : vector<1x32xf32>
      %409 = vector.extract_strided_slice %408 {offsets = [0, 0], sizes = [1, 16], strides = [1, 1]} : vector<1x32xf32> to vector<1x16xf32>
      %410 = arith.index_cast %c3_i32 : i32 to index
      %c0_147 = arith.constant 0 : index
      %411 = vector.load %arg26[%410, %c0_147] : memref<8x32xf32, #tpu.memory_space<vmem>>, vector<1x16xf32>
      tpu.vector_store %arg26[%410, %c0_147], %409 {strides = array<i32>} : memref<8x32xf32, #tpu.memory_space<vmem>>, vector<1x16xf32>,
      %412 = vector.extract_strided_slice %408 {offsets = [0, 16], sizes = [1, 16], strides = [1, 1]} : vector<1x32xf32> to vector<1x16xf32>
      %413 = arith.index_cast %375 : i32 to index
      %c16_148 = arith.constant 16 : index
      %414 = vector.load %arg26[%413, %c16_148] : memref<8x32xf32, #tpu.memory_space<vmem>>, vector<1x16xf32>
      tpu.vector_store %arg26[%413, %c16_148], %412 {strides = array<i32>} : memref<8x32xf32, #tpu.memory_space<vmem>>, vector<1x16xf32>,
      %c4_i32 = arith.constant 4 : i32
      %c7_i32_149 = arith.constant 7 : i32
      %415 = arith.subi %c7_i32_149, %c4_i32 : i32
      %416 = arith.index_cast %c4_i32 : i32 to index
      %c0_150 = arith.constant 0 : index
      %417 = vector.load %arg27[%416, %c0_150] : memref<8x96xf32, #tpu.memory_space<vmem>>, vector<1x96xf32>
      %418 = arith.index_cast %415 : i32 to index
      %c0_151 = arith.constant 0 : index
      %419 = vector.load %arg27[%418, %c0_151] : memref<8x96xf32, #tpu.memory_space<vmem>>, vector<1x96xf32>
      %420 = arith.select %253, %417, %419 : vector<1x96xi1>, vector<1x96xf32>
      %cst_152 = arith.constant dense<0.000000e+00> : vector<1x96xf32>
      %421 = tpu.matmul %408, %233, %cst_152 {dimension_numbers = #tpu.dot_dimension_numbers<[1], [0], [0], [1], [0, 0, 1, 1], [], []>} : vector<1x32xf32>, vector<32x96xf32>, vector<1x96xf32> -> vector<1x96xf32>
      %422 = arith.addf %421, %234 : vector<1x96xf32>
      %423 = vector.extract_strided_slice %420 {offsets = [0, 0], sizes = [1, 32], strides = [1, 1]} : vector<1x96xf32> to vector<1x32xf32>
      %424 = vector.extract_strided_slice %422 {offsets = [0, 0], sizes = [1, 32], strides = [1, 1]} : vector<1x96xf32> to vector<1x32xf32>
      %425 = arith.addf %423, %424 : vector<1x32xf32>
      %426 = arith.negf %425 : vector<1x32xf32>
      %427 = math.exp %426 : vector<1x32xf32>
      %cst_153 = arith.constant 1.000000e+00 : f32
      %428 = vector.broadcast %cst_153 : f32 to vector<1x32xf32>
      %429 = arith.addf %428, %427 : vector<1x32xf32>
      %430 = arith.divf %428, %429 : vector<1x32xf32>
      %431 = vector.extract_strided_slice %420 {offsets = [0, 32], sizes = [1, 32], strides = [1, 1]} : vector<1x96xf32> to vector<1x32xf32>
      %432 = vector.extract_strided_slice %422 {offsets = [0, 32], sizes = [1, 32], strides = [1, 1]} : vector<1x96xf32> to vector<1x32xf32>
      %433 = arith.addf %431, %432 : vector<1x32xf32>
      %434 = arith.negf %433 : vector<1x32xf32>
      %435 = math.exp %434 : vector<1x32xf32>
      %cst_154 = arith.constant 1.000000e+00 : f32
      %436 = vector.broadcast %cst_154 : f32 to vector<1x32xf32>
      %437 = arith.addf %436, %435 : vector<1x32xf32>
      %438 = arith.divf %436, %437 : vector<1x32xf32>
      %439 = vector.extract_strided_slice %420 {offsets = [0, 64], sizes = [1, 32], strides = [1, 1]} : vector<1x96xf32> to vector<1x32xf32>
      %440 = vector.extract_strided_slice %422 {offsets = [0, 64], sizes = [1, 32], strides = [1, 1]} : vector<1x96xf32> to vector<1x32xf32>
      %441 = arith.mulf %430, %440 : vector<1x32xf32>
      %442 = arith.addf %439, %441 : vector<1x32xf32>
      %443 = math.tanh %442 : vector<1x32xf32>
      %cst_155 = arith.constant 1.000000e+00 : f32
      %444 = vector.broadcast %cst_155 : f32 to vector<1x32xf32>
      %445 = arith.subf %444, %438 : vector<1x32xf32>
      %446 = arith.mulf %445, %443 : vector<1x32xf32>
      %447 = arith.mulf %438, %408 : vector<1x32xf32>
      %448 = arith.addf %446, %447 : vector<1x32xf32>
      %449 = vector.extract_strided_slice %448 {offsets = [0, 0], sizes = [1, 16], strides = [1, 1]} : vector<1x32xf32> to vector<1x16xf32>
      %450 = arith.index_cast %c4_i32 : i32 to index
      %c0_156 = arith.constant 0 : index
      %451 = vector.load %arg26[%450, %c0_156] : memref<8x32xf32, #tpu.memory_space<vmem>>, vector<1x16xf32>
      tpu.vector_store %arg26[%450, %c0_156], %449 {strides = array<i32>} : memref<8x32xf32, #tpu.memory_space<vmem>>, vector<1x16xf32>,
      %452 = vector.extract_strided_slice %448 {offsets = [0, 16], sizes = [1, 16], strides = [1, 1]} : vector<1x32xf32> to vector<1x16xf32>
      %453 = arith.index_cast %415 : i32 to index
      %c16_157 = arith.constant 16 : index
      %454 = vector.load %arg26[%453, %c16_157] : memref<8x32xf32, #tpu.memory_space<vmem>>, vector<1x16xf32>
      tpu.vector_store %arg26[%453, %c16_157], %452 {strides = array<i32>} : memref<8x32xf32, #tpu.memory_space<vmem>>, vector<1x16xf32>,
      %c5_i32 = arith.constant 5 : i32
      %c7_i32_158 = arith.constant 7 : i32
      %455 = arith.subi %c7_i32_158, %c5_i32 : i32
      %456 = arith.index_cast %c5_i32 : i32 to index
      %c0_159 = arith.constant 0 : index
      %457 = vector.load %arg27[%456, %c0_159] : memref<8x96xf32, #tpu.memory_space<vmem>>, vector<1x96xf32>
      %458 = arith.index_cast %455 : i32 to index
      %c0_160 = arith.constant 0 : index
      %459 = vector.load %arg27[%458, %c0_160] : memref<8x96xf32, #tpu.memory_space<vmem>>, vector<1x96xf32>
      %460 = arith.select %253, %457, %459 : vector<1x96xi1>, vector<1x96xf32>
      %cst_161 = arith.constant dense<0.000000e+00> : vector<1x96xf32>
      %461 = tpu.matmul %448, %233, %cst_161 {dimension_numbers = #tpu.dot_dimension_numbers<[1], [0], [0], [1], [0, 0, 1, 1], [], []>} : vector<1x32xf32>, vector<32x96xf32>, vector<1x96xf32> -> vector<1x96xf32>
      %462 = arith.addf %461, %234 : vector<1x96xf32>
      %463 = vector.extract_strided_slice %460 {offsets = [0, 0], sizes = [1, 32], strides = [1, 1]} : vector<1x96xf32> to vector<1x32xf32>
      %464 = vector.extract_strided_slice %462 {offsets = [0, 0], sizes = [1, 32], strides = [1, 1]} : vector<1x96xf32> to vector<1x32xf32>
      %465 = arith.addf %463, %464 : vector<1x32xf32>
      %466 = arith.negf %465 : vector<1x32xf32>
      %467 = math.exp %466 : vector<1x32xf32>
      %cst_162 = arith.constant 1.000000e+00 : f32
      %468 = vector.broadcast %cst_162 : f32 to vector<1x32xf32>
      %469 = arith.addf %468, %467 : vector<1x32xf32>
      %470 = arith.divf %468, %469 : vector<1x32xf32>
      %471 = vector.extract_strided_slice %460 {offsets = [0, 32], sizes = [1, 32], strides = [1, 1]} : vector<1x96xf32> to vector<1x32xf32>
      %472 = vector.extract_strided_slice %462 {offsets = [0, 32], sizes = [1, 32], strides = [1, 1]} : vector<1x96xf32> to vector<1x32xf32>
      %473 = arith.addf %471, %472 : vector<1x32xf32>
      %474 = arith.negf %473 : vector<1x32xf32>
      %475 = math.exp %474 : vector<1x32xf32>
      %cst_163 = arith.constant 1.000000e+00 : f32
      %476 = vector.broadcast %cst_163 : f32 to vector<1x32xf32>
      %477 = arith.addf %476, %475 : vector<1x32xf32>
      %478 = arith.divf %476, %477 : vector<1x32xf32>
      %479 = vector.extract_strided_slice %460 {offsets = [0, 64], sizes = [1, 32], strides = [1, 1]} : vector<1x96xf32> to vector<1x32xf32>
      %480 = vector.extract_strided_slice %462 {offsets = [0, 64], sizes = [1, 32], strides = [1, 1]} : vector<1x96xf32> to vector<1x32xf32>
      %481 = arith.mulf %470, %480 : vector<1x32xf32>
      %482 = arith.addf %479, %481 : vector<1x32xf32>
      %483 = math.tanh %482 : vector<1x32xf32>
      %cst_164 = arith.constant 1.000000e+00 : f32
      %484 = vector.broadcast %cst_164 : f32 to vector<1x32xf32>
      %485 = arith.subf %484, %478 : vector<1x32xf32>
      %486 = arith.mulf %485, %483 : vector<1x32xf32>
      %487 = arith.mulf %478, %448 : vector<1x32xf32>
      %488 = arith.addf %486, %487 : vector<1x32xf32>
      %489 = vector.extract_strided_slice %488 {offsets = [0, 0], sizes = [1, 16], strides = [1, 1]} : vector<1x32xf32> to vector<1x16xf32>
      %490 = arith.index_cast %c5_i32 : i32 to index
      %c0_165 = arith.constant 0 : index
      %491 = vector.load %arg26[%490, %c0_165] : memref<8x32xf32, #tpu.memory_space<vmem>>, vector<1x16xf32>
      tpu.vector_store %arg26[%490, %c0_165], %489 {strides = array<i32>} : memref<8x32xf32, #tpu.memory_space<vmem>>, vector<1x16xf32>,
      %492 = vector.extract_strided_slice %488 {offsets = [0, 16], sizes = [1, 16], strides = [1, 1]} : vector<1x32xf32> to vector<1x16xf32>
      %493 = arith.index_cast %455 : i32 to index
      %c16_166 = arith.constant 16 : index
      %494 = vector.load %arg26[%493, %c16_166] : memref<8x32xf32, #tpu.memory_space<vmem>>, vector<1x16xf32>
      tpu.vector_store %arg26[%493, %c16_166], %492 {strides = array<i32>} : memref<8x32xf32, #tpu.memory_space<vmem>>, vector<1x16xf32>,
      %c6_i32 = arith.constant 6 : i32
      %c7_i32_167 = arith.constant 7 : i32
      %495 = arith.subi %c7_i32_167, %c6_i32 : i32
      %496 = arith.index_cast %c6_i32 : i32 to index
      %c0_168 = arith.constant 0 : index
      %497 = vector.load %arg27[%496, %c0_168] : memref<8x96xf32, #tpu.memory_space<vmem>>, vector<1x96xf32>
      %498 = arith.index_cast %495 : i32 to index
      %c0_169 = arith.constant 0 : index
      %499 = vector.load %arg27[%498, %c0_169] : memref<8x96xf32, #tpu.memory_space<vmem>>, vector<1x96xf32>
      %500 = arith.select %253, %497, %499 : vector<1x96xi1>, vector<1x96xf32>
      %cst_170 = arith.constant dense<0.000000e+00> : vector<1x96xf32>
      %501 = tpu.matmul %488, %233, %cst_170 {dimension_numbers = #tpu.dot_dimension_numbers<[1], [0], [0], [1], [0, 0, 1, 1], [], []>} : vector<1x32xf32>, vector<32x96xf32>, vector<1x96xf32> -> vector<1x96xf32>
      %502 = arith.addf %501, %234 : vector<1x96xf32>
      %503 = vector.extract_strided_slice %500 {offsets = [0, 0], sizes = [1, 32], strides = [1, 1]} : vector<1x96xf32> to vector<1x32xf32>
      %504 = vector.extract_strided_slice %502 {offsets = [0, 0], sizes = [1, 32], strides = [1, 1]} : vector<1x96xf32> to vector<1x32xf32>
      %505 = arith.addf %503, %504 : vector<1x32xf32>
      %506 = arith.negf %505 : vector<1x32xf32>
      %507 = math.exp %506 : vector<1x32xf32>
      %cst_171 = arith.constant 1.000000e+00 : f32
      %508 = vector.broadcast %cst_171 : f32 to vector<1x32xf32>
      %509 = arith.addf %508, %507 : vector<1x32xf32>
      %510 = arith.divf %508, %509 : vector<1x32xf32>
      %511 = vector.extract_strided_slice %500 {offsets = [0, 32], sizes = [1, 32], strides = [1, 1]} : vector<1x96xf32> to vector<1x32xf32>
      %512 = vector.extract_strided_slice %502 {offsets = [0, 32], sizes = [1, 32], strides = [1, 1]} : vector<1x96xf32> to vector<1x32xf32>
      %513 = arith.addf %511, %512 : vector<1x32xf32>
      %514 = arith.negf %513 : vector<1x32xf32>
      %515 = math.exp %514 : vector<1x32xf32>
      %cst_172 = arith.constant 1.000000e+00 : f32
      %516 = vector.broadcast %cst_172 : f32 to vector<1x32xf32>
      %517 = arith.addf %516, %515 : vector<1x32xf32>
      %518 = arith.divf %516, %517 : vector<1x32xf32>
      %519 = vector.extract_strided_slice %500 {offsets = [0, 64], sizes = [1, 32], strides = [1, 1]} : vector<1x96xf32> to vector<1x32xf32>
      %520 = vector.extract_strided_slice %502 {offsets = [0, 64], sizes = [1, 32], strides = [1, 1]} : vector<1x96xf32> to vector<1x32xf32>
      %521 = arith.mulf %510, %520 : vector<1x32xf32>
      %522 = arith.addf %519, %521 : vector<1x32xf32>
      %523 = math.tanh %522 : vector<1x32xf32>
      %cst_173 = arith.constant 1.000000e+00 : f32
      %524 = vector.broadcast %cst_173 : f32 to vector<1x32xf32>
      %525 = arith.subf %524, %518 : vector<1x32xf32>
      %526 = arith.mulf %525, %523 : vector<1x32xf32>
      %527 = arith.mulf %518, %488 : vector<1x32xf32>
      %528 = arith.addf %526, %527 : vector<1x32xf32>
      %529 = vector.extract_strided_slice %528 {offsets = [0, 0], sizes = [1, 16], strides = [1, 1]} : vector<1x32xf32> to vector<1x16xf32>
      %530 = arith.index_cast %c6_i32 : i32 to index
      %c0_174 = arith.constant 0 : index
      %531 = vector.load %arg26[%530, %c0_174] : memref<8x32xf32, #tpu.memory_space<vmem>>, vector<1x16xf32>
      tpu.vector_store %arg26[%530, %c0_174], %529 {strides = array<i32>} : memref<8x32xf32, #tpu.memory_space<vmem>>, vector<1x16xf32>,
      %532 = vector.extract_strided_slice %528 {offsets = [0, 16], sizes = [1, 16], strides = [1, 1]} : vector<1x32xf32> to vector<1x16xf32>
      %533 = arith.index_cast %495 : i32 to index
      %c16_175 = arith.constant 16 : index
      %534 = vector.load %arg26[%533, %c16_175] : memref<8x32xf32, #tpu.memory_space<vmem>>, vector<1x16xf32>
      tpu.vector_store %arg26[%533, %c16_175], %532 {strides = array<i32>} : memref<8x32xf32, #tpu.memory_space<vmem>>, vector<1x16xf32>,
      %c7_i32_176 = arith.constant 7 : i32
      %c7_i32_177 = arith.constant 7 : i32
      %535 = arith.subi %c7_i32_177, %c7_i32_176 : i32
      %536 = arith.index_cast %c7_i32_176 : i32 to index
      %c0_178 = arith.constant 0 : index
      %537 = vector.load %arg27[%536, %c0_178] : memref<8x96xf32, #tpu.memory_space<vmem>>, vector<1x96xf32>
      %538 = arith.index_cast %535 : i32 to index
      %c0_179 = arith.constant 0 : index
      %539 = vector.load %arg27[%538, %c0_179] : memref<8x96xf32, #tpu.memory_space<vmem>>, vector<1x96xf32>
      %540 = arith.select %253, %537, %539 : vector<1x96xi1>, vector<1x96xf32>
      %cst_180 = arith.constant dense<0.000000e+00> : vector<1x96xf32>
      %541 = tpu.matmul %528, %233, %cst_180 {dimension_numbers = #tpu.dot_dimension_numbers<[1], [0], [0], [1], [0, 0, 1, 1], [], []>} : vector<1x32xf32>, vector<32x96xf32>, vector<1x96xf32> -> vector<1x96xf32>
      %542 = arith.addf %541, %234 : vector<1x96xf32>
      %543 = vector.extract_strided_slice %540 {offsets = [0, 0], sizes = [1, 32], strides = [1, 1]} : vector<1x96xf32> to vector<1x32xf32>
      %544 = vector.extract_strided_slice %542 {offsets = [0, 0], sizes = [1, 32], strides = [1, 1]} : vector<1x96xf32> to vector<1x32xf32>
      %545 = arith.addf %543, %544 : vector<1x32xf32>
      %546 = arith.negf %545 : vector<1x32xf32>
      %547 = math.exp %546 : vector<1x32xf32>
      %cst_181 = arith.constant 1.000000e+00 : f32
      %548 = vector.broadcast %cst_181 : f32 to vector<1x32xf32>
      %549 = arith.addf %548, %547 : vector<1x32xf32>
      %550 = arith.divf %548, %549 : vector<1x32xf32>
      %551 = vector.extract_strided_slice %540 {offsets = [0, 32], sizes = [1, 32], strides = [1, 1]} : vector<1x96xf32> to vector<1x32xf32>
      %552 = vector.extract_strided_slice %542 {offsets = [0, 32], sizes = [1, 32], strides = [1, 1]} : vector<1x96xf32> to vector<1x32xf32>
      %553 = arith.addf %551, %552 : vector<1x32xf32>
      %554 = arith.negf %553 : vector<1x32xf32>
      %555 = math.exp %554 : vector<1x32xf32>
      %cst_182 = arith.constant 1.000000e+00 : f32
      %556 = vector.broadcast %cst_182 : f32 to vector<1x32xf32>
      %557 = arith.addf %556, %555 : vector<1x32xf32>
      %558 = arith.divf %556, %557 : vector<1x32xf32>
      %559 = vector.extract_strided_slice %540 {offsets = [0, 64], sizes = [1, 32], strides = [1, 1]} : vector<1x96xf32> to vector<1x32xf32>
      %560 = vector.extract_strided_slice %542 {offsets = [0, 64], sizes = [1, 32], strides = [1, 1]} : vector<1x96xf32> to vector<1x32xf32>
      %561 = arith.mulf %550, %560 : vector<1x32xf32>
      %562 = arith.addf %559, %561 : vector<1x32xf32>
      %563 = math.tanh %562 : vector<1x32xf32>
      %cst_183 = arith.constant 1.000000e+00 : f32
      %564 = vector.broadcast %cst_183 : f32 to vector<1x32xf32>
      %565 = arith.subf %564, %558 : vector<1x32xf32>
      %566 = arith.mulf %565, %563 : vector<1x32xf32>
      %567 = arith.mulf %558, %528 : vector<1x32xf32>
      %568 = arith.addf %566, %567 : vector<1x32xf32>
      %569 = vector.extract_strided_slice %568 {offsets = [0, 0], sizes = [1, 16], strides = [1, 1]} : vector<1x32xf32> to vector<1x16xf32>
      %570 = arith.index_cast %c7_i32_176 : i32 to index
      %c0_184 = arith.constant 0 : index
      %571 = vector.load %arg26[%570, %c0_184] : memref<8x32xf32, #tpu.memory_space<vmem>>, vector<1x16xf32>
      tpu.vector_store %arg26[%570, %c0_184], %569 {strides = array<i32>} : memref<8x32xf32, #tpu.memory_space<vmem>>, vector<1x16xf32>,
      %572 = vector.extract_strided_slice %568 {offsets = [0, 16], sizes = [1, 16], strides = [1, 1]} : vector<1x32xf32> to vector<1x16xf32>
      %573 = arith.index_cast %535 : i32 to index
      %c16_185 = arith.constant 16 : index
      %574 = vector.load %arg26[%573, %c16_185] : memref<8x32xf32, #tpu.memory_space<vmem>>, vector<1x16xf32>
      tpu.vector_store %arg26[%573, %c16_185], %572 {strides = array<i32>} : memref<8x32xf32, #tpu.memory_space<vmem>>, vector<1x16xf32>,
      %c8_i32 = arith.constant 8 : i32
    } else {
    }
    %c0 = arith.constant 0 : index
    %c0_1 = arith.constant 0 : index
    %4 = vector.load %arg26[%c0, %c0_1] : memref<8x32xf32, #tpu.memory_space<vmem>>, vector<8x32xf32>
    %c0_2 = arith.constant 0 : index
    %c0_3 = arith.constant 0 : index
    %c0_4 = arith.constant 0 : index
    %5 = vector.load %arg3[%c0_2, %c0_3, %c0_4] : memref<1x1x8xf32, #tpu.memory_space<vmem>>, vector<1x1x8xf32>
    %6 = vector.shape_cast %5 : vector<1x1x8xf32> to vector<1x8xf32>
    %cst = arith.constant 0.000000e+00 : f32
    %7 = vector.broadcast %cst : f32 to vector<1x8xf32>
    %8 = arith.cmpf oeq, %6, %7 : vector<1x8xf32>
    %9 = arith.index_cast %arg1 : i32 to index
    %c0_5 = arith.constant 0 : index
    %c0_6 = arith.constant 0 : index
    %10 = vector.load %arg16[%9, %c0_5, %c0_6] : memref<2x1x32xf32, #tpu.memory_space<vmem>>, vector<1x1x32xf32>
    %11 = vector.shape_cast %10 : vector<1x1x32xf32> to vector<1x32xf32>
    %12 = arith.index_cast %arg1 : i32 to index
    %c0_7 = arith.constant 0 : index
    %c0_8 = arith.constant 0 : index
    %13 = vector.load %arg17[%12, %c0_7, %c0_8] : memref<2x1x32xf32, #tpu.memory_space<vmem>>, vector<1x1x32xf32>
    %14 = vector.shape_cast %13 : vector<1x1x32xf32> to vector<1x32xf32>
    %cst_9 = arith.constant dense<0.000000e+00> : vector<8xf32>
    %15 = vector.multi_reduction <add>, %4, %cst_9 [1] : vector<8x32xf32> to vector<8xf32>
    %16 = vector.shape_cast %15 : vector<8xf32> to vector<8x1xf32>
    %cst_10 = arith.constant 3.200000e+01 : f32
    %17 = vector.broadcast %cst_10 : f32 to vector<8x1xf32>
    %18 = arith.divf %16, %17 : vector<8x1xf32>
    %19 = vector.broadcast %18 : vector<8x1xf32> to vector<8x32xf32>
    %20 = arith.subf %4, %19 : vector<8x32xf32>
    %21 = arith.mulf %20, %20 : vector<8x32xf32>
    %cst_11 = arith.constant dense<0.000000e+00> : vector<8xf32>
    %22 = vector.multi_reduction <add>, %21, %cst_11 [1] : vector<8x32xf32> to vector<8xf32>
    %23 = vector.shape_cast %22 : vector<8xf32> to vector<8x1xf32>
    %cst_12 = arith.constant 0.0322580636 : f32
    %24 = vector.broadcast %cst_12 : f32 to vector<8x1xf32>
    %25 = arith.mulf %23, %24 : vector<8x1xf32>
    %26 = math.sqrt %25 : vector<8x1xf32>
    %cst_13 = arith.constant 9.99999997E-7 : f32
    %27 = vector.broadcast %cst_13 : f32 to vector<8x1xf32>
    %28 = arith.addf %26, %27 : vector<8x1xf32>
    %29 = tpu.reciprocal %28 : vector<8x1xf32> -> vector<8x1xf32>
    %30 = vector.broadcast %18 : vector<8x1xf32> to vector<8x32xf32>
    %31 = arith.subf %4, %30 : vector<8x32xf32>
    %32 = vector.broadcast %11 : vector<1x32xf32> to vector<8x32xf32>
    %33 = arith.mulf %32, %31 : vector<8x32xf32>
    %34 = vector.broadcast %29 : vector<8x1xf32> to vector<8x32xf32>
    %35 = arith.mulf %33, %34 : vector<8x32xf32>
    %36 = vector.broadcast %14 : vector<1x32xf32> to vector<8x32xf32>
    %37 = arith.addf %35, %36 : vector<8x32xf32>
    %38 = arith.index_cast %arg1 : i32 to index
    %c0_14 = arith.constant 0 : index
    %c0_15 = arith.constant 0 : index
    %39 = vector.load %arg8[%38, %c0_14, %c0_15] : memref<2x32x32xf32, #tpu.memory_space<vmem>>, vector<1x32x32xf32>
    %40 = vector.shape_cast %39 : vector<1x32x32xf32> to vector<32x32xf32>
    %cst_16 = arith.constant dense<0.000000e+00> : vector<8x32xf32>
    %41 = tpu.matmul %37, %40, %cst_16 {dimension_numbers = #tpu.dot_dimension_numbers<[1], [0], [0], [1], [0, 0, 1, 1], [], []>} : vector<8x32xf32>, vector<32x32xf32>, vector<8x32xf32> -> vector<8x32xf32>
    %42 = arith.index_cast %arg1 : i32 to index
    %c0_17 = arith.constant 0 : index
    %c0_18 = arith.constant 0 : index
    %43 = vector.load %arg9[%42, %c0_17, %c0_18] : memref<2x1x32xf32, #tpu.memory_space<vmem>>, vector<1x1x32xf32>
    %44 = vector.shape_cast %43 : vector<1x1x32xf32> to vector<1x32xf32>
    %45 = vector.broadcast %44 : vector<1x32xf32> to vector<8x32xf32>
    %46 = arith.addf %41, %45 : vector<8x32xf32>
    %47 = arith.index_cast %arg1 : i32 to index
    %c0_19 = arith.constant 0 : index
    %c0_20 = arith.constant 0 : index
    %48 = vector.load %arg10[%47, %c0_19, %c0_20] : memref<2x32x32xf32, #tpu.memory_space<vmem>>, vector<1x32x32xf32>
    %49 = vector.shape_cast %48 : vector<1x32x32xf32> to vector<32x32xf32>
    %cst_21 = arith.constant dense<0.000000e+00> : vector<8x32xf32>
    %50 = tpu.matmul %37, %49, %cst_21 {dimension_numbers = #tpu.dot_dimension_numbers<[1], [0], [0], [1], [0, 0, 1, 1], [], []>} : vector<8x32xf32>, vector<32x32xf32>, vector<8x32xf32> -> vector<8x32xf32>
    %51 = arith.index_cast %arg1 : i32 to index
    %c0_22 = arith.constant 0 : index
    %c0_23 = arith.constant 0 : index
    %52 = vector.load %arg11[%51, %c0_22, %c0_23] : memref<2x1x32xf32, #tpu.memory_space<vmem>>, vector<1x1x32xf32>
    %53 = vector.shape_cast %52 : vector<1x1x32xf32> to vector<1x32xf32>
    %54 = vector.broadcast %53 : vector<1x32xf32> to vector<8x32xf32>
    %55 = arith.addf %50, %54 : vector<8x32xf32>
    %56 = arith.index_cast %arg1 : i32 to index
    %c0_24 = arith.constant 0 : index
    %c0_25 = arith.constant 0 : index
    %57 = vector.load %arg12[%56, %c0_24, %c0_25] : memref<2x32x32xf32, #tpu.memory_space<vmem>>, vector<1x32x32xf32>
    %58 = vector.shape_cast %57 : vector<1x32x32xf32> to vector<32x32xf32>
    %cst_26 = arith.constant dense<0.000000e+00> : vector<8x32xf32>
    %59 = tpu.matmul %37, %58, %cst_26 {dimension_numbers = #tpu.dot_dimension_numbers<[1], [0], [0], [1], [0, 0, 1, 1], [], []>} : vector<8x32xf32>, vector<32x32xf32>, vector<8x32xf32> -> vector<8x32xf32>
    %60 = arith.index_cast %arg1 : i32 to index
    %c0_27 = arith.constant 0 : index
    %c0_28 = arith.constant 0 : index
    %61 = vector.load %arg13[%60, %c0_27, %c0_28] : memref<2x1x32xf32, #tpu.memory_space<vmem>>, vector<1x1x32xf32>
    %62 = vector.shape_cast %61 : vector<1x1x32xf32> to vector<1x32xf32>
    %63 = vector.broadcast %62 : vector<1x32xf32> to vector<8x32xf32>
    %64 = arith.addf %59, %63 : vector<8x32xf32>
    %65 = vector.extract_strided_slice %46 {offsets = [0, 0], sizes = [8, 8], strides = [1, 1]} : vector<8x32xf32> to vector<8x8xf32>
    %66 = vector.extract_strided_slice %55 {offsets = [0, 0], sizes = [8, 8], strides = [1, 1]} : vector<8x32xf32> to vector<8x8xf32>
    %67 = vector.extract_strided_slice %64 {offsets = [0, 0], sizes = [8, 8], strides = [1, 1]} : vector<8x32xf32> to vector<8x8xf32>
    "tpu.trace_start"() <{level = 10 : i32, message = "md,nd->mn"}> : () -> ()
    %cst_29 = arith.constant dense<0.000000e+00> : vector<8x8xf32>
    %68 = tpu.matmul %65, %66, %cst_29 {dimension_numbers = #tpu.dot_dimension_numbers<[1], [1], [0], [0], [0, 0, 1, 0], [], []>} : vector<8x8xf32>, vector<8x8xf32>, vector<8x8xf32> -> vector<8x8xf32>
    "tpu.trace_stop"() : () -> ()
    %cst_30 = arith.constant 0.353553385 : f32
    %69 = vector.broadcast %cst_30 : f32 to vector<8x8xf32>
    %70 = arith.mulf %68, %69 : vector<8x8xf32>
    %cst_31 = arith.constant -1.000000e+09 : f32
    %71 = vector.shape_cast %8 : vector<1x8xi1> to vector<1x8xi1>
    %72 = vector.broadcast %71 : vector<1x8xi1> to vector<8x8xi1>
    %73 = vector.broadcast %cst_31 : f32 to vector<8x8xf32>
    %74 = arith.select %72, %73, %70 : vector<8x8xi1>, vector<8x8xf32>
    %cst_32 = arith.constant dense<0xFF800000> : vector<8xf32>
    %75 = vector.multi_reduction <maximumf>, %74, %cst_32 [1] : vector<8x8xf32> to vector<8xf32>
    %76 = vector.shape_cast %75 : vector<8xf32> to vector<8x1xf32>
    %77 = vector.broadcast %76 : vector<8x1xf32> to vector<8x8xf32>
    %78 = arith.subf %74, %77 : vector<8x8xf32>
    %79 = math.exp %78 : vector<8x8xf32>
    %cst_33 = arith.constant dense<0.000000e+00> : vector<8xf32>
    %80 = vector.multi_reduction <add>, %79, %cst_33 [1] : vector<8x8xf32> to vector<8xf32>
    %81 = vector.shape_cast %80 : vector<8xf32> to vector<8x1xf32>
    %82 = tpu.reciprocal %81 : vector<8x1xf32> -> vector<8x1xf32>
    %83 = vector.broadcast %82 : vector<8x1xf32> to vector<8x8xf32>
    %84 = arith.mulf %79, %83 : vector<8x8xf32>
    %85 = arith.extui %0 : i1 to i32
    %c0_i32_34 = arith.constant 0 : i32
    %86 = arith.cmpi ne, %85, %c0_i32_34 : i32
    scf.if %86 {
      %c0_92 = arith.constant 0 : index
      %c0_93 = arith.constant 0 : index
      %c0_94 = arith.constant 0 : index
      %c0_95 = arith.constant 0 : index
      %225 = vector.load %arg25[%c0_92, %c0_93, %c0_94, %c0_95] : memref<1x4x8x8xf32, #tpu.memory_space<vmem>>, vector<1x1x8x8xf32>
      %226 = vector.shape_cast %225 : vector<1x1x8x8xf32> to vector<8x8xf32>
      %227 = vector.shape_cast %84 : vector<8x8xf32> to vector<1x1x8x8xf32>
      tpu.vector_store %arg25[%c0_92, %c0_93, %c0_94, %c0_95], %227 {strides = array<i32>} : memref<1x4x8x8xf32, #tpu.memory_space<vmem>>, vector<1x1x8x8xf32>,
    } else {
    }
    %cst_35 = arith.constant dense<0.000000e+00> : vector<8x8xf32>
    %87 = tpu.matmul %84, %67, %cst_35 {dimension_numbers = #tpu.dot_dimension_numbers<[1], [0], [0], [1], [0, 0, 1, 1], [], []>} : vector<8x8xf32>, vector<8x8xf32>, vector<8x8xf32> -> vector<8x8xf32>
    %c0_36 = arith.constant 0 : index
    %c0_37 = arith.constant 0 : index
    %88 = vector.load %arg28[%c0_36, %c0_37] : memref<8x32xf32, #tpu.memory_space<vmem>>, vector<8x8xf32>
    tpu.vector_store %arg28[%c0_36, %c0_37], %87 {strides = array<i32>} : memref<8x32xf32, #tpu.memory_space<vmem>>, vector<8x8xf32>,
    %89 = vector.extract_strided_slice %46 {offsets = [0, 8], sizes = [8, 8], strides = [1, 1]} : vector<8x32xf32> to vector<8x8xf32>
    %90 = vector.extract_strided_slice %55 {offsets = [0, 8], sizes = [8, 8], strides = [1, 1]} : vector<8x32xf32> to vector<8x8xf32>
    %91 = vector.extract_strided_slice %64 {offsets = [0, 8], sizes = [8, 8], strides = [1, 1]} : vector<8x32xf32> to vector<8x8xf32>
    "tpu.trace_start"() <{level = 10 : i32, message = "md,nd->mn"}> : () -> ()
    %cst_38 = arith.constant dense<0.000000e+00> : vector<8x8xf32>
    %92 = tpu.matmul %89, %90, %cst_38 {dimension_numbers = #tpu.dot_dimension_numbers<[1], [1], [0], [0], [0, 0, 1, 0], [], []>} : vector<8x8xf32>, vector<8x8xf32>, vector<8x8xf32> -> vector<8x8xf32>
    "tpu.trace_stop"() : () -> ()
    %cst_39 = arith.constant 0.353553385 : f32
    %93 = vector.broadcast %cst_39 : f32 to vector<8x8xf32>
    %94 = arith.mulf %92, %93 : vector<8x8xf32>
    %cst_40 = arith.constant -1.000000e+09 : f32
    %95 = vector.shape_cast %8 : vector<1x8xi1> to vector<1x8xi1>
    %96 = vector.broadcast %95 : vector<1x8xi1> to vector<8x8xi1>
    %97 = vector.broadcast %cst_40 : f32 to vector<8x8xf32>
    %98 = arith.select %96, %97, %94 : vector<8x8xi1>, vector<8x8xf32>
    %cst_41 = arith.constant dense<0xFF800000> : vector<8xf32>
    %99 = vector.multi_reduction <maximumf>, %98, %cst_41 [1] : vector<8x8xf32> to vector<8xf32>
    %100 = vector.shape_cast %99 : vector<8xf32> to vector<8x1xf32>
    %101 = vector.broadcast %100 : vector<8x1xf32> to vector<8x8xf32>
    %102 = arith.subf %98, %101 : vector<8x8xf32>
    %103 = math.exp %102 : vector<8x8xf32>
    %cst_42 = arith.constant dense<0.000000e+00> : vector<8xf32>
    %104 = vector.multi_reduction <add>, %103, %cst_42 [1] : vector<8x8xf32> to vector<8xf32>
    %105 = vector.shape_cast %104 : vector<8xf32> to vector<8x1xf32>
    %106 = tpu.reciprocal %105 : vector<8x1xf32> -> vector<8x1xf32>
    %107 = vector.broadcast %106 : vector<8x1xf32> to vector<8x8xf32>
    %108 = arith.mulf %103, %107 : vector<8x8xf32>
    %109 = arith.extui %0 : i1 to i32
    %c0_i32_43 = arith.constant 0 : i32
    %110 = arith.cmpi ne, %109, %c0_i32_43 : i32
    scf.if %110 {
      %c0_92 = arith.constant 0 : index
      %c1 = arith.constant 1 : index
      %c0_93 = arith.constant 0 : index
      %c0_94 = arith.constant 0 : index
      %225 = vector.load %arg25[%c0_92, %c1, %c0_93, %c0_94] : memref<1x4x8x8xf32, #tpu.memory_space<vmem>>, vector<1x1x8x8xf32>
      %226 = vector.shape_cast %225 : vector<1x1x8x8xf32> to vector<8x8xf32>
      %227 = vector.shape_cast %108 : vector<8x8xf32> to vector<1x1x8x8xf32>
      tpu.vector_store %arg25[%c0_92, %c1, %c0_93, %c0_94], %227 {strides = array<i32>} : memref<1x4x8x8xf32, #tpu.memory_space<vmem>>, vector<1x1x8x8xf32>,
    } else {
    }
    %cst_44 = arith.constant dense<0.000000e+00> : vector<8x8xf32>
    %111 = tpu.matmul %108, %91, %cst_44 {dimension_numbers = #tpu.dot_dimension_numbers<[1], [0], [0], [1], [0, 0, 1, 1], [], []>} : vector<8x8xf32>, vector<8x8xf32>, vector<8x8xf32> -> vector<8x8xf32>
    %c0_45 = arith.constant 0 : index
    %c8 = arith.constant 8 : index
    %112 = vector.load %arg28[%c0_45, %c8] : memref<8x32xf32, #tpu.memory_space<vmem>>, vector<8x8xf32>
    tpu.vector_store %arg28[%c0_45, %c8], %111 {strides = array<i32>} : memref<8x32xf32, #tpu.memory_space<vmem>>, vector<8x8xf32>,
    %113 = vector.extract_strided_slice %46 {offsets = [0, 16], sizes = [8, 8], strides = [1, 1]} : vector<8x32xf32> to vector<8x8xf32>
    %114 = vector.extract_strided_slice %55 {offsets = [0, 16], sizes = [8, 8], strides = [1, 1]} : vector<8x32xf32> to vector<8x8xf32>
    %115 = vector.extract_strided_slice %64 {offsets = [0, 16], sizes = [8, 8], strides = [1, 1]} : vector<8x32xf32> to vector<8x8xf32>
    "tpu.trace_start"() <{level = 10 : i32, message = "md,nd->mn"}> : () -> ()
    %cst_46 = arith.constant dense<0.000000e+00> : vector<8x8xf32>
    %116 = tpu.matmul %113, %114, %cst_46 {dimension_numbers = #tpu.dot_dimension_numbers<[1], [1], [0], [0], [0, 0, 1, 0], [], []>} : vector<8x8xf32>, vector<8x8xf32>, vector<8x8xf32> -> vector<8x8xf32>
    "tpu.trace_stop"() : () -> ()
    %cst_47 = arith.constant 0.353553385 : f32
    %117 = vector.broadcast %cst_47 : f32 to vector<8x8xf32>
    %118 = arith.mulf %116, %117 : vector<8x8xf32>
    %cst_48 = arith.constant -1.000000e+09 : f32
    %119 = vector.shape_cast %8 : vector<1x8xi1> to vector<1x8xi1>
    %120 = vector.broadcast %119 : vector<1x8xi1> to vector<8x8xi1>
    %121 = vector.broadcast %cst_48 : f32 to vector<8x8xf32>
    %122 = arith.select %120, %121, %118 : vector<8x8xi1>, vector<8x8xf32>
    %cst_49 = arith.constant dense<0xFF800000> : vector<8xf32>
    %123 = vector.multi_reduction <maximumf>, %122, %cst_49 [1] : vector<8x8xf32> to vector<8xf32>
    %124 = vector.shape_cast %123 : vector<8xf32> to vector<8x1xf32>
    %125 = vector.broadcast %124 : vector<8x1xf32> to vector<8x8xf32>
    %126 = arith.subf %122, %125 : vector<8x8xf32>
    %127 = math.exp %126 : vector<8x8xf32>
    %cst_50 = arith.constant dense<0.000000e+00> : vector<8xf32>
    %128 = vector.multi_reduction <add>, %127, %cst_50 [1] : vector<8x8xf32> to vector<8xf32>
    %129 = vector.shape_cast %128 : vector<8xf32> to vector<8x1xf32>
    %130 = tpu.reciprocal %129 : vector<8x1xf32> -> vector<8x1xf32>
    %131 = vector.broadcast %130 : vector<8x1xf32> to vector<8x8xf32>
    %132 = arith.mulf %127, %131 : vector<8x8xf32>
    %133 = arith.extui %0 : i1 to i32
    %c0_i32_51 = arith.constant 0 : i32
    %134 = arith.cmpi ne, %133, %c0_i32_51 : i32
    scf.if %134 {
      %c0_92 = arith.constant 0 : index
      %c2 = arith.constant 2 : index
      %c0_93 = arith.constant 0 : index
      %c0_94 = arith.constant 0 : index
      %225 = vector.load %arg25[%c0_92, %c2, %c0_93, %c0_94] : memref<1x4x8x8xf32, #tpu.memory_space<vmem>>, vector<1x1x8x8xf32>
      %226 = vector.shape_cast %225 : vector<1x1x8x8xf32> to vector<8x8xf32>
      %227 = vector.shape_cast %132 : vector<8x8xf32> to vector<1x1x8x8xf32>
      tpu.vector_store %arg25[%c0_92, %c2, %c0_93, %c0_94], %227 {strides = array<i32>} : memref<1x4x8x8xf32, #tpu.memory_space<vmem>>, vector<1x1x8x8xf32>,
    } else {
    }
    %cst_52 = arith.constant dense<0.000000e+00> : vector<8x8xf32>
    %135 = tpu.matmul %132, %115, %cst_52 {dimension_numbers = #tpu.dot_dimension_numbers<[1], [0], [0], [1], [0, 0, 1, 1], [], []>} : vector<8x8xf32>, vector<8x8xf32>, vector<8x8xf32> -> vector<8x8xf32>
    %c0_53 = arith.constant 0 : index
    %c16 = arith.constant 16 : index
    %136 = vector.load %arg28[%c0_53, %c16] : memref<8x32xf32, #tpu.memory_space<vmem>>, vector<8x8xf32>
    tpu.vector_store %arg28[%c0_53, %c16], %135 {strides = array<i32>} : memref<8x32xf32, #tpu.memory_space<vmem>>, vector<8x8xf32>,
    %137 = vector.extract_strided_slice %46 {offsets = [0, 24], sizes = [8, 8], strides = [1, 1]} : vector<8x32xf32> to vector<8x8xf32>
    %138 = vector.extract_strided_slice %55 {offsets = [0, 24], sizes = [8, 8], strides = [1, 1]} : vector<8x32xf32> to vector<8x8xf32>
    %139 = vector.extract_strided_slice %64 {offsets = [0, 24], sizes = [8, 8], strides = [1, 1]} : vector<8x32xf32> to vector<8x8xf32>
    "tpu.trace_start"() <{level = 10 : i32, message = "md,nd->mn"}> : () -> ()
    %cst_54 = arith.constant dense<0.000000e+00> : vector<8x8xf32>
    %140 = tpu.matmul %137, %138, %cst_54 {dimension_numbers = #tpu.dot_dimension_numbers<[1], [1], [0], [0], [0, 0, 1, 0], [], []>} : vector<8x8xf32>, vector<8x8xf32>, vector<8x8xf32> -> vector<8x8xf32>
    "tpu.trace_stop"() : () -> ()
    %cst_55 = arith.constant 0.353553385 : f32
    %141 = vector.broadcast %cst_55 : f32 to vector<8x8xf32>
    %142 = arith.mulf %140, %141 : vector<8x8xf32>
    %cst_56 = arith.constant -1.000000e+09 : f32
    %143 = vector.shape_cast %8 : vector<1x8xi1> to vector<1x8xi1>
    %144 = vector.broadcast %143 : vector<1x8xi1> to vector<8x8xi1>
    %145 = vector.broadcast %cst_56 : f32 to vector<8x8xf32>
    %146 = arith.select %144, %145, %142 : vector<8x8xi1>, vector<8x8xf32>
    %cst_57 = arith.constant dense<0xFF800000> : vector<8xf32>
    %147 = vector.multi_reduction <maximumf>, %146, %cst_57 [1] : vector<8x8xf32> to vector<8xf32>
    %148 = vector.shape_cast %147 : vector<8xf32> to vector<8x1xf32>
    %149 = vector.broadcast %148 : vector<8x1xf32> to vector<8x8xf32>
    %150 = arith.subf %146, %149 : vector<8x8xf32>
    %151 = math.exp %150 : vector<8x8xf32>
    %cst_58 = arith.constant dense<0.000000e+00> : vector<8xf32>
    %152 = vector.multi_reduction <add>, %151, %cst_58 [1] : vector<8x8xf32> to vector<8xf32>
    %153 = vector.shape_cast %152 : vector<8xf32> to vector<8x1xf32>
    %154 = tpu.reciprocal %153 : vector<8x1xf32> -> vector<8x1xf32>
    %155 = vector.broadcast %154 : vector<8x1xf32> to vector<8x8xf32>
    %156 = arith.mulf %151, %155 : vector<8x8xf32>
    %157 = arith.extui %0 : i1 to i32
    %c0_i32_59 = arith.constant 0 : i32
    %158 = arith.cmpi ne, %157, %c0_i32_59 : i32
    scf.if %158 {
      %c0_92 = arith.constant 0 : index
      %c3 = arith.constant 3 : index
      %c0_93 = arith.constant 0 : index
      %c0_94 = arith.constant 0 : index
      %225 = vector.load %arg25[%c0_92, %c3, %c0_93, %c0_94] : memref<1x4x8x8xf32, #tpu.memory_space<vmem>>, vector<1x1x8x8xf32>
      %226 = vector.shape_cast %225 : vector<1x1x8x8xf32> to vector<8x8xf32>
      %227 = vector.shape_cast %156 : vector<8x8xf32> to vector<1x1x8x8xf32>
      tpu.vector_store %arg25[%c0_92, %c3, %c0_93, %c0_94], %227 {strides = array<i32>} : memref<1x4x8x8xf32, #tpu.memory_space<vmem>>, vector<1x1x8x8xf32>,
    } else {
    }
    %cst_60 = arith.constant dense<0.000000e+00> : vector<8x8xf32>
    %159 = tpu.matmul %156, %139, %cst_60 {dimension_numbers = #tpu.dot_dimension_numbers<[1], [0], [0], [1], [0, 0, 1, 1], [], []>} : vector<8x8xf32>, vector<8x8xf32>, vector<8x8xf32> -> vector<8x8xf32>
    %c0_61 = arith.constant 0 : index
    %c24 = arith.constant 24 : index
    %160 = vector.load %arg28[%c0_61, %c24] : memref<8x32xf32, #tpu.memory_space<vmem>>, vector<8x8xf32>
    tpu.vector_store %arg28[%c0_61, %c24], %159 {strides = array<i32>} : memref<8x32xf32, #tpu.memory_space<vmem>>, vector<8x8xf32>,
    %c0_62 = arith.constant 0 : index
    %c0_63 = arith.constant 0 : index
    %161 = vector.load %arg28[%c0_62, %c0_63] : memref<8x32xf32, #tpu.memory_space<vmem>>, vector<8x32xf32>
    %162 = arith.index_cast %arg1 : i32 to index
    %c0_64 = arith.constant 0 : index
    %c0_65 = arith.constant 0 : index
    %163 = vector.load %arg14[%162, %c0_64, %c0_65] : memref<2x32x32xf32, #tpu.memory_space<vmem>>, vector<1x32x32xf32>
    %164 = vector.shape_cast %163 : vector<1x32x32xf32> to vector<32x32xf32>
    %cst_66 = arith.constant dense<0.000000e+00> : vector<8x32xf32>
    %165 = tpu.matmul %161, %164, %cst_66 {dimension_numbers = #tpu.dot_dimension_numbers<[1], [0], [0], [1], [0, 0, 1, 1], [], []>} : vector<8x32xf32>, vector<32x32xf32>, vector<8x32xf32> -> vector<8x32xf32>
    %166 = arith.index_cast %arg1 : i32 to index
    %c0_67 = arith.constant 0 : index
    %c0_68 = arith.constant 0 : index
    %167 = vector.load %arg15[%166, %c0_67, %c0_68] : memref<2x1x32xf32, #tpu.memory_space<vmem>>, vector<1x1x32xf32>
    %168 = vector.shape_cast %167 : vector<1x1x32xf32> to vector<1x32xf32>
    %169 = vector.broadcast %168 : vector<1x32xf32> to vector<8x32xf32>
    %170 = arith.addf %165, %169 : vector<8x32xf32>
    %171 = arith.addf %4, %170 : vector<8x32xf32>
    %172 = arith.index_cast %arg1 : i32 to index
    %c0_69 = arith.constant 0 : index
    %c0_70 = arith.constant 0 : index
    %173 = vector.load %arg22[%172, %c0_69, %c0_70] : memref<2x1x32xf32, #tpu.memory_space<vmem>>, vector<1x1x32xf32>
    %174 = vector.shape_cast %173 : vector<1x1x32xf32> to vector<1x32xf32>
    %175 = arith.index_cast %arg1 : i32 to index
    %c0_71 = arith.constant 0 : index
    %c0_72 = arith.constant 0 : index
    %176 = vector.load %arg23[%175, %c0_71, %c0_72] : memref<2x1x32xf32, #tpu.memory_space<vmem>>, vector<1x1x32xf32>
    %177 = vector.shape_cast %176 : vector<1x1x32xf32> to vector<1x32xf32>
    %cst_73 = arith.constant dense<0.000000e+00> : vector<8xf32>
    %178 = vector.multi_reduction <add>, %171, %cst_73 [1] : vector<8x32xf32> to vector<8xf32>
    %179 = vector.shape_cast %178 : vector<8xf32> to vector<8x1xf32>
    %cst_74 = arith.constant 3.200000e+01 : f32
    %180 = vector.broadcast %cst_74 : f32 to vector<8x1xf32>
    %181 = arith.divf %179, %180 : vector<8x1xf32>
    %182 = vector.broadcast %181 : vector<8x1xf32> to vector<8x32xf32>
    %183 = arith.subf %171, %182 : vector<8x32xf32>
    %184 = arith.mulf %183, %183 : vector<8x32xf32>
    %cst_75 = arith.constant dense<0.000000e+00> : vector<8xf32>
    %185 = vector.multi_reduction <add>, %184, %cst_75 [1] : vector<8x32xf32> to vector<8xf32>
    %186 = vector.shape_cast %185 : vector<8xf32> to vector<8x1xf32>
    %cst_76 = arith.constant 0.0322580636 : f32
    %187 = vector.broadcast %cst_76 : f32 to vector<8x1xf32>
    %188 = arith.mulf %186, %187 : vector<8x1xf32>
    %189 = math.sqrt %188 : vector<8x1xf32>
    %cst_77 = arith.constant 9.99999997E-7 : f32
    %190 = vector.broadcast %cst_77 : f32 to vector<8x1xf32>
    %191 = arith.addf %189, %190 : vector<8x1xf32>
    %192 = tpu.reciprocal %191 : vector<8x1xf32> -> vector<8x1xf32>
    %193 = vector.broadcast %181 : vector<8x1xf32> to vector<8x32xf32>
    %194 = arith.subf %171, %193 : vector<8x32xf32>
    %195 = vector.broadcast %174 : vector<1x32xf32> to vector<8x32xf32>
    %196 = arith.mulf %195, %194 : vector<8x32xf32>
    %197 = vector.broadcast %192 : vector<8x1xf32> to vector<8x32xf32>
    %198 = arith.mulf %196, %197 : vector<8x32xf32>
    %199 = vector.broadcast %177 : vector<1x32xf32> to vector<8x32xf32>
    %200 = arith.addf %198, %199 : vector<8x32xf32>
    %201 = arith.index_cast %arg1 : i32 to index
    %c0_78 = arith.constant 0 : index
    %c0_79 = arith.constant 0 : index
    %202 = vector.load %arg18[%201, %c0_78, %c0_79] : memref<2x32x64xf32, #tpu.memory_space<vmem>>, vector<1x32x64xf32>
    %203 = vector.shape_cast %202 : vector<1x32x64xf32> to vector<32x64xf32>
    %cst_80 = arith.constant dense<0.000000e+00> : vector<8x64xf32>
    %204 = tpu.matmul %200, %203, %cst_80 {dimension_numbers = #tpu.dot_dimension_numbers<[1], [0], [0], [1], [0, 0, 1, 1], [], []>} : vector<8x32xf32>, vector<32x64xf32>, vector<8x64xf32> -> vector<8x64xf32>
    %205 = arith.index_cast %arg1 : i32 to index
    %c0_81 = arith.constant 0 : index
    %c0_82 = arith.constant 0 : index
    %206 = vector.load %arg19[%205, %c0_81, %c0_82] : memref<2x1x64xf32, #tpu.memory_space<vmem>>, vector<1x1x64xf32>
    %207 = vector.shape_cast %206 : vector<1x1x64xf32> to vector<1x64xf32>
    %208 = vector.broadcast %207 : vector<1x64xf32> to vector<8x64xf32>
    %209 = arith.addf %204, %208 : vector<8x64xf32>
    %cst_83 = arith.constant 0.000000e+00 : f32
    %210 = vector.broadcast %cst_83 : f32 to vector<8x64xf32>
    %211 = arith.maximumf %209, %210 : vector<8x64xf32>
    %212 = arith.index_cast %arg1 : i32 to index
    %c0_84 = arith.constant 0 : index
    %c0_85 = arith.constant 0 : index
    %213 = vector.load %arg20[%212, %c0_84, %c0_85] : memref<2x64x32xf32, #tpu.memory_space<vmem>>, vector<1x64x32xf32>
    %214 = vector.shape_cast %213 : vector<1x64x32xf32> to vector<64x32xf32>
    %cst_86 = arith.constant dense<0.000000e+00> : vector<8x32xf32>
    %215 = tpu.matmul %211, %214, %cst_86 {dimension_numbers = #tpu.dot_dimension_numbers<[1], [0], [0], [1], [0, 0, 1, 1], [], []>} : vector<8x64xf32>, vector<64x32xf32>, vector<8x32xf32> -> vector<8x32xf32>
    %216 = arith.addf %171, %215 : vector<8x32xf32>
    %217 = arith.index_cast %arg1 : i32 to index
    %c0_87 = arith.constant 0 : index
    %c0_88 = arith.constant 0 : index
    %218 = vector.load %arg21[%217, %c0_87, %c0_88] : memref<2x1x32xf32, #tpu.memory_space<vmem>>, vector<1x1x32xf32>
    %219 = vector.shape_cast %218 : vector<1x1x32xf32> to vector<1x32xf32>
    %220 = vector.broadcast %219 : vector<1x32xf32> to vector<8x32xf32>
    %221 = arith.addf %216, %220 : vector<8x32xf32>
    %c0_89 = arith.constant 0 : index
    %c0_90 = arith.constant 0 : index
    %222 = vector.load %arg26[%c0_89, %c0_90] : memref<8x32xf32, #tpu.memory_space<vmem>>, vector<8x32xf32>
    tpu.vector_store %arg26[%c0_89, %c0_90], %221 {strides = array<i32>} : memref<8x32xf32, #tpu.memory_space<vmem>>, vector<8x32xf32>,
    %223 = arith.extui %0 : i1 to i32
    %c0_i32_91 = arith.constant 0 : i32
    %224 = arith.cmpi ne, %223, %c0_i32_91 : i32
    scf.if %224 {
      %c0_92 = arith.constant 0 : index
      %c0_93 = arith.constant 0 : index
      %c0_94 = arith.constant 0 : index
      %225 = vector.load %arg24[%c0_92, %c0_93, %c0_94] : memref<1x8x32xf32, #tpu.memory_space<vmem>>, vector<1x8x32xf32>
      %226 = vector.shape_cast %225 : vector<1x8x32xf32> to vector<8x32xf32>
      %227 = vector.shape_cast %221 : vector<8x32xf32> to vector<1x8x32xf32>
      tpu.vector_store %arg24[%c0_92, %c0_93, %c0_94], %227 {strides = array<i32>} : memref<1x8x32xf32, #tpu.memory_space<vmem>>, vector<1x8x32xf32>,
    } else {
    }
    return
  }
  func.func @transform_0(%arg0: i32, %arg1: i32) -> (i32, i32, i32) {
    %c0_i32 = arith.constant 0 : i32
    %c0_i32_0 = arith.constant 0 : i32
    %c0_i32_1 = arith.constant 0 : i32
    return %arg0, %c0_i32, %c0_i32_0 : i32, i32, i32
  }
  func.func @transform_1(%arg0: i32, %arg1: i32) -> (i32, i32, i32) {
    %c0_i32 = arith.constant 0 : i32
    %c0_i32_0 = arith.constant 0 : i32
    %c0_i32_1 = arith.constant 0 : i32
    return %arg0, %c0_i32, %c0_i32_0 : i32, i32, i32
  }
  func.func @transform_2(%arg0: i32, %arg1: i32) -> (i32, i32) {
    %c0_i32 = arith.constant 0 : i32
    %c0_i32_0 = arith.constant 0 : i32
    %c0_i32_1 = arith.constant 0 : i32
    return %c0_i32, %c0_i32_0 : i32, i32
  }
  func.func @transform_3(%arg0: i32, %arg1: i32) -> (i32, i32) {
    %c0_i32 = arith.constant 0 : i32
    %c0_i32_0 = arith.constant 0 : i32
    %c0_i32_1 = arith.constant 0 : i32
    return %c0_i32, %c0_i32_0 : i32, i32
  }
  func.func @transform_4(%arg0: i32, %arg1: i32) -> (i32, i32) {
    %c0_i32 = arith.constant 0 : i32
    %c0_i32_0 = arith.constant 0 : i32
    %c0_i32_1 = arith.constant 0 : i32
    return %c0_i32, %c0_i32_0 : i32, i32
  }
  func.func @transform_5(%arg0: i32, %arg1: i32) -> (i32, i32) {
    %c0_i32 = arith.constant 0 : i32
    %c0_i32_0 = arith.constant 0 : i32
    %c0_i32_1 = arith.constant 0 : i32
    return %c0_i32, %c0_i32_0 : i32, i32
  }
  func.func @transform_6(%arg0: i32, %arg1: i32) -> (i32, i32, i32) {
    %c0_i32 = arith.constant 0 : i32
    %c0_i32_0 = arith.constant 0 : i32
    %c0_i32_1 = arith.constant 0 : i32
    %c0_i32_2 = arith.constant 0 : i32
    return %c0_i32, %c0_i32_0, %c0_i32_1 : i32, i32, i32
  }
  func.func @transform_7(%arg0: i32, %arg1: i32) -> (i32, i32, i32) {
    %c0_i32 = arith.constant 0 : i32
    %c0_i32_0 = arith.constant 0 : i32
    %c0_i32_1 = arith.constant 0 : i32
    %c0_i32_2 = arith.constant 0 : i32
    return %c0_i32, %c0_i32_0, %c0_i32_1 : i32, i32, i32
  }
  func.func @transform_8(%arg0: i32, %arg1: i32) -> (i32, i32, i32) {
    %c0_i32 = arith.constant 0 : i32
    %c0_i32_0 = arith.constant 0 : i32
    %c0_i32_1 = arith.constant 0 : i32
    %c0_i32_2 = arith.constant 0 : i32
    return %c0_i32, %c0_i32_0, %c0_i32_1 : i32, i32, i32
  }
  func.func @transform_9(%arg0: i32, %arg1: i32) -> (i32, i32, i32) {
    %c0_i32 = arith.constant 0 : i32
    %c0_i32_0 = arith.constant 0 : i32
    %c0_i32_1 = arith.constant 0 : i32
    %c0_i32_2 = arith.constant 0 : i32
    return %c0_i32, %c0_i32_0, %c0_i32_1 : i32, i32, i32
  }
  func.func @transform_10(%arg0: i32, %arg1: i32) -> (i32, i32, i32) {
    %c0_i32 = arith.constant 0 : i32
    %c0_i32_0 = arith.constant 0 : i32
    %c0_i32_1 = arith.constant 0 : i32
    %c0_i32_2 = arith.constant 0 : i32
    return %c0_i32, %c0_i32_0, %c0_i32_1 : i32, i32, i32
  }
  func.func @transform_11(%arg0: i32, %arg1: i32) -> (i32, i32, i32) {
    %c0_i32 = arith.constant 0 : i32
    %c0_i32_0 = arith.constant 0 : i32
    %c0_i32_1 = arith.constant 0 : i32
    %c0_i32_2 = arith.constant 0 : i32
    return %c0_i32, %c0_i32_0, %c0_i32_1 : i32, i32, i32
  }
  func.func @transform_12(%arg0: i32, %arg1: i32) -> (i32, i32, i32) {
    %c0_i32 = arith.constant 0 : i32
    %c0_i32_0 = arith.constant 0 : i32
    %c0_i32_1 = arith.constant 0 : i32
    %c0_i32_2 = arith.constant 0 : i32
    return %c0_i32, %c0_i32_0, %c0_i32_1 : i32, i32, i32
  }
  func.func @transform_13(%arg0: i32, %arg1: i32) -> (i32, i32, i32) {
    %c0_i32 = arith.constant 0 : i32
    %c0_i32_0 = arith.constant 0 : i32
    %c0_i32_1 = arith.constant 0 : i32
    %c0_i32_2 = arith.constant 0 : i32
    return %c0_i32, %c0_i32_0, %c0_i32_1 : i32, i32, i32
  }
  func.func @transform_14(%arg0: i32, %arg1: i32) -> (i32, i32, i32) {
    %c0_i32 = arith.constant 0 : i32
    %c0_i32_0 = arith.constant 0 : i32
    %c0_i32_1 = arith.constant 0 : i32
    %c0_i32_2 = arith.constant 0 : i32
    return %c0_i32, %c0_i32_0, %c0_i32_1 : i32, i32, i32
  }
  func.func @transform_15(%arg0: i32, %arg1: i32) -> (i32, i32, i32) {
    %c0_i32 = arith.constant 0 : i32
    %c0_i32_0 = arith.constant 0 : i32
    %c0_i32_1 = arith.constant 0 : i32
    %c0_i32_2 = arith.constant 0 : i32
    return %c0_i32, %c0_i32_0, %c0_i32_1 : i32, i32, i32
  }
  func.func @transform_16(%arg0: i32, %arg1: i32) -> (i32, i32, i32) {
    %c0_i32 = arith.constant 0 : i32
    %c0_i32_0 = arith.constant 0 : i32
    %c0_i32_1 = arith.constant 0 : i32
    %c0_i32_2 = arith.constant 0 : i32
    return %c0_i32, %c0_i32_0, %c0_i32_1 : i32, i32, i32
  }
  func.func @transform_17(%arg0: i32, %arg1: i32) -> (i32, i32, i32) {
    %c0_i32 = arith.constant 0 : i32
    %c0_i32_0 = arith.constant 0 : i32
    %c0_i32_1 = arith.constant 0 : i32
    %c0_i32_2 = arith.constant 0 : i32
    return %c0_i32, %c0_i32_0, %c0_i32_1 : i32, i32, i32
  }
  func.func @transform_18(%arg0: i32, %arg1: i32) -> (i32, i32, i32) {
    %c0_i32 = arith.constant 0 : i32
    %c0_i32_0 = arith.constant 0 : i32
    %c0_i32_1 = arith.constant 0 : i32
    %c0_i32_2 = arith.constant 0 : i32
    return %c0_i32, %c0_i32_0, %c0_i32_1 : i32, i32, i32
  }
  func.func @transform_19(%arg0: i32, %arg1: i32) -> (i32, i32, i32) {
    %c0_i32 = arith.constant 0 : i32
    %c0_i32_0 = arith.constant 0 : i32
    %c0_i32_1 = arith.constant 0 : i32
    %c0_i32_2 = arith.constant 0 : i32
    return %c0_i32, %c0_i32_0, %c0_i32_1 : i32, i32, i32
  }
  func.func @transform_20(%arg0: i32, %arg1: i32) -> (i32, i32, i32) {
    %c0_i32 = arith.constant 0 : i32
    %c0_i32_0 = arith.constant 0 : i32
    %c0_i32_1 = arith.constant 0 : i32
    %c0_i32_2 = arith.constant 0 : i32
    return %c0_i32, %c0_i32_0, %c0_i32_1 : i32, i32, i32
  }
  func.func @transform_21(%arg0: i32, %arg1: i32) -> (i32, i32, i32) {
    %c0_i32 = arith.constant 0 : i32
    %c0_i32_0 = arith.constant 0 : i32
    %c0_i32_1 = arith.constant 0 : i32
    %c0_i32_2 = arith.constant 0 : i32
    return %c0_i32, %c0_i32_0, %c0_i32_1 : i32, i32, i32
  }
  func.func @transform_22(%arg0: i32, %arg1: i32) -> (i32, i32, i32) {
    %c0_i32 = arith.constant 0 : i32
    %c0_i32_0 = arith.constant 0 : i32
    %c0_i32_1 = arith.constant 0 : i32
    return %arg0, %c0_i32, %c0_i32_0 : i32, i32, i32
  }
  func.func @transform_23(%arg0: i32, %arg1: i32) -> (i32, i32, i32, i32) {
    %c0_i32 = arith.constant 0 : i32
    %c0_i32_0 = arith.constant 0 : i32
    %c0_i32_1 = arith.constant 0 : i32
    %c0_i32_2 = arith.constant 0 : i32
    return %arg0, %c0_i32, %c0_i32_0, %c0_i32_1 : i32, i32, i32, i32
  }
}

</mosaic_0001>

<bundles_post_ra>
// kernel: encoder_forward.1
= control target key start
LH: loop header
LB: loop body
LE: loop exit
PB: predicated region body
PF: predicated region fallthrough
CT: control target
= control target key end

     0   :  { %s6739_s0 = inlined_call_operand.hbm [shape: f32[2,8,16], index: 0, kind: input, shape index: {}]   ;;  %s6740_s1 = inlined_call_operand.hbm [shape: f32[2,1,8], index: 1, kind: input, shape index: {}]   ;;  %s6741_s2 = inlined_call_operand.hbm [shape: f32[16,96], index: 2, kind: input, shape index: {}]   ;;  %s6742_s3 = inlined_call_operand.hbm [shape: f32[32,96], index: 3, kind: input, shape index: {}]   ;;  %s6743_s4 = inlined_call_operand.hbm [shape: f32[1,96], index: 4, kind: input, shape index: {}]   ;;  %s6744_s5 = inlined_call_operand.hbm [shape: f32[1,96], index: 5, kind: input, shape index: {}]   ;;  %s6745_s6 = inlined_call_operand.hbm [shape: f32[2,32,32], index: 6, kind: input, shape index: {}]   ;;  %s6746_s7 = inlined_call_operand.hbm [shape: f32[2,1,32], index: 7, kind: input, shape index: {}]   ;;  %s6747_s8 = inlined_call_operand.hbm [shape: f32[2,32,32], index: 8, kind: input, shape index: {}]   ;;  %s6748_s9 = inlined_call_operand.hbm [shape: f32[2,1,32], index: 9, kind: input, shape index: {}]   ;;  %s6749_s10 = inlined_call_operand.hbm [shape: f32[2,32,32], index: 10, kind: input, shape index: {}]   ;;  %s6750_s11 = inlined_call_operand.hbm [shape: f32[2,1,32], index: 11, kind: input, shape index: {}]   ;;  %s6751_s12 = inlined_call_operand.hbm [shape: f32[2,32,32], index: 12, kind: input, shape index: {}]   ;;  %s6752_s13 = inlined_call_operand.hbm [shape: f32[2,1,32], index: 13, kind: input, shape index: {}]   ;;  %s6753_s14 = inlined_call_operand.hbm [shape: f32[2,1,32], index: 14, kind: input, shape index: {}]   ;;  %s6754_s15 = inlined_call_operand.hbm [shape: f32[2,1,32], index: 15, kind: input, shape index: {}]   ;;  %s6755_s16 = inlined_call_operand.hbm [shape: f32[2,32,64], index: 16, kind: input, shape index: {}]   ;;  %s6756_s17 = inlined_call_operand.hbm [shape: f32[2,1,64], index: 17, kind: input, shape index: {}]   ;;  %s6757_s18 = inlined_call_operand.hbm [shape: f32[2,64,32], index: 18, kind: input, shape index: {}]   ;;  %s6758_s19 = inlined_call_operand.hbm [shape: f32[2,1,32], index: 19, kind: input, shape index: {}]   ;;  %s6759_s20 = inlined_call_operand.hbm [shape: f32[2,1,32], index: 20, kind: input, shape index: {}]   ;;  %s6760_s21 = inlined_call_operand.hbm [shape: f32[2,1,32], index: 21, kind: input, shape index: {}]   ;;  %s6761_s22 = inlined_call_operand.hbm [shape: f32[2,8,32], index: 22, kind: output, shape index: {0}]   ;;  %s6762_s23 = inlined_call_operand.hbm [shape: f32[2,4,8,8], index: 23, kind: output, shape index: {1}]  }
   0x1   :  { %6805 = sst [smem:[#allocation68_spill]] %s6739_s0 }
   0x2   :  { %6806 = sst [smem:[#allocation69_spill]] %s6740_s1 }
   0x3   :  { %6807 = sst [smem:[#allocation70_spill]] %s6741_s2 }
   0x4   :  { %6808 = sst [smem:[#allocation71_spill]] %s6742_s3 }
   0x5   :  { %6809 = sst [smem:[#allocation72_spill]] %s6743_s4 }
   0x6   :  { %6810 = sst [smem:[#allocation73_spill]] %s6744_s5 }
   0x7   :  { %6811 = sst [smem:[#allocation74_spill]] %s6745_s6 }
   0x8   :  { %6812 = sst [smem:[#allocation75_spill]] %s6746_s7 }
   0x9   :  { %6813 = sst [smem:[#allocation76_spill]] %s6747_s8 }
   0xa   :  { %6814 = sst [smem:[#allocation77_spill]] %s6748_s9 }
   0xb   :  { %6815 = sst [smem:[#allocation78_spill]] %s6749_s10 }
   0xc   :  { %6816 = sst [smem:[#allocation79_spill]] %s6750_s11 }
   0xd   :  { %6817 = sst [smem:[#allocation80_spill]] %s6751_s12 }
   0xe   :  { %6818 = sst [smem:[#allocation81_spill]] %s6752_s13 }
   0xf   :  { %6819 = sst [smem:[#allocation82_spill]] %s6753_s14 }
  0x10   :  { %6820 = sst [smem:[#allocation83_spill]] %s6754_s15 }
  0x11   :  { %6821 = sst [smem:[#allocation84_spill]] %s6759_s20 }
  0x12   :  { %6822 = sst [smem:[#allocation85_spill]] %s6760_s21 }
  0x13   :  { %6823 = sst [smem:[#allocation86_spill]] %s6761_s22 }
  0x14   :  { %6824 = sst [smem:[#allocation87_spill]] %s6762_s23 }
  0x15   :  { %29 = vsyncpa [#allocation6], 0 }
  0x16   :  { %31 = vsyncpa [#allocation6 + $0x1], 0 }
  0x17   :  { %32 = vsyncpa [#allocation9], 0 }
  0x18   :  { %34 = vsyncpa [#allocation9 + $0x1], 0 }
  0x19   :  { %35 = vsyncpa [#allocation12], 0 }
  0x1a   :  { %36 = vsyncpa [#allocation15], 0 }
  0x1b   :  { %37 = vsyncpa [#allocation18], 0 }
  0x1c   :  { %38 = vsyncpa [#allocation21], 0 }
  0x1d   :  { %39 = vsyncpa [#allocation24], 0 }
  0x1e   :  { %40 = vsyncpa [#allocation27], 0 }
  0x1f   :  { %41 = vsyncpa [#allocation30], 0 }
  0x20   :  { %42 = vsyncpa [#allocation33], 0 }
  0x21   :  { %43 = vsyncpa [#allocation36], 0 }
  0x22   :  { %44 = vsyncpa [#allocation39], 0 }
  0x23   :  { %45 = vsyncpa [#allocation7], 0 }
  0x24   :  { %47 = vsyncpa [#allocation7 + $0x1], 0 }
  0x25   :  { %48 = vsyncpa [#allocation42], 0 }
  0x26   :  { %50 = vsyncpa [#allocation42 + $0x1], 0  ;;  %s5592_s4 = smov 0   ;;  %s5594_s30 = smov 0  }
  0x27   :  { %s5596_s24 = smov 0   ;;  %s5598_s25 = smov 0  }
  0x28   :  { %s5600_s5 = smov 0   ;;  %s5602_s1 = smov 0  }
  0x29   :  { %s5604_s26 = smov 0   ;;  %s5606_s2 = smov 0  }
  0x2a LB: > { %6825 = sst [smem:[#allocation58_spill]] %s5398_s4  ;;  %s5633_s6 = sadd.s32 4294967295, %s5426_s2   ;;  %s5426_s2 = sphi %s5606_s2, %s56_s2   ;;  %s5422_s26 = sphi %s5604_s26, %s6924_s26   ;;  %s5418_s1 = sphi %s5602_s1, %s6923_s1   ;;  %s5414_s5 = sphi %s5600_s5, %s6921_s5   ;;  %s5410_s25 = sphi %s5598_s25, %s6920_s25   ;;  %s5406_s24 = sphi %s5596_s24, %s6922_s24   ;;  %s5402_s30 = sphi %s5594_s30, %s6919_s30   ;;  %s5398_s4 = sphi %s5592_s4, %s6918_s4  }
  0x2b   : > { %6826 = sst [smem:[#allocation59_spill]] %s5402_s30  ;;  %p3739_p0 = scmp.ge.s32.totalorder %s5426_s2, 1 }
  0x2c   : > { %6827 = sst [smem:[#allocation60_spill]] %s5406_s24  ;;  %p6788_p1 = scmp.eq.s32.totalorder %s5633_s6, 0 }
  0x2d   : > { %6828 = sst [smem:[#allocation61_spill]] %s5410_s25  ;;  %p597_p2 = scmp.lt.s32.totalorder %s5426_s2, 5 }
  0x2e   : > { %6829 = sst [smem:[#allocation62_spill]] %s5414_s5  ;;  %s5428_s7 = smov [#allocation10]  }
  0x2f   : > { %6830 = sst [smem:[#allocation63_spill]] %s5418_s1  ;;  %p5638_p3 = pnand %p3739_p0, %p597_p2 }
  0x30   : > { %6831 = sst [smem:[#allocation64_spill]] %s5422_s26  ;;  %s609_s28 = sshll.u32 %s5428_s7, 4  ;;  %s5642_s28 = int_to_ptr.vmem [resolvable:$true] %s609_s28 }
  0x31   : > { %6832 = sst [smem:[#allocation65_spill]] %s5426_s2  ;;  %p4335_p4 = pneg %p5638_p3 }
  0x32   : > { %6833 = sst [smem:[#allocation66_spill]] %s5633_s6  ;;  %s5429_s3 = smov [#allocation11]  }
  0x33   : > { %s6834_s27 = scalar_select %p5638_p3, 1, 0 }
  0x34   : > { %p5648_p5 = pnand %p4335_p4, %p6788_p1  ;;  %s622_s0 = sshll.u32 %s5429_s3, 4  ;;  %s5652_s0 = int_to_ptr.vmem [resolvable:$true] %s622_s0 }
  0x35   : > { %6835 = sst [smem:[#allocation67_spill]] %s6834_s27  ;;  %s5430_s23 = smov [#allocation14]  }
  0x36   : > { %s5654_s22 = sshll.u32 %s5430_s23, 4  ;;  %s6837_s7 = sld [smem:[#allocation70_spill]]  ;;  %s648_s22 = int_to_ptr.vmem [resolvable:$true] %s5654_s22 }
  0x37   : > { %p5664_p7 = pneg %p5648_p5 }
  0x3c   : > { %s4628_s4 = scalar_lea.hbm %s6837_s7, 256 }
  0x3d   : > { %p4629_p6 = scmp.ne.s32.totalorder %s6837_s7, %s4628_s4  ;;  %p4635_p10 = scmp.lt.u32.totalorder %s4628_s4, %s6837_s7 }
  0x3f   : > { %p4631_p8 = pnand %p5664_p7, %p4629_p6 }
  0x41   : > { %p4632_p9 = pneg %p4631_p8 }
  0x43   : > { %p4637_p11 = pnand %p4635_p10, %p4632_p9 }
  0x45   : > { %4640 = shalt.err (!%p4637_p11)
}
  0x46   : > { %s4641_s30 = scalar_lea.vmem %s5642_s28, 256  ;;  %p4649_p2 = scmp.lt.s32.totalorder %s5642_s28, %s5642_s28 }
  0x47   : > { %p4642_p12 = scmp.ne.s32.totalorder %s5642_s28, %s4641_s30  ;;  %p4650_p4 = scmp.lt.s32.totalorder %s4641_s30, %s4641_s30 }
  0x49   : > { %p4644_p13 = pnand %p4642_p12, %p5664_p7  ;;  %p4651_p6 = por %p4650_p4, %p4649_p2 }
  0x4b   : > { %p4645_p0 = pneg %p4644_p13 }
  0x4d   : > { %p4652_p8 = pnand %p4651_p6, %p4645_p0 }
  0x4f   : > { %4655 = shalt.err (!%p4652_p8)
}
  0x50   : > { %s6790_s25 = smov 128   ;;  %s6792_s4 = smov 8  }
  0x51   : > { %4338 = dma.hbm_to_vmem [thread:$0]  (!%p5648_p5), %s6837_s7, 256, %s5642_s28, [#allocation9], %s6790_s25, %s6790_s25, %s6792_s4  }
  0x52   : > { %s6839_s24 = sld [smem:[#allocation71_spill]] }
  0x58   : > { %s6840_s21 = smov %s6839_s24  ;;  %s4656_s30 = scalar_lea.hbm %s6839_s24, 512 }
  0x59   : > { %p4657_p9 = scmp.ne.s32.totalorder %s6840_s21, %s4656_s30  ;;  %p4663_p12 = scmp.lt.u32.totalorder %s4656_s30, %s6840_s21 }
  0x5b   : > { %p4659_p10 = pnand %p4657_p9, %p5664_p7 }
  0x5d   : > { %p4660_p11 = pneg %p4659_p10 }
  0x5f   : > { %p4665_p13 = pnand %p4663_p12, %p4660_p11 }
  0x61   : > { %4668 = shalt.err (!%p4665_p13)
}
  0x62   : > { %s4669_s28 = scalar_lea.vmem %s5652_s0, 512  ;;  %p4677_p6 = scmp.lt.s32.totalorder %s5652_s0, %s5652_s0 }
  0x63   : > { %p4670_p0 = scmp.ne.s32.totalorder %s5652_s0, %s4669_s28  ;;  %p4678_p8 = scmp.lt.s32.totalorder %s4669_s28, %s4669_s28 }
  0x65   : > { %p4672_p2 = pnand %p4670_p0, %p5664_p7  ;;  %p4679_p9 = por %p4678_p8, %p4677_p6 }
  0x67   : > { %p4673_p4 = pneg %p4672_p2 }
  0x69   : > { %p4680_p10 = pnand %p4679_p9, %p4673_p4 }
  0x6b   : > { %4683 = shalt.err (!%p4680_p10)
}
  0x6c   : > { %4341 = dma.hbm_to_vmem [thread:$0]  (!%p5648_p5), %s6840_s21, 512, %s5652_s0, [#allocation12], %s6790_s25, %s6790_s25, %s6792_s4  }
  0x6d   : > { %s6841_s2 = sld [smem:[#allocation73_spill]] }
  0x73   : > { %s6842_s27 = smov %s6841_s2  ;;  %s4684_s5 = scalar_lea.hbm %s6841_s2, 16 }
  0x74   : > { %p4685_p11 = scmp.ne.s32.totalorder %s6842_s27, %s4684_s5  ;;  %p4691_p0 = scmp.lt.u32.totalorder %s4684_s5, %s6842_s27 }
  0x76   : > { %p4687_p12 = pnand %p4685_p11, %p5664_p7 }
  0x78   : > { %p4688_p13 = pneg %p4687_p12 }
  0x7a   : > { %p4693_p2 = pnand %p4691_p0, %p4688_p13 }
  0x7c   : > { %4696 = shalt.err (!%p4693_p2)
}
  0x7d   : > { %s4697_s20 = scalar_lea.vmem %s648_s22, 16  ;;  %s4704_s0 = scalar_lea.vmem %s648_s22, 32 }
  0x7e   : > { %p4698_p4 = scmp.ne.s32.totalorder %s648_s22, %s4697_s20  ;;  %p4705_p9 = scmp.lt.s32.totalorder %s648_s22, %s648_s22 }
  0x7f   : > { %p4706_p10 = scmp.lt.s32.totalorder %s4704_s0, %s4697_s20 }
  0x80   : > { %p4700_p6 = pnand %p4698_p4, %p5664_p7 }
  0x81   : > { %p4707_p1 = por %p4706_p10, %p4705_p9 }
  0x82   : > { %p4701_p8 = pneg %p4700_p6 }
  0x84   : > { %p4708_p3 = pnand %p4707_p1, %p4701_p8 }
  0x86   : > { %4711 = shalt.err (!%p4708_p3)
}
  0x87   : > { %4347 = dma.hbm_to_vmem [thread:$0]  (!%p5648_p5), %s6842_s27, 16, %s648_s22, [#allocation15]  }
  0x88   : > { %s5433_s26 = smov [#allocation17]   ;;  %s6843_s23 = sld [smem:[#allocation75_spill]] }
  0x89   : > { %s670_s2 = sshll.u32 %s5433_s26, 4  ;;  %s671_s2 = int_to_ptr.vmem [resolvable:$true] %s670_s2 }
  0x8e   : > { %s4712_s30 = scalar_lea.hbm %s6843_s23, 32 }
  0x8f   : > { %p4713_p11 = scmp.ne.s32.totalorder %s6843_s23, %s4712_s30  ;;  %p4719_p12 = scmp.lt.u32.totalorder %s4712_s30, %s6843_s23 }
  0x91   : > { %p4715_p1 = pnand %p4713_p11, %p5664_p7 }
  0x93   : > { %p4716_p3 = pneg %p4715_p1 }
  0x95   : > { %p4721_p13 = pnand %p4719_p12, %p4716_p3 }
  0x97   : > { %4724 = shalt.err (!%p4721_p13)
}
  0x98   : > { %s4725_s22 = scalar_lea.vmem %s671_s2, 32  ;;  %p4733_p6 = scmp.lt.s32.totalorder %s671_s2, %s671_s2 }
  0x99   : > { %p4726_p0 = scmp.ne.s32.totalorder %s671_s2, %s4725_s22  ;;  %p4734_p8 = scmp.lt.s32.totalorder %s4725_s22, %s4725_s22 }
  0x9b   : > { %p4728_p2 = pnand %p4726_p0, %p5664_p7  ;;  %p4735_p9 = por %p4734_p8, %p4733_p6 }
  0x9d   : > { %p4729_p4 = pneg %p4728_p2 }
  0x9f   : > { %p4736_p10 = pnand %p4735_p9, %p4729_p4 }
  0xa1   : > { %4739 = shalt.err (!%p4736_p10)
}
  0xa2   : > { %s6795_s25 = smov 16   ;;  %s6797_s24 = smov 1  }
  0xa3   : > { %4353 = dma.hbm_to_vmem [thread:$0]  (!%p5648_p5), %s6843_s23, 32, %s671_s2, [#allocation18], %s6795_s25, %s6795_s25, %s6797_s24  }
  0xa4   : > { %s5436_s5 = smov [#allocation20]   ;;  %s5437_s30 = smov [#allocation23]  }
  0xa5   : > { %s696_s3 = sshll.u32 %s5436_s5, 4  ;;  %s722_s28 = sshll.u32 %s5437_s30, 4  ;;  %s697_s3 = int_to_ptr.vmem [resolvable:$true] %s696_s3  ;;  %s5754_s28 = int_to_ptr.vmem [resolvable:$true] %s722_s28 }
  0xa6   : > { %s6844_s9 = sld [smem:[#allocation77_spill]] }
  0xac   : > { %s4740_s22 = scalar_lea.hbm %s6844_s9, 32 }
  0xad   : > { %p4741_p11 = scmp.ne.s32.totalorder %s6844_s9, %s4740_s22  ;;  %p4747_p12 = scmp.lt.u32.totalorder %s4740_s22, %s6844_s9 }
  0xaf   : > { %p4743_p1 = pnand %p4741_p11, %p5664_p7 }
  0xb1   : > { %p4744_p3 = pneg %p4743_p1 }
  0xb3   : > { %p4749_p13 = pnand %p4747_p12, %p4744_p3 }
  0xb5   : > { %4752 = shalt.err (!%p4749_p13)
}
  0xb6   : > { %s4753_s26 = scalar_lea.vmem %s697_s3, 32  ;;  %p4761_p6 = scmp.lt.s32.totalorder %s697_s3, %s697_s3 }
  0xb7   : > { %p4754_p0 = scmp.ne.s32.totalorder %s697_s3, %s4753_s26  ;;  %p4762_p8 = scmp.lt.s32.totalorder %s4753_s26, %s4753_s26 }
  0xb9   : > { %p4756_p2 = pnand %p4754_p0, %p5664_p7  ;;  %p4763_p9 = por %p4762_p8, %p4761_p6 }
  0xbb   : > { %p4757_p4 = pneg %p4756_p2 }
  0xbd   : > { %p4764_p10 = pnand %p4763_p9, %p4757_p4 }
  0xbf   : > { %4767 = shalt.err (!%p4764_p10)
}
  0xc0   : > { %4359 = dma.hbm_to_vmem [thread:$0]  (!%p5648_p5), %s6844_s9, 32, %s697_s3, [#allocation21], %s6795_s25, %s6795_s25, %s6797_s24  }
  0xc1   : > { %s6845_s11 = sld [smem:[#allocation79_spill]] }
  0xc7   : > { %s4768_s20 = scalar_lea.hbm %s6845_s11, 32 }
  0xc8   : > { %p4769_p11 = scmp.ne.s32.totalorder %s6845_s11, %s4768_s20  ;;  %p4775_p12 = scmp.lt.u32.totalorder %s4768_s20, %s6845_s11 }
  0xca   : > { %p4771_p1 = pnand %p4769_p11, %p5664_p7 }
  0xcc   : > { %p4772_p3 = pneg %p4771_p1 }
  0xce   : > { %p4777_p13 = pnand %p4775_p12, %p4772_p3 }
  0xd0   : > { %4780 = shalt.err (!%p4777_p13)
}
  0xd1   : > { %s4781_s3 = scalar_lea.vmem %s5754_s28, 32  ;;  %p4789_p6 = scmp.lt.s32.totalorder %s5754_s28, %s5754_s28 }
  0xd2   : > { %p4782_p0 = scmp.ne.s32.totalorder %s5754_s28, %s4781_s3  ;;  %p4790_p8 = scmp.lt.s32.totalorder %s4781_s3, %s4781_s3 }
  0xd4   : > { %p4784_p2 = pnand %p4782_p0, %p5664_p7  ;;  %p4791_p9 = por %p4790_p8, %p4789_p6 }
  0xd6   : > { %p4785_p4 = pneg %p4784_p2 }
  0xd8   : > { %p4792_p10 = pnand %p4791_p9, %p4785_p4 }
  0xda   : > { %4795 = shalt.err (!%p4792_p10)
}
  0xdb   : > { %4365 = dma.hbm_to_vmem [thread:$0]  (!%p5648_p5), %s6845_s11, 32, %s5754_s28, [#allocation24], %s6795_s25, %s6795_s25, %s6797_s24  }
  0xdc   : > { %s5438_s4 = smov [#allocation26]   ;;  %s5439_s30 = smov [#allocation29]  }
  0xdd   : > { %s748_s5 = sshll.u32 %s5438_s4, 4  ;;  %s774_s20 = sshll.u32 %s5439_s30, 4  ;;  %s749_s5 = int_to_ptr.vmem [resolvable:$true] %s748_s5  ;;  %s5803_s20 = int_to_ptr.vmem [resolvable:$true] %s774_s20 }
  0xde   : > { %s6846_s13 = sld [smem:[#allocation81_spill]] }
  0xe4   : > { %s4796_s1 = scalar_lea.hbm %s6846_s13, 32 }
  0xe5   : > { %p4797_p11 = scmp.ne.s32.totalorder %s6846_s13, %s4796_s1  ;;  %p4803_p12 = scmp.lt.u32.totalorder %s4796_s1, %s6846_s13 }
  0xe7   : > { %p4799_p1 = pnand %p4797_p11, %p5664_p7 }
  0xe9   : > { %p4800_p3 = pneg %p4799_p1 }
  0xeb   : > { %p4805_p13 = pnand %p4803_p12, %p4800_p3 }
  0xed   : > { %4808 = shalt.err (!%p4805_p13)
}
  0xee   : > { %s4809_s7 = scalar_lea.vmem %s749_s5, 32  ;;  %p4817_p6 = scmp.lt.s32.totalorder %s749_s5, %s749_s5 }
  0xef   : > { %p4810_p0 = scmp.ne.s32.totalorder %s749_s5, %s4809_s7  ;;  %p4818_p8 = scmp.lt.s32.totalorder %s4809_s7, %s4809_s7 }
  0xf1   : > { %p4812_p2 = pnand %p4810_p0, %p5664_p7  ;;  %p4819_p9 = por %p4818_p8, %p4817_p6 }
  0xf3   : > { %p4813_p4 = pneg %p4812_p2 }
  0xf5   : > { %p4820_p10 = pnand %p4819_p9, %p4813_p4 }
  0xf7   : > { %4823 = shalt.err (!%p4820_p10)
}
  0xf8   : > { %4371 = dma.hbm_to_vmem [thread:$0]  (!%p5648_p5), %s6846_s13, 32, %s749_s5, [#allocation27], %s6795_s25, %s6795_s25, %s6797_s24  }
  0xf9   : > { %s6847_s15 = sld [smem:[#allocation83_spill]] }
  0xff   : > { %s4824_s1 = scalar_lea.hbm %s6847_s15, 32 }
 0x100   : > { %p4825_p11 = scmp.ne.s32.totalorder %s6847_s15, %s4824_s1  ;;  %p4831_p12 = scmp.lt.u32.totalorder %s4824_s1, %s6847_s15 }
 0x102   : > { %p4827_p1 = pnand %p4825_p11, %p5664_p7 }
 0x104   : > { %p4828_p3 = pneg %p4827_p1 }
 0x106   : > { %p4833_p13 = pnand %p4831_p12, %p4828_p3 }
 0x108   : > { %4836 = shalt.err (!%p4833_p13)
}
 0x109   : > { %s4837_s5 = scalar_lea.vmem %s5803_s20, 32  ;;  %p4845_p6 = scmp.lt.s32.totalorder %s5803_s20, %s5803_s20 }
 0x10a   : > { %p4838_p0 = scmp.ne.s32.totalorder %s5803_s20, %s4837_s5  ;;  %p4846_p8 = scmp.lt.s32.totalorder %s4837_s5, %s4837_s5 }
 0x10c   : > { %p4840_p2 = pnand %p4838_p0, %p5664_p7  ;;  %p4847_p9 = por %p4846_p8, %p4845_p6 }
 0x10e   : > { %p4841_p4 = pneg %p4840_p2 }
 0x110   : > { %p4848_p10 = pnand %p4847_p9, %p4841_p4 }
 0x112   : > { %4851 = shalt.err (!%p4848_p10)
}
 0x113   : > { %4377 = dma.hbm_to_vmem [thread:$0]  (!%p5648_p5), %s6847_s15, 32, %s5803_s20, [#allocation30], %s6795_s25, %s6795_s25, %s6797_s24  }
 0x114   : > { %s5440_s30 = smov [#allocation32]   ;;  %s5441_s22 = smov [#allocation35]  }
 0x115   : > { %s800_s0 = sshll.u32 %s5440_s30, 4  ;;  %s826_s1 = sshll.u32 %s5441_s22, 4  ;;  %s801_s0 = int_to_ptr.vmem [resolvable:$true] %s800_s0  ;;  %s5852_s1 = int_to_ptr.vmem [resolvable:$true] %s826_s1 }
 0x116   : > { %s4852_s26 = scalar_lea.hbm %s6756_s17, 32 }
 0x117   : > { %p4853_p11 = scmp.ne.s32.totalorder %s6756_s17, %s4852_s26  ;;  %p4859_p12 = scmp.lt.u32.totalorder %s4852_s26, %s6756_s17 }
 0x119   : > { %p4855_p1 = pnand %p4853_p11, %p5664_p7 }
 0x11b   : > { %p4856_p3 = pneg %p4855_p1 }
 0x11d   : > { %p4861_p13 = pnand %p4859_p12, %p4856_p3 }
 0x11f   : > { %4864 = shalt.err (!%p4861_p13)
}
 0x120   : > { %s4865_s4 = scalar_lea.vmem %s801_s0, 32  ;;  %p4873_p6 = scmp.lt.s32.totalorder %s801_s0, %s801_s0 }
 0x121   : > { %p4866_p0 = scmp.ne.s32.totalorder %s801_s0, %s4865_s4  ;;  %p4874_p8 = scmp.lt.s32.totalorder %s4865_s4, %s4865_s4 }
 0x123   : > { %p4868_p2 = pnand %p4866_p0, %p5664_p7  ;;  %p4875_p9 = por %p4874_p8, %p4873_p6 }
 0x125   : > { %p4869_p4 = pneg %p4868_p2 }
 0x127   : > { %p4876_p10 = pnand %p4875_p9, %p4869_p4 }
 0x129   : > { %4879 = shalt.err (!%p4876_p10)
}
 0x12a   : > { %4383 = dma.hbm_to_vmem [thread:$0]  (!%p5648_p5), %s6756_s17, 32, %s801_s0, [#allocation33], %s6795_s25, %s6795_s25, %s6797_s24  }
 0x12b   : > { %s4880_s26 = scalar_lea.hbm %s6758_s19, 32 }
 0x12c   : > { %p4881_p11 = scmp.ne.s32.totalorder %s6758_s19, %s4880_s26  ;;  %p4887_p12 = scmp.lt.u32.totalorder %s4880_s26, %s6758_s19 }
 0x12e   : > { %p4883_p1 = pnand %p4881_p11, %p5664_p7 }
 0x130   : > { %p4884_p3 = pneg %p4883_p1 }
 0x132   : > { %p4889_p13 = pnand %p4887_p12, %p4884_p3 }
 0x134   : > { %4892 = shalt.err (!%p4889_p13)
}
 0x135   : > { %s4893_s0 = scalar_lea.vmem %s5852_s1, 32  ;;  %p4901_p6 = scmp.lt.s32.totalorder %s5852_s1, %s5852_s1 }
 0x136   : > { %p4894_p0 = scmp.ne.s32.totalorder %s5852_s1, %s4893_s0  ;;  %p4902_p8 = scmp.lt.s32.totalorder %s4893_s0, %s4893_s0 }
 0x138   : > { %p4896_p2 = pnand %p4894_p0, %p5664_p7  ;;  %p4903_p9 = por %p4902_p8, %p4901_p6 }
 0x13a   : > { %p4897_p4 = pneg %p4896_p2 }
 0x13c   : > { %p4904_p10 = pnand %p4903_p9, %p4897_p4 }
 0x13e   : > { %4907 = shalt.err (!%p4904_p10)
}
 0x13f   : > { %4389 = dma.hbm_to_vmem [thread:$0]  (!%p5648_p5), %s6758_s19, 32, %s5852_s1, [#allocation36], %s6795_s25, %s6795_s25, %s6797_s24  }
 0x140   : > { %s5442_s22 = smov [#allocation13]   ;;  %s5443_s3 = smov [#allocation16]  }
 0x141   : > { %s636_s2 = sshll.u32 %s5442_s22, 4  ;;  %s657_s26 = sshll.u32 %s5443_s3, 4  ;;  %s637_s2 = int_to_ptr.vmem [resolvable:$true] %s636_s2  ;;  %s5901_s26 = int_to_ptr.vmem [resolvable:$true] %s657_s26 }
 0x142   : > { %s6848_s7 = sld [smem:[#allocation72_spill]] }
 0x148   : > { %s4908_s20 = scalar_lea.hbm %s6848_s7, 16 }
 0x149   : > { %p4909_p11 = scmp.ne.s32.totalorder %s6848_s7, %s4908_s20  ;;  %p4915_p12 = scmp.lt.u32.totalorder %s4908_s20, %s6848_s7 }
 0x14b   : > { %p4911_p1 = pnand %p4909_p11, %p5664_p7 }
 0x14d   : > { %p4912_p3 = pneg %p4911_p1 }
 0x14f   : > { %p4917_p13 = pnand %p4915_p12, %p4912_p3 }
 0x151   : > { %4920 = shalt.err (!%p4917_p13)
}
 0x152   : > { %s4921_s30 = scalar_lea.vmem %s637_s2, 16  ;;  %s4928_s22 = scalar_lea.vmem %s637_s2, 32 }
 0x153   : > { %p4922_p0 = scmp.ne.s32.totalorder %s637_s2, %s4921_s30  ;;  %p4929_p6 = scmp.lt.s32.totalorder %s637_s2, %s637_s2 }
 0x154   : > { %p4930_p8 = scmp.lt.s32.totalorder %s4928_s22, %s4921_s30 }
 0x155   : > { %p4924_p2 = pnand %p4922_p0, %p5664_p7 }
 0x156   : > { %p4931_p9 = por %p4930_p8, %p4929_p6 }
 0x157   : > { %p4925_p4 = pneg %p4924_p2 }
 0x159   : > { %p4932_p10 = pnand %p4931_p9, %p4925_p4 }
 0x15b   : > { %4935 = shalt.err (!%p4932_p10)
}
 0x15c   : > { %4344 = dma.hbm_to_vmem [thread:$0]  (!%p5648_p5), %s6848_s7, 16, %s637_s2, [#allocation12]  }
 0x15d   : > { %s6849_s20 = sld [smem:[#allocation74_spill]] }
 0x163   : > { %s4936_s0 = scalar_lea.hbm %s6849_s20, 1024 }
 0x164   : > { %p4937_p11 = scmp.ne.s32.totalorder %s6849_s20, %s4936_s0  ;;  %p4943_p12 = scmp.lt.u32.totalorder %s4936_s0, %s6849_s20 }
 0x166   : > { %p4939_p1 = pnand %p4937_p11, %p5664_p7 }
 0x168   : > { %p4940_p3 = pneg %p4939_p1 }
 0x16a   : > { %p4945_p13 = pnand %p4943_p12, %p4940_p3 }
 0x16c   : > { %4948 = shalt.err (!%p4945_p13)
}
 0x16d   : > { %s4949_s2 = scalar_lea.vmem %s5901_s26, 1024  ;;  %p4957_p6 = scmp.lt.s32.totalorder %s5901_s26, %s5901_s26 }
 0x16e   : > { %p4950_p0 = scmp.ne.s32.totalorder %s5901_s26, %s4949_s2  ;;  %p4958_p8 = scmp.lt.s32.totalorder %s4949_s2, %s4949_s2 }
 0x170   : > { %p4952_p2 = pnand %p4950_p0, %p5664_p7  ;;  %p4959_p9 = por %p4958_p8, %p4957_p6 }
 0x172   : > { %p4953_p4 = pneg %p4952_p2 }
 0x174   : > { %p4960_p10 = pnand %p4959_p9, %p4953_p4 }
 0x176   : > { %4963 = shalt.err (!%p4960_p10)
}
 0x177   : > { %s6850_s9 = smov 8   ;;  %s6851_s3 = smov 128  }
 0x178   : > { %4350 = dma.hbm_to_vmem [thread:$0]  (!%p5648_p5), %s6849_s20, 1024, %s5901_s26, [#allocation15], %s6851_s3, %s6851_s3, %s6850_s9  }
 0x179   : > { %s5444_s0 = smov [#allocation19]   ;;  %s5445_s1 = smov [#allocation22]  }
 0x17a   : > { %s683_s4 = sshll.u32 %s5444_s0, 4  ;;  %s709_s30 = sshll.u32 %s5445_s1, 4  ;;  %s684_s4 = int_to_ptr.vmem [resolvable:$true] %s683_s4  ;;  %s5947_s30 = int_to_ptr.vmem [resolvable:$true] %s709_s30 }
 0x17b   : > { %s6852_s8 = sld [smem:[#allocation76_spill]] }
 0x181   : > { %s4964_s25 = scalar_lea.hbm %s6852_s8, 1024 }
 0x182   : > { %p4965_p11 = scmp.ne.s32.totalorder %s6852_s8, %s4964_s25  ;;  %p4971_p12 = scmp.lt.u32.totalorder %s4964_s25, %s6852_s8 }
 0x184   : > { %p4967_p1 = pnand %p4965_p11, %p5664_p7 }
 0x186   : > { %p4968_p3 = pneg %p4967_p1 }
 0x188   : > { %p4973_p13 = pnand %p4971_p12, %p4968_p3 }
 0x18a   : > { %4976 = shalt.err (!%p4973_p13)
}
 0x18b   : > { %s4977_s5 = scalar_lea.vmem %s684_s4, 1024  ;;  %p4985_p6 = scmp.lt.s32.totalorder %s684_s4, %s684_s4 }
 0x18c   : > { %p4978_p0 = scmp.ne.s32.totalorder %s684_s4, %s4977_s5  ;;  %p4986_p8 = scmp.lt.s32.totalorder %s4977_s5, %s4977_s5 }
 0x18e   : > { %p4980_p2 = pnand %p4978_p0, %p5664_p7  ;;  %p4987_p9 = por %p4986_p8, %p4985_p6 }
 0x190   : > { %p4981_p4 = pneg %p4980_p2 }
 0x192   : > { %p4988_p10 = pnand %p4987_p9, %p4981_p4 }
 0x194   : > { %4991 = shalt.err (!%p4988_p10)
}
 0x195   : > { %4356 = dma.hbm_to_vmem [thread:$0]  (!%p5648_p5), %s6852_s8, 1024, %s684_s4, [#allocation18], %s6851_s3, %s6851_s3, %s6850_s9  }
 0x196   : > { %s6853_s10 = sld [smem:[#allocation78_spill]] }
 0x19c   : > { %s4992_s1 = scalar_lea.hbm %s6853_s10, 1024 }
 0x19d   : > { %p4993_p11 = scmp.ne.s32.totalorder %s6853_s10, %s4992_s1  ;;  %p4999_p12 = scmp.lt.u32.totalorder %s4992_s1, %s6853_s10 }
 0x19f   : > { %p4995_p1 = pnand %p4993_p11, %p5664_p7 }
 0x1a1   : > { %p4996_p3 = pneg %p4995_p1 }
 0x1a3   : > { %p5001_p13 = pnand %p4999_p12, %p4996_p3 }
 0x1a5   : > { %5004 = shalt.err (!%p5001_p13)
}
 0x1a6   : > { %s5005_s4 = scalar_lea.vmem %s5947_s30, 1024  ;;  %p5013_p6 = scmp.lt.s32.totalorder %s5947_s30, %s5947_s30 }
 0x1a7   : > { %p5006_p0 = scmp.ne.s32.totalorder %s5947_s30, %s5005_s4  ;;  %p5014_p8 = scmp.lt.s32.totalorder %s5005_s4, %s5005_s4 }
 0x1a9   : > { %p5008_p2 = pnand %p5006_p0, %p5664_p7  ;;  %p5015_p9 = por %p5014_p8, %p5013_p6 }
 0x1ab   : > { %p5009_p4 = pneg %p5008_p2 }
 0x1ad   : > { %p5016_p10 = pnand %p5015_p9, %p5009_p4 }
 0x1af   : > { %5019 = shalt.err (!%p5016_p10)
}
 0x1b0   : > { %4362 = dma.hbm_to_vmem [thread:$0]  (!%p5648_p5), %s6853_s10, 1024, %s5947_s30, [#allocation21], %s6851_s3, %s6851_s3, %s6850_s9  }
 0x1b1   : > { %s5446_s25 = smov [#allocation25]   ;;  %s5447_s0 = smov [#allocation28]  }
 0x1b2   : > { %s735_s7 = sshll.u32 %s5446_s25, 4  ;;  %s761_s1 = sshll.u32 %s5447_s0, 4  ;;  %s736_s7 = int_to_ptr.vmem [resolvable:$true] %s735_s7  ;;  %s5996_s1 = int_to_ptr.vmem [resolvable:$true] %s761_s1 }
 0x1b3   : > { %s6854_s12 = sld [smem:[#allocation80_spill]] }
 0x1b9   : > { %s5020_s28 = scalar_lea.hbm %s6854_s12, 1024 }
 0x1ba   : > { %p5021_p11 = scmp.ne.s32.totalorder %s6854_s12, %s5020_s28  ;;  %p5027_p12 = scmp.lt.u32.totalorder %s5020_s28, %s6854_s12 }
 0x1bc   : > { %p5023_p1 = pnand %p5021_p11, %p5664_p7 }
 0x1be   : > { %p5024_p3 = pneg %p5023_p1 }
 0x1c0   : > { %p5029_p13 = pnand %p5027_p12, %p5024_p3 }
 0x1c2   : > { %5032 = shalt.err (!%p5029_p13)
}
 0x1c3   : > { %s5033_s24 = scalar_lea.vmem %s736_s7, 1024  ;;  %p5041_p6 = scmp.lt.s32.totalorder %s736_s7, %s736_s7 }
 0x1c4   : > { %p5034_p0 = scmp.ne.s32.totalorder %s736_s7, %s5033_s24  ;;  %p5042_p8 = scmp.lt.s32.totalorder %s5033_s24, %s5033_s24 }
 0x1c6   : > { %p5036_p2 = pnand %p5034_p0, %p5664_p7  ;;  %p5043_p9 = por %p5042_p8, %p5041_p6 }
 0x1c8   : > { %p5037_p4 = pneg %p5036_p2 }
 0x1ca   : > { %p5044_p10 = pnand %p5043_p9, %p5037_p4 }
 0x1cc   : > { %5047 = shalt.err (!%p5044_p10)
}
 0x1cd   : > { %4368 = dma.hbm_to_vmem [thread:$0]  (!%p5648_p5), %s6854_s12, 1024, %s736_s7, [#allocation24], %s6851_s3, %s6851_s3, %s6850_s9  }
 0x1ce   : > { %s6855_s14 = sld [smem:[#allocation82_spill]] }
 0x1d4   : > { %s5048_s28 = scalar_lea.hbm %s6855_s14, 32 }
 0x1d5   : > { %p5049_p11 = scmp.ne.s32.totalorder %s6855_s14, %s5048_s28  ;;  %p5055_p12 = scmp.lt.u32.totalorder %s5048_s28, %s6855_s14 }
 0x1d7   : > { %p5051_p1 = pnand %p5049_p11, %p5664_p7 }
 0x1d9   : > { %p5052_p3 = pneg %p5051_p1 }
 0x1db   : > { %p5057_p13 = pnand %p5055_p12, %p5052_p3 }
 0x1dd   : > { %5060 = shalt.err (!%p5057_p13)
}
 0x1de   : > { %s5061_s7 = scalar_lea.vmem %s5996_s1, 32  ;;  %p5069_p6 = scmp.lt.s32.totalorder %s5996_s1, %s5996_s1 }
 0x1df   : > { %p5062_p0 = scmp.ne.s32.totalorder %s5996_s1, %s5061_s7  ;;  %p5070_p8 = scmp.lt.s32.totalorder %s5061_s7, %s5061_s7 }
 0x1e1   : > { %p5064_p2 = pnand %p5062_p0, %p5664_p7  ;;  %p5071_p9 = por %p5070_p8, %p5069_p6 }
 0x1e3   : > { %p5065_p4 = pneg %p5064_p2 }
 0x1e5   : > { %p5072_p10 = pnand %p5071_p9, %p5065_p4 }
 0x1e7   : > { %5075 = shalt.err (!%p5072_p10)
}
 0x1e8   : > { %s6856_s24 = smov 1   ;;  %s6857_s25 = smov 16  }
 0x1e9   : > { %4374 = dma.hbm_to_vmem [thread:$0]  (!%p5648_p5), %s6855_s14, 32, %s5996_s1, [#allocation27], %s6857_s25, %s6857_s25, %s6856_s24  }
 0x1ea   : > { %s5448_s2 = smov [#allocation31]   ;;  %s5449_s26 = smov [#allocation34]  }
 0x1eb   : > { %s787_s28 = sshll.u32 %s5448_s2, 4  ;;  %s813_s4 = sshll.u32 %s5449_s26, 4  ;;  %s788_s28 = int_to_ptr.vmem [resolvable:$true] %s787_s28  ;;  %s6045_s4 = int_to_ptr.vmem [resolvable:$true] %s813_s4 }
 0x1ec   : > { %s5076_s7 = scalar_lea.hbm %s6755_s16, 1024 }
 0x1ed   : > { %p5077_p11 = scmp.ne.s32.totalorder %s6755_s16, %s5076_s7  ;;  %p5083_p12 = scmp.lt.u32.totalorder %s5076_s7, %s6755_s16 }
 0x1ef   : > { %p5079_p1 = pnand %p5077_p11, %p5664_p7 }
 0x1f1   : > { %p5080_p3 = pneg %p5079_p1 }
 0x1f3   : > { %p5085_p13 = pnand %p5083_p12, %p5080_p3 }
 0x1f5   : > { %5088 = shalt.err (!%p5085_p13)
}
 0x1f6   : > { %s5089_s22 = scalar_lea.vmem %s788_s28, 1024  ;;  %p5097_p6 = scmp.lt.s32.totalorder %s788_s28, %s788_s28 }
 0x1f7   : > { %p5090_p0 = scmp.ne.s32.totalorder %s788_s28, %s5089_s22  ;;  %p5098_p8 = scmp.lt.s32.totalorder %s5089_s22, %s5089_s22 }
 0x1f9   : > { %p5092_p2 = pnand %p5090_p0, %p5664_p7  ;;  %p5099_p9 = por %p5098_p8, %p5097_p6 }
 0x1fb   : > { %p5093_p4 = pneg %p5092_p2 }
 0x1fd   : > { %p5100_p10 = pnand %p5099_p9, %p5093_p4 }
 0x1ff   : > { %5103 = shalt.err (!%p5100_p10)
}
 0x200   : > { %4380 = dma.hbm_to_vmem [thread:$0]  (!%p5648_p5), %s6755_s16, 1024, %s788_s28, [#allocation30], %s6851_s3, %s6851_s3, %s6850_s9  }
 0x201   : > { %s5104_s5 = scalar_lea.hbm %s6757_s18, 2048 }
 0x202   : > { %p5105_p11 = scmp.ne.s32.totalorder %s6757_s18, %s5104_s5  ;;  %p5111_p12 = scmp.lt.u32.totalorder %s5104_s5, %s6757_s18 }
 0x204   : > { %p5107_p1 = pnand %p5105_p11, %p5664_p7 }
 0x206   : > { %p5108_p3 = pneg %p5107_p1 }
 0x208   : > { %p5113_p13 = pnand %p5111_p12, %p5108_p3 }
 0x20a   : > { %5116 = shalt.err (!%p5113_p13)
}
 0x20b   : > { %s5117_s28 = scalar_lea.vmem %s6045_s4, 2048  ;;  %p5125_p6 = scmp.lt.s32.totalorder %s6045_s4, %s6045_s4 }
 0x20c   : > { %p5118_p0 = scmp.ne.s32.totalorder %s6045_s4, %s5117_s28  ;;  %p5126_p8 = scmp.lt.s32.totalorder %s5117_s28, %s5117_s28 }
 0x20e   : > { %p5120_p2 = pnand %p5118_p0, %p5664_p7  ;;  %p5127_p9 = por %p5126_p8, %p5125_p6 }
 0x210   : > { %p5121_p4 = pneg %p5120_p2 }
 0x212   : > { %p5128_p10 = pnand %p5127_p9, %p5121_p4 }
 0x214   : > { %5131 = shalt.err (!%p5128_p10)
}
 0x215   : > { %4386 = dma.hbm_to_vmem [thread:$0]  (!%p5648_p5), %s6757_s18, 2048, %s6045_s4, [#allocation33], %s6851_s3, %s6851_s3, %s6850_s9  }
 0x216   : > { %s5450_s10 = smov [#allocation37]   ;;  %s5451_s26 = smov [#allocation38]  }
 0x217   : > { %s839_s2 = sshll.u32 %s5450_s10, 4  ;;  %s852_s5 = sshll.u32 %s5451_s26, 4  ;;  %s840_s2 = int_to_ptr.vmem [resolvable:$true] %s839_s2  ;;  %s6094_s5 = int_to_ptr.vmem [resolvable:$true] %s852_s5 }
 0x218   : > { %s6858_s0 = sld [smem:[#allocation84_spill]] }
 0x21e   : > { %s5132_s1 = scalar_lea.hbm %s6858_s0, 32 }
 0x21f   : > { %p5133_p11 = scmp.ne.s32.totalorder %s6858_s0, %s5132_s1  ;;  %p5139_p12 = scmp.lt.u32.totalorder %s5132_s1, %s6858_s0 }
 0x221   : > { %p5135_p1 = pnand %p5133_p11, %p5664_p7 }
 0x223   : > { %p5136_p3 = pneg %p5135_p1 }
 0x225   : > { %p5141_p13 = pnand %p5139_p12, %p5136_p3 }
 0x227   : > { %5144 = shalt.err (!%p5141_p13)
}
 0x228   : > { %s5145_s3 = scalar_lea.vmem %s840_s2, 32  ;;  %p5153_p6 = scmp.lt.s32.totalorder %s840_s2, %s840_s2 }
 0x229   : > { %p5146_p0 = scmp.ne.s32.totalorder %s840_s2, %s5145_s3  ;;  %p5154_p8 = scmp.lt.s32.totalorder %s5145_s3, %s5145_s3 }
 0x22b   : > { %p5148_p2 = pnand %p5146_p0, %p5664_p7  ;;  %p5155_p9 = por %p5154_p8, %p5153_p6 }
 0x22d   : > { %p5149_p4 = pneg %p5148_p2 }
 0x22f   : > { %p5156_p10 = pnand %p5155_p9, %p5149_p4 }
 0x231   : > { %5159 = shalt.err (!%p5156_p10)
}
 0x232   : > { %4392 = dma.hbm_to_vmem [thread:$0]  (!%p5648_p5), %s6858_s0, 32, %s840_s2, [#allocation36], %s6857_s25, %s6857_s25, %s6856_s24  }
 0x233   : > { %s6859_s26 = sld [smem:[#allocation85_spill]] }
 0x239   : > { %s6860_s7 = smov %s6859_s26  ;;  %s5160_s30 = scalar_lea.hbm %s6859_s26, 32 }
 0x23a   : > { %p5161_p11 = scmp.ne.s32.totalorder %s6860_s7, %s5160_s30  ;;  %p5167_p12 = scmp.lt.u32.totalorder %s5160_s30, %s6860_s7 }
 0x23c   : > { %p5163_p1 = pnand %p5161_p11, %p5664_p7 }
 0x23e   : > { %p5164_p3 = pneg %p5163_p1 }
 0x240   : > { %p5169_p13 = pnand %p5167_p12, %p5164_p3 }
 0x242   : > { %5172 = shalt.err (!%p5169_p13)
}
 0x243   : > { %s5173_s2 = scalar_lea.vmem %s6094_s5, 32  ;;  %p5181_p6 = scmp.lt.s32.totalorder %s6094_s5, %s6094_s5 }
 0x244   : > { %p5174_p0 = scmp.ne.s32.totalorder %s6094_s5, %s5173_s2  ;;  %p5182_p8 = scmp.lt.s32.totalorder %s5173_s2, %s5173_s2 }
 0x246   : > { %p5176_p2 = pnand %p5174_p0, %p5664_p7  ;;  %p5183_p9 = por %p5182_p8, %p5181_p6 }
 0x248   : > { %p5177_p4 = pneg %p5176_p2 }
 0x24a   : > { %p5184_p10 = pnand %p5183_p9, %p5177_p4 }
 0x24c   : > { %5187 = shalt.err (!%p5184_p10)
}
 0x24d   : > { %s6861_s4 = sld [smem:[#allocation65_spill]]  ;;  %s6862_s8 = sld [smem:[#allocation63_spill]] }
 0x24e   : > { %s6863_s6 = sld [smem:[#allocation64_spill]]  ;;  %s6864_s10 = sld [smem:[#allocation60_spill]] }
 0x24f   : > { %s6865_s26 = sld [smem:[#allocation59_spill]]  ;;  %s6866_s30 = sld [smem:[#allocation58_spill]] }
 0x250   : > { %s6867_s1 = sld [smem:[#allocation66_spill]]  ;;  %s6873_s0 = sld [smem:[#allocation68_spill]] }
 0x251   : > { %4395 = dma.hbm_to_vmem [thread:$0]  (!%p5648_p5), %s6860_s7, 32, %s6094_s5, [#allocation39], %s6857_s25, %s6857_s25, %s6856_s24  }
 0x253   : > { %s3738_s29 = sadd.s32 4294967294, %s6861_s4   ;;  %s65_s28 = sadd.s32 1, %s6862_s8 }
 0x254   : > { %p66_p7 = scmp.ge.s32.totalorder %s65_s28, 2  ;;  %s68_s22 = sadd.s32 1, %s6863_s6 }
 0x255   : > { %s75_s9 = sadd.s32 1, %s6864_s10  ;;  %p82_p11 = scmp.ne.s32.totalorder %s6864_s10, %s6865_s26 }
 0x256   : > { %s6926_s28 = smov (%p66_p7, %s65_s28), 0  ;;  %s6928_s22 = smov (!%p66_p7, %s68_s22), %s6863_s6 }
 0x257   : > { %p83_p1 = scmp.eq.s32.totalorder %s6861_s4, 0  ;;  %p88_p3 = scmp.ne.s32.totalorder %s6865_s26, %s6866_s30 }
 0x258   : > { %p70_p12 = scmp.ge.s32.totalorder %s6928_s22, 2  ;;  %p558_p13 = scmp.eq.s32.totalorder %s6867_s1, 3 }
 0x259   : > { %p6156_p0 = por %p83_p1, %p82_p11  ;;  %p6869_p5 = scmp.eq.s32.totalorder %s6867_s1, 0 }
 0x25a   : > { %s6930_s22 = smov (%p70_p12, %s6928_s22), 0  ;;  %p6168_p4 = por %p558_p13, %p82_p11 }
 0x25b   : > { %p6162_p2 = por %p6869_p5, %p88_p3  ;;  %p564_p6 = scmp.eq.s32.totalorder %s3738_s29, 3 }
 0x25c   : > { %s6871_s5 = scalar_select %p6168_p4, 1, 0 }
 0x25d   : > { %s6870_s25 = scalar_select %p6162_p2, 1, 0 }
 0x25e   : > { %s72_s2 = ssub.s32 %s6863_s6, %s6930_s22  ;;  %p4430_p8 = scmp.lt.s32.totalorder %s6861_s4, 4 }
 0x25f   : > { %p73_p9 = scmp.eq.s32.totalorder %s72_s2, 0  ;;  %p6175_p10 = por %p564_p6, %p88_p3 }
 0x260   : > { %s6180_s11 = sand.u32 1, %s6864_s10   ;;  %s3762_s8 = sshll.u32 %s6863_s6, 7 }
 0x261   : > { %s6872_s3 = scalar_select %p6175_p10, 1, 0 }
 0x262   : > { %s6932_s10 = smov (!%p73_p9, %s6864_s10), %s75_s9  ;;  %s3761_s26 = sshll.u32 %s6180_s11, 3 }
 0x263   : > { %s6190_s7 = scalar_lea.hbm %s6873_s0, %s3762_s8  ;;  %s870_s29 = scalar_lea.vmem [#allocation5], %s3761_s26 }
 0x264   : > { %s877_s2 = sshll.u32 %s870_s29, 4  ;;  %p6194_p7 = pnand %p4430_p8, %p6156_p0  ;;  %s6198_s2 = int_to_ptr.vmem [resolvable:$true] %s877_s2 }
 0x265   : > { %s867_s13 = scalar_lea.sflag [#allocation6], %s6180_s11  ;;  %s5188_s30 = scalar_lea.hbm %s6190_s7, 128 }
 0x266   : > { %p5189_p11 = scmp.ne.s32.totalorder %s6190_s7, %s5188_s30  ;;  %p5190_p1 = pneg %p6194_p7 }
 0x267   : > { %s5193_s26 = scalar_lea.hbm %s6873_s0, 256  ;;  %p5194_p13 = scmp.lt.u32.totalorder %s6190_s7, %s6873_s0 }
 0x268   : > { %p5191_p3 = pnand %p5190_p1, %p5189_p11  ;;  %p5195_p0 = scmp.lt.u32.totalorder %s5193_s26, %s5188_s30 }
 0x269   : > { %p5197_p6 = scmp.lt.u32.totalorder %s5188_s30, %s6190_s7 }
 0x26a   : > { %p5192_p12 = pneg %p5191_p3  ;;  %p5196_p5 = por %p5195_p0, %p5194_p13 }
 0x26c   : > { %p5198_p8 = por %p5197_p6, %p5196_p5 }
 0x26e   : > { %p5199_p9 = pnand %p5198_p8, %p5192_p12 }
 0x270   : > { %5202 = shalt.err (!%p5199_p9)
}
 0x271   : > { %s5203_s9 = scalar_lea.vmem %s6198_s2, 128  ;;  %s5452_s8 = smov [#allocation5]  }
 0x272   : > { %p5204_p11 = scmp.ne.s32.totalorder %s6198_s2, %s5203_s9  ;;  %s5208_s24 = sshll.u32 %s5452_s8, 4  ;;  %s5209_s24 = int_to_ptr.vmem [resolvable:$false] %s5208_s24 }
 0x273   : > { %s5210_s1 = scalar_lea.vmem %s5209_s24, 256  ;;  %p5211_p4 = scmp.lt.s32.totalorder %s6198_s2, %s5209_s24 }
 0x274   : > { %p5206_p3 = pnand %p5204_p11, %p5190_p1  ;;  %p5212_p13 = scmp.lt.s32.totalorder %s5210_s1, %s5203_s9 }
 0x276   : > { %p5207_p10 = pneg %p5206_p3  ;;  %p5213_p0 = por %p5212_p13, %p5211_p4 }
 0x278   : > { %p5214_p5 = pnand %p5213_p0, %p5207_p10 }
 0x27a   : > { %5217 = shalt.err (!%p5214_p5)
}
 0x27b   : > { %4399 = dma.hbm_to_vmem [thread:$0]  (!%p6194_p7), %s6190_s7, 128, %s6198_s2, %s867_s13  }
 0x27c   : > { %s3763_s30 = sshll.u32 %s6863_s6, 4  ;;  %s6875_s8 = sld [smem:[#allocation69_spill]] }
 0x27d   : > { %s887_s9 = scalar_lea.vmem [#allocation8], %s6180_s11  ;;  %s6876_s1 = sand.u32 1, %s6861_s4  }
 0x27e   : > { %s894_s24 = sshll.u32 %s887_s9, 4  ;;  %s885_s14 = scalar_lea.sflag [#allocation9], %s6876_s1  ;;  %s895_s24 = int_to_ptr.vmem [resolvable:$true] %s894_s24 }
 0x282   : > { %s6231_s0 = scalar_lea.hbm %s6875_s8, %s3763_s30  ;;  %s5223_s6 = scalar_lea.hbm %s6875_s8, 32 }
 0x283   : > { %s5218_s15 = scalar_lea.hbm %s6231_s0, 16  ;;  %p5224_p6 = scmp.lt.u32.totalorder %s6231_s0, %s6875_s8 }
 0x284   : > { %p5219_p4 = scmp.ne.s32.totalorder %s6231_s0, %s5218_s15  ;;  %p5225_p8 = scmp.lt.u32.totalorder %s5223_s6, %s5218_s15 }
 0x285   : > { %p5227_p11 = scmp.lt.u32.totalorder %s5218_s15, %s6231_s0 }
 0x286   : > { %p5221_p10 = pnand %p5219_p4, %p5190_p1  ;;  %p5226_p9 = por %p5225_p8, %p5224_p6 }
 0x288   : > { %p5222_p12 = pneg %p5221_p10  ;;  %p5228_p3 = por %p5227_p11, %p5226_p9 }
 0x28a   : > { %p5229_p13 = pnand %p5228_p3, %p5222_p12 }
 0x28c   : > { %5232 = shalt.err (!%p5229_p13)
}
 0x28d   : > { %s5233_s4 = scalar_lea.vmem %s895_s24, 16  ;;  %s5453_s11 = smov [#allocation8]  }
 0x28e   : > { %p5234_p0 = scmp.ne.s32.totalorder %s895_s24, %s5233_s4  ;;  %s5238_s26 = sshll.u32 %s5453_s11, 4  ;;  %s5239_s26 = int_to_ptr.vmem [resolvable:$false] %s5238_s26 }
 0x28f   : > { %s5240_s29 = scalar_lea.vmem %s5239_s26, 32  ;;  %p5241_p10 = scmp.lt.s32.totalorder %s895_s24, %s5239_s26 }
 0x290   : > { %p5236_p5 = pnand %p5234_p0, %p5190_p1  ;;  %p5242_p2 = scmp.lt.s32.totalorder %s5240_s29, %s5233_s4 }
 0x292   : > { %p5237_p4 = pneg %p5236_p5  ;;  %p5243_p6 = por %p5242_p2, %p5241_p10 }
 0x294   : > { %p5244_p8 = pnand %p5243_p6, %p5237_p4 }
 0x296   : > { %5247 = shalt.err (!%p5244_p8)
}
 0x297   : > { %4402 = dma.hbm_to_vmem [thread:$0]  (!%p6194_p7), %s6231_s0, 16, %s895_s24, %s885_s14  }
 0x298   : > { %s6877_s15 = sld [smem:[#allocation67_spill]] }
 0x29e   : > { %p6878_p12 = scmp.ne.s32.totalorder %s6877_s15, 0 }
 0x29f   : > { %s6879_s9 = sld [smem:[#allocation59_spill]] (!%p6878_p12)  ;;  %p6880_p2 = scmp.ne.s32.totalorder (!%p6878_p12), %s6870_s25, 0 }
 0x2a0   : > { %903 = sbr.rel (%p6878_p12) target bundleno = 10806 (0x2a36), region = 108 }
 0x2a5   : > { %s6258_s1 = sand.u32 (!%p6878_p12), 1, %s6879_s9  }
 0x2a6   : > { %s3765_s13 = sshll.u32 (!%p6878_p12), %s6258_s1, 3  ;;  %s906_s7 = scalar_lea.sflag (!%p6878_p12), [#allocation6], %s6258_s1 }
 0x2a7   : > { %s6264_s6 = scalar_lea.vmem [#allocation5], %s3765_s13 }
 0x2a8   : > { %5337 = dma.done.wait (%p6880_p2), %s906_s7, 128  }
 0x2a9   : > { %5339 = vsyncadd (%p6880_p2), %s906_s7, 4294967168  ;;  %s6881_s12 = sld [smem:[#allocation66_spill]]  ;;  %s917_s24 = scalar_lea.vmem [#allocation8], %s6258_s1 }
 0x2af   : > { %s914_s14 = sand.u32 1, %s6881_s12  }
 0x2b0   : > { %s915_s0 = scalar_lea.sflag [#allocation9], %s914_s14 }
 0x2b1   : > { %5341 = dma.done.wait (%p6880_p2), %s915_s0, 16  }
 0x2b2   : > { %5343 = vsyncadd (%p6880_p2), %s915_s0, 4294967280  ;;  %p6882_p7 = scmp.eq.s32.totalorder %s6881_s12, 0 }
 0x2b4   : > { %5345 = dma.done.wait (%p6882_p7), [#allocation9], 256   ;;  %p6883_p1 = pmov %p6882_p7 }
 0x2b6   : > { %5347 = vsyncadd (%p6883_p1), [#allocation9], 4294967040  ;;  %p6884_p9 = pmov %p6883_p1 }
 0x2b7   : > { %p6885_p11 = pmov %p6883_p1 }
 0x2b8   : > { %5349 = dma.done.wait (%p6884_p9), [#allocation12], 528  }
 0x2b9   : > { %5351 = vsyncadd (%p6885_p11), [#allocation12], 4294966768  ;;  %p6886_p3 = pmov %p6883_p1 }
 0x2ba   : > { %p6887_p13 = pmov %p6883_p1 }
 0x2bb   : > { %5353 = dma.done.wait (%p6886_p3), [#allocation15], 1040  }
 0x2bc   : > { %5355 = vsyncadd (%p6887_p13), [#allocation15], 4294966256  ;;  %p6888_p0 = pmov %p6883_p1 }
 0x2be   : > { %5357 = dma.done.wait (%p6888_p0), [#allocation18], 1056   ;;  %p6889_p5 = pmov %p6888_p0 }
 0x2bf   : > { %p6890_p4 = pmov %p6888_p0 }
 0x2c0   : > { %5359 = vsyncadd (%p6889_p5), [#allocation18], 4294966240 }
 0x2c1   : > { %5361 = dma.done.wait (%p6890_p4), [#allocation21], 1056   ;;  %p6891_p10 = pmov %p6888_p0 }
 0x2c2   : > { %p6892_p6 = pmov %p6888_p0 }
 0x2c3   : > { %5363 = vsyncadd (%p6891_p10), [#allocation21], 4294966240 }
 0x2c4   : > { %5365 = dma.done.wait (%p6892_p6), [#allocation24], 1056   ;;  %p6893_p8 = pmov %p6888_p0 }
 0x2c5   : > { %p6894_p12 = pmov %p6888_p0 }
 0x2c6   : > { %5367 = vsyncadd (%p6893_p8), [#allocation24], 4294966240 }
 0x2c7   : > { %5369 = dma.done.wait (%p6894_p12), [#allocation27], 64   ;;  %p6895_p2 = pmov %p6888_p0 }
 0x2c8   : > { %p6896_p7 = pmov %p6888_p0 }
 0x2c9   : > { %5371 = vsyncadd (%p6895_p2), [#allocation27], 4294967232 }
 0x2ca   : > { %5373 = dma.done.wait (%p6896_p7), [#allocation30], 1056   ;;  %p6897_p1 = pmov %p6888_p0 }
 0x2cb   : > { %p6898_p9 = pmov %p6888_p0 }
 0x2cc   : > { %5375 = vsyncadd (%p6897_p1), [#allocation30], 4294966240 }
 0x2cd   : > { %5377 = dma.done.wait (%p6898_p9), [#allocation33], 2080   ;;  %p6899_p11 = pmov %p6888_p0 }
 0x2ce   : > { %p6900_p3 = pmov %p6888_p0 }
 0x2cf   : > { %5379 = vsyncadd (%p6899_p11), [#allocation33], 4294965216 }
 0x2d0   : > { %5381 = dma.done.wait (%p6900_p3), [#allocation36], 64   ;;  %p6901_p13 = pmov %p6888_p0 }
 0x2d2   : > { %5383 = vsyncadd (%p6901_p13), [#allocation36], 4294967232 }
 0x2d3   : > { %5385 = dma.done.wait (%p6888_p0), [#allocation39], 32   ;;  %p6902_p5 = pmov %p6888_p0 }
 0x2d4   : > { %s3787_s25 = sshll.u32 %s6258_s1, 5  ;;  %s6323_s2 = scalar_lea.vmem [#allocation40], %s3765_s13 }
 0x2d5   : > { %5387 = vsyncadd (%p6902_p5), [#allocation39], 4294967264  ;;  %s6325_s30 = scalar_lea.vmem [#allocation41], %s3787_s25  ;;  %s6903_s4 = sld [smem:[#allocation61_spill]] }
 0x2db   : > { %p3788_p4 = scmp.ne.s32.totalorder %s6903_s4, 0 }
 0x2dc   : > { %v1075_v0 = vld [vmem:[#allocation10] sm:$0xff] (!%p3788_p4)  ;;  %v1076_v1 = vld [vmem:[#allocation10 + $0x8] sm:$0xff] (!%p3788_p4)  ;;  %v1160_v2 = vld [vmem:[#allocation11] sm:$0xff] (!%p3788_p4)  ;;  %v5454_v3 = vmov (!%p3788_p4), 0.0|0.0   ;;  %vm5455_vm0 = vmmov (!%p3788_p4), 0   ;;  %v5456_v8 = vmov (!%p3788_p4), 0.0   ;;  %v1165_v20 = vlaneseq (!%p3788_p4) }
 0x2dd   : > { %1073 = sbr.rel (%p3788_p4) target bundleno = 6289 (0x1891), region = 200  ;;  %4154 = vmatprep.subr.bf16.mxu0 (!%p3788_p4), %v5454_v3  ;;  %4157 = vmatprep.subr.bf16.mxu1 (!%p3788_p4), %v5454_v3  ;;  %v4155_v4 = vpack.c.bf16 (!%p3788_p4), %v1076_v1, %v1075_v0  ;;  %v1161_v5 = vld [vmem:[#allocation11 + $0x8] sm:$0xff] (!%p3788_p4)  ;;  %v1162_v6 = vld [vmem:[#allocation11 + $0x10] sm:$0xff] (!%p3788_p4)  ;;  %v1163_v9 = vld [vmem:[#allocation11 + $0x18] sm:$0xff] (!%p3788_p4)  ;;  %vm1084_vm1 = vcmask (!%p3788_p4), 130048   ;;  %vm1158_vm2 = vcmask (!%p3788_p4), 785408  }
 0x2de   : > { %v6330_v7 = vpack.c.bf16 (!%p3788_p4), %v1161_v5, %v1160_v2  ;;  %3949 = vmatprep.mubr.msk.f32.mxu0 (!%p3788_p4), %vm5455_vm0, %v5456_v8  ;;  %3960 = vmatprep.mubr.msk.f32.mxu1 (!%p3788_p4), %vm5455_vm0, %v5456_v8  ;;  %v1074_v10 = vld [vmem:[%s6264_s6] sm:$0xff] (!%p3788_p4)  ;;  %v6338_v11 = vpack.c.bf16 (!%p3788_p4), %v1163_v9, %v1162_v6  ;;  %s5457_s11 = smov (!%p3788_p4), 64   ;;  %v1166_v21 = vand.u32 (!%p3788_p4), 127, %v1165_v20  ;;  %s5458_s26 = smov (!%p3788_p4), 96   ;;  %vm1287_vm4 = vcmask (!%p3788_p4), 122880  }
 0x2df   : > { %4156 = vmatpush3.bf16.msra.mxu0 (!%p3788_p4), %v4155_v4  ;;  %v3789_v12 = vld [vmem:[#allocation13] ss:$0 sm:$0xff] (!%p3788_p4)  ;;  %v6357_v16 = vld [vmem:[#allocation14] sm:$0x1] (!%p3788_p4)  ;;  %vm1289_vm5 = vcmask (!%p3788_p4), 254080   ;;  %vm1183_vm6 = vcmask (!%p3788_p4), 261120  }
 0x2e0   : > { %4159 = vmatpush3.bf16.msra.mxu1 (!%p3788_p4), %v6330_v7  ;;  %4163 = vmatprep.subr.bf16.mxu0 (!%p3788_p4), %v5454_v3  ;;  %v1171_v22 = vand.u32 (!%p3788_p4), 31, %v1166_v21 }
 0x2e1   : > { %4160 = vmatprep.subr.bf16.mxu1 (!%p3788_p4), %v5454_v3 }
 0x2e2   : > { %3950 = vmatmul.mubr.msk.f32.vlgmr.msra.gmra.mrb[0].mxu0 (!%p3788_p4), %vm1084_vm1, %v1074_v10  ;;  %vm6361_vm3 = vcmp.lt.s32.totalorder (!%p3788_p4), %v1171_v22, 16 }
 0x2e3   : > { %4165 = vmatpush3.bf16.msra.mxu0 (!%p3788_p4), %v6330_v7  ;;  %3971 = vmatprep.mubr.msk.f32.mxu0 (!%p3788_p4), %vm5455_vm0, %v5456_v8 }
 0x2e4   : > { %4162 = vmatpush3.bf16.msra.mxu1 %v6338_v11  ;;  %4166 = vmatprep.subr.bf16.mxu0 %v5454_v3 }
 0x2e5   : > { %4169 = vmatprep.subr.bf16.mxu1 %v5454_v3 }
 0x2e7   : > { %3961 = vmatmul.mubr.f32.vlgmr.msra.gmra.mrb[0].mxu1 %v5456_v8  ;;  %4168 = vmatpush3.bf16.msra.mxu0 %v6338_v11 }
 0x2e8   : > { %4171 = vmatpush3.bf16.msra.mxu1 %v6330_v7  ;;  %3982 = vmatprep.mubr.msk.f32.mxu1 %vm5455_vm0, %v5456_v8 }
 0x2e9   : > { %4172 = vmatprep.subr.bf16.mxu1 %v5454_v3  ;;  %4175 = vmatprep.subr.bf16.mxu0 %v5454_v3 }
 0x2ec   : > { %4174 = vmatpush3.bf16.msra.mxu1 %v6338_v11 }
 0x2ed   : > { %4181 = vmatprep.subr.bf16.mxu1 %v5454_v3 }
 0x3b5   : > { %v1154_v13 = vpop.f32.mrb[0].mxu0 }
 0x3b6   : > { %v1155_v14 = vadd.f32 %v3789_v12, %v1154_v13  ;;  %v3951_v15 = vpop.f32.mrb[1].mxu0 }
 0x3b8   : > { %1159 = vst.msk [vmem:[#allocation3] sm:$0xff] %vm1158_vm2, %v1155_v14 }
 0x3ba   : > { %v1253_v17 = vpop.f32.mrb[0].mxu1 }
 0x3bb   : > { %v1254_v18 = vadd.f32 %v1253_v17, %v6357_v16  ;;  %v3962_v19 = vpop.f32.mrb[1].mxu1 }
 0x3bd   : > { %1265 = vrot.lane.b32.xlu0 %v1254_v18, %s5457_s11 }
 0x3bf   : > { %v1180_v24 = vld [vmem:[#allocation3] sm:$0x1]  ;;  %v1181_v25 = vld [vmem:[#allocation3 + $0x7] sm:$0x1]  ;;  %v1291_v46 = vld [vmem:[#allocation3 + $0x1] sm:$0x1] }
 0x3c0   : > { %v1182_v26 = vsel %vm6361_vm3, %v1180_v24, %v1181_v25  ;;  %v1292_v47 = vld [vmem:[#allocation3 + $0x6] sm:$0x1]  ;;  %v1398_v5 = vld [vmem:[#allocation3 + $0x2] sm:$0x1]  ;;  %v1399_v6 = vld [vmem:[#allocation3 + $0x5] sm:$0x1] }
 0x3c1   : > { %v1257_v27 = vadd.f32 %v1254_v18, %v1182_v26  ;;  %v1293_v48 = vsel %vm6361_vm3, %v1291_v46, %v1292_v47  ;;  %v1400_v9 = vsel %vm6361_vm3, %v1398_v5, %v1399_v6 }
 0x3c3   : > { %v3791_v28 = vmul.f32 -1.442695, %v1257_v27 }
 0x3c5   : > { %4556 = vpow2.f32 %v3791_v28 }
 0x3cf   : > { %v4557_v29 = vpop.eup %4556 }
 0x3d0   : > { %v1261_v30 = vadd.f32 1.0, %v4557_v29 }
 0x3d2   : > { %4558 = vrcp.f32 %v1261_v30 }
 0x3dc   : > { %v4559_v31 = vpop.eup %4558 }
 0x3dd   : > { %v1275_v37 = vsub.f32 1.0, %v4559_v31  ;;  %v1281_v39 = vmul.f32 0.0, %v4559_v31 }
 0x42f   : > { %v1266_v32 = vpop.permute.xlu0 %1265 }
 0x430   : > { %v1268_v33 = vmul.f32 %v4559_v31, %v1266_v32  ;;  %v1505_v32 = vld [vmem:[#allocation3 + $0x3] sm:$0x1] }
 0x432   : > { %1270 = vrot.lane.b32.xlu0 %v1268_v33, %s5457_s11  ;;  %v1506_v33 = vld [vmem:[#allocation3 + $0x4] sm:$0x1] }
 0x4a4   : > { %v1271_v34 = vpop.permute.xlu0 %1270 }
 0x4a5   : > { %v1273_v35 = vadd.f32 %v1271_v34, %v1182_v26  ;;  %v1507_v34 = vsel %vm6361_vm3, %v1505_v32, %v1506_v33 }
 0x4a7   : > { %4560 = vtanh.f32 %v1273_v35 }
 0x4b1   : > { %v4561_v36 = vpop.eup %4560 }
 0x4b2   : > { %1277 = vrot.lane.b32.xlu1 %v4561_v36, %s5458_s26 }
 0x524   : > { %v1278_v38 = vpop.permute.xlu1 %1277 }
 0x525   : > { %v1280_v40 = vmul.f32 %v1278_v38, %v1275_v37 }
 0x527   : > { %v1282_v41 = vadd.f32 %v1281_v39, %v1280_v40 }
 0x529   : > { %1284 = vrot.lane.b32.xlu1 %v1282_v41, %s5458_s26 }
 0x59b   : > { %v1285_v42 = vpop.permute.xlu1 %1284 }
 0x59c   : > { %1288 = vst.msk [vmem:[#allocation2] sm:$0x1] %vm1287_vm4, %v1285_v42  ;;  %3972 = vmatmul.mubr.msk.f32.vlgmr.msra.gmra.mrb[2].mxu0 %vm1183_vm6, %v1285_v42 }
 0x59d   : > { %1290 = vst.msk [vmem:[#allocation2 + $0x7] sm:$0x1] %vm1289_vm5, %v1285_v42  ;;  %4177 = vmatpush3.bf16.msra.mxu0 %v6330_v7  ;;  %3993 = vmatprep.mubr.msk.f32.mxu0 %vm5455_vm0, %v5456_v8 }
 0x59e   : > { %4178 = vmatprep.subr.bf16.mxu0 %v5454_v3 }
 0x5a1   : > { %4180 = vmatpush3.bf16.msra.mxu0 %v6338_v11 }
 0x5a2   : > { %4187 = vmatprep.subr.bf16.mxu0 %v5454_v3 }
 0x66f   : > { %v1362_v43 = vpop.f32.mrb[2].mxu0 }
 0x670   : > { %v1363_v44 = vadd.f32 %v1362_v43, %v6357_v16  ;;  %v3973_v45 = vpop.f32.mrb[3].mxu0 }
 0x672   : > { %1374 = vrot.lane.b32.xlu0 %v1363_v44, %s5457_s11  ;;  %v1366_v49 = vadd.f32 %v1363_v44, %v1293_v48 }
 0x674   : > { %v3793_v50 = vmul.f32 -1.442695, %v1366_v49 }
 0x676   : > { %4562 = vpow2.f32 %v3793_v50 }
 0x680   : > { %v4563_v51 = vpop.eup %4562 }
 0x681   : > { %v1370_v52 = vadd.f32 1.0, %v4563_v51 }
 0x683   : > { %4564 = vrcp.f32 %v1370_v52 }
 0x68d   : > { %v4565_v53 = vpop.eup %4564 }
 0x68e   : > { %v1384_v59 = vsub.f32 1.0, %v4565_v53  ;;  %v1390_v61 = vmul.f32 %v4565_v53, %v1282_v41 }
 0x6e4   : > { %v1375_v54 = vpop.permute.xlu0 %1374 }
 0x6e5   : > { %v1377_v55 = vmul.f32 %v4565_v53, %v1375_v54  ;;  %v1612_v54 = vld [vmem:[#allocation3 + $0x4] sm:$0x1] }
 0x6e7   : > { %1379 = vrot.lane.b32.xlu1 %v1377_v55, %s5457_s11  ;;  %v1613_v55 = vld [vmem:[#allocation3 + $0x3] sm:$0x1] }
 0x759   : > { %v1380_v56 = vpop.permute.xlu1 %1379 }
 0x75a   : > { %v1382_v57 = vadd.f32 %v1380_v56, %v1293_v48  ;;  %v1614_v56 = vsel %vm6361_vm3, %v1612_v54, %v1613_v55 }
 0x75c   : > { %4566 = vtanh.f32 %v1382_v57 }
 0x766   : > { %v4567_v58 = vpop.eup %4566 }
 0x767   : > { %1386 = vrot.lane.b32.xlu0 %v4567_v58, %s5458_s26 }
 0x7d9   : > { %v1387_v60 = vpop.permute.xlu0 %1386 }
 0x7da   : > { %v1389_v62 = vmul.f32 %v1387_v60, %v1384_v59 }
 0x7dc   : > { %v1391_v63 = vadd.f32 %v1390_v61, %v1389_v62 }
 0x7de   : > { %1393 = vrot.lane.b32.xlu1 %v1391_v63, %s5458_s26 }
 0x850   : > { %v1394_v0 = vpop.permute.xlu1 %1393 }
 0x851   : > { %1396 = vst.msk [vmem:[#allocation2 + $0x1] sm:$0x1] %vm1287_vm4, %v1394_v0  ;;  %3983 = vmatmul.mubr.msk.f32.vlgmr.msra.gmra.mrb[2].mxu1 %vm1183_vm6, %v1394_v0 }
 0x852   : > { %1397 = vst.msk [vmem:[#allocation2 + $0x6] sm:$0x1] %vm1289_vm5, %v1394_v0  ;;  %4183 = vmatpush3.bf16.msra.mxu1 %v6330_v7  ;;  %4004 = vmatprep.mubr.msk.f32.mxu1 %vm5455_vm0, %v5456_v8 }
 0x853   : > { %4184 = vmatprep.subr.bf16.mxu1 %v5454_v3 }
 0x856   : > { %4186 = vmatpush3.bf16.msra.mxu1 %v6338_v11 }
 0x857   : > { %4193 = vmatprep.subr.bf16.mxu1 %v5454_v3 }
 0x924   : > { %v1469_v1 = vpop.f32.mrb[2].mxu1 }
 0x925   : > { %v1470_v2 = vadd.f32 %v1469_v1, %v6357_v16  ;;  %v3984_v4 = vpop.f32.mrb[3].mxu1 }
 0x927   : > { %1481 = vrot.lane.b32.xlu0 %v1470_v2, %s5457_s11  ;;  %v1473_v10 = vadd.f32 %v1470_v2, %v1400_v9 }
 0x929   : > { %v3795_v12 = vmul.f32 -1.442695, %v1473_v10 }
 0x92b   : > { %4568 = vpow2.f32 %v3795_v12 }
 0x935   : > { %v4569_v13 = vpop.eup %4568 }
 0x936   : > { %v1477_v14 = vadd.f32 1.0, %v4569_v13 }
 0x938   : > { %4570 = vrcp.f32 %v1477_v14 }
 0x942   : > { %v4571_v15 = vpop.eup %4570 }
 0x943   : > { %v1491_v22 = vsub.f32 1.0, %v4571_v15  ;;  %v1497_v25 = vmul.f32 %v4571_v15, %v1391_v63 }
 0x999   : > { %v1482_v17 = vpop.permute.xlu0 %1481 }
 0x99a   : > { %v1484_v18 = vmul.f32 %v4571_v15, %v1482_v17  ;;  %v1719_v17 = vld [vmem:[#allocation3 + $0x5] sm:$0x1] }
 0x99c   : > { %1486 = vrot.lane.b32.xlu1 %v1484_v18, %s5457_s11  ;;  %v1720_v18 = vld [vmem:[#allocation3 + $0x2] sm:$0x1] }
 0xa0e   : > { %v1487_v19 = vpop.permute.xlu1 %1486 }
 0xa0f   : > { %v1489_v20 = vadd.f32 %v1487_v19, %v1400_v9  ;;  %v1721_v19 = vsel %vm6361_vm3, %v1719_v17, %v1720_v18 }
 0xa11   : > { %4572 = vtanh.f32 %v1489_v20 }
 0xa1b   : > { %v4573_v21 = vpop.eup %4572 }
 0xa1c   : > { %1493 = vrot.lane.b32.xlu0 %v4573_v21, %s5458_s26 }
 0xa8e   : > { %v1494_v24 = vpop.permute.xlu0 %1493 }
 0xa8f   : > { %v1496_v26 = vmul.f32 %v1494_v24, %v1491_v22 }
 0xa91   : > { %v1498_v27 = vadd.f32 %v1497_v25, %v1496_v26 }
 0xa93   : > { %1500 = vrot.lane.b32.xlu1 %v1498_v27, %s5458_s26 }
 0xb05   : > { %v1501_v28 = vpop.permute.xlu1 %1500 }
 0xb06   : > { %1503 = vst.msk [vmem:[#allocation2 + $0x2] sm:$0x1] %vm1287_vm4, %v1501_v28  ;;  %3994 = vmatmul.mubr.msk.f32.vlgmr.msra.gmra.mrb[4].mxu0 %vm1183_vm6, %v1501_v28 }
 0xb07   : > { %1504 = vst.msk [vmem:[#allocation2 + $0x5] sm:$0x1] %vm1289_vm5, %v1501_v28  ;;  %4189 = vmatpush3.bf16.msra.mxu0 %v6330_v7  ;;  %4015 = vmatprep.mubr.msk.f32.mxu0 %vm5455_vm0, %v5456_v8 }
 0xb08   : > { %4190 = vmatprep.subr.bf16.mxu0 %v5454_v3 }
 0xb0b   : > { %4192 = vmatpush3.bf16.msra.mxu0 %v6338_v11 }
 0xb0c   : > { %4199 = vmatprep.subr.bf16.mxu0 %v5454_v3 }
 0xbd9   : > { %v1576_v29 = vpop.f32.mrb[4].mxu0 }
 0xbda   : > { %v1577_v30 = vadd.f32 %v1576_v29, %v6357_v16  ;;  %v3995_v31 = vpop.f32.mrb[5].mxu0 }
 0xbdc   : > { %1588 = vrot.lane.b32.xlu0 %v1577_v30, %s5457_s11  ;;  %v1580_v35 = vadd.f32 %v1577_v30, %v1507_v34 }
 0xbde   : > { %v3797_v36 = vmul.f32 -1.442695, %v1580_v35 }
 0xbe0   : > { %4574 = vpow2.f32 %v3797_v36  ;;  %v1826_v36 = vld [vmem:[#allocation3 + $0x6] sm:$0x1] }
 0xbea   : > { %v4575_v37 = vpop.eup %4574 }
 0xbeb   : > { %v1584_v38 = vadd.f32 1.0, %v4575_v37  ;;  %v1827_v37 = vld [vmem:[#allocation3 + $0x1] sm:$0x1] }
 0xbed   : > { %4576 = vrcp.f32 %v1584_v38  ;;  %v1828_v38 = vsel %vm6361_vm3, %v1826_v36, %v1827_v37 }
 0xbf7   : > { %v4577_v39 = vpop.eup %4576 }
 0xbf8   : > { %v1598_v45 = vsub.f32 1.0, %v4577_v39  ;;  %v1604_v47 = vmul.f32 %v4577_v39, %v1498_v27 }
 0xc4e   : > { %v1589_v40 = vpop.permute.xlu0 %1588 }
 0xc4f   : > { %v1591_v41 = vmul.f32 %v4577_v39, %v1589_v40 }
 0xc51   : > { %1593 = vrot.lane.b32.xlu1 %v1591_v41, %s5457_s11 }
 0xcc3   : > { %v1594_v42 = vpop.permute.xlu1 %1593 }
 0xcc4   : > { %v1596_v43 = vadd.f32 %v1594_v42, %v1507_v34 }
 0xcc6   : > { %4578 = vtanh.f32 %v1596_v43 }
 0xcd0   : > { %v4579_v44 = vpop.eup %4578 }
 0xcd1   : > { %1600 = vrot.lane.b32.xlu0 %v4579_v44, %s5458_s26 }
 0xd43   : > { %v1601_v46 = vpop.permute.xlu0 %1600 }
 0xd44   : > { %v1603_v48 = vmul.f32 %v1601_v46, %v1598_v45 }
 0xd46   : > { %v1605_v49 = vadd.f32 %v1604_v47, %v1603_v48 }
 0xd48   : > { %1607 = vrot.lane.b32.xlu1 %v1605_v49, %s5458_s26 }
 0xdba   : > { %v1608_v50 = vpop.permute.xlu1 %1607 }
 0xdbb   : > { %1610 = vst.msk [vmem:[#allocation2 + $0x3] sm:$0x1] %vm1287_vm4, %v1608_v50  ;;  %4005 = vmatmul.mubr.msk.f32.vlgmr.msra.gmra.mrb[4].mxu1 %vm1183_vm6, %v1608_v50 }
 0xdbc   : > { %1611 = vst.msk [vmem:[#allocation2 + $0x4] sm:$0x1] %vm1289_vm5, %v1608_v50  ;;  %4195 = vmatpush3.bf16.msra.mxu1 %v6330_v7  ;;  %4026 = vmatprep.mubr.msk.f32.mxu1 %vm5455_vm0, %v5456_v8 }
 0xdbd   : > { %4196 = vmatprep.subr.bf16.mxu1 %v5454_v3 }
 0xdc0   : > { %4198 = vmatpush3.bf16.msra.mxu1 %v6338_v11 }
 0xe8e   : > { %v1683_v51 = vpop.f32.mrb[4].mxu1 }
 0xe8f   : > { %v1684_v52 = vadd.f32 %v1683_v51, %v6357_v16  ;;  %v4006_v53 = vpop.f32.mrb[5].mxu1 }
 0xe91   : > { %1695 = vrot.lane.b32.xlu0 %v1684_v52, %s5457_s11  ;;  %v1687_v57 = vadd.f32 %v1684_v52, %v1614_v56 }
 0xe93   : > { %v3799_v58 = vmul.f32 -1.442695, %v1687_v57 }
 0xe95   : > { %4580 = vpow2.f32 %v3799_v58  ;;  %v1933_v58 = vld [vmem:[#allocation3 + $0x7] sm:$0x1] }
 0xe9f   : > { %v4581_v59 = vpop.eup %4580 }
 0xea0   : > { %v1691_v60 = vadd.f32 1.0, %v4581_v59  ;;  %v1934_v59 = vld [vmem:[#allocation3] sm:$0x1] }
 0xea2   : > { %4582 = vrcp.f32 %v1691_v60  ;;  %v1935_v60 = vsel %vm6361_vm3, %v1933_v58, %v1934_v59 }
 0xeac   : > { %v4583_v61 = vpop.eup %4582 }
 0xead   : > { %v1705_v4 = vsub.f32 1.0, %v4583_v61  ;;  %v1711_v6 = vmul.f32 %v4583_v61, %v1605_v49 }
 0xf03   : > { %v1696_v62 = vpop.permute.xlu0 %1695 }
 0xf04   : > { %v1698_v63 = vmul.f32 %v4583_v61, %v1696_v62 }
 0xf06   : > { %1700 = vrot.lane.b32.xlu1 %v1698_v63, %s5457_s11 }
 0xf78   : > { %v1701_v0 = vpop.permute.xlu1 %1700 }
 0xf79   : > { %v1703_v1 = vadd.f32 %v1701_v0, %v1614_v56 }
 0xf7b   : > { %4584 = vtanh.f32 %v1703_v1 }
 0xf85   : > { %v4585_v2 = vpop.eup %4584 }
 0xf86   : > { %1707 = vrot.lane.b32.xlu0 %v4585_v2, %s5458_s26 }
 0xff8   : > { %v1708_v5 = vpop.permute.xlu0 %1707 }
 0xff9   : > { %v1710_v9 = vmul.f32 %v1708_v5, %v1705_v4 }
 0xffb   : > { %v1712_v10 = vadd.f32 %v1711_v6, %v1710_v9 }
 0xffd   : > { %1714 = vrot.lane.b32.xlu1 %v1712_v10, %s5458_s26 }
0x106f   : > { %v1715_v12 = vpop.permute.xlu1 %1714 }
0x1070   : > { %1717 = vst.msk [vmem:[#allocation2 + $0x4] sm:$0x1] %vm1287_vm4, %v1715_v12  ;;  %4016 = vmatmul.mubr.msk.f32.vlgmr.msra.gmra.mrb[6].mxu0 %vm1183_vm6, %v1715_v12 }
0x1071   : > { %1718 = vst.msk [vmem:[#allocation2 + $0x3] sm:$0x1] %vm1289_vm5, %v1715_v12  ;;  %4201 = vmatpush3.bf16.msra.mxu0 %v6330_v7  ;;  %4037 = vmatprep.mubr.msk.f32.mxu0 %vm5455_vm0, %v5456_v8 }
0x1072   : > { %4202 = vmatprep.subr.bf16.mxu0 %v5454_v3 }
0x1075   : > { %4204 = vmatpush3.bf16.msra.mxu0 %v6338_v11 }
0x1143   : > { %v1790_v13 = vpop.f32.mrb[6].mxu0 }
0x1144   : > { %v1791_v14 = vadd.f32 %v1790_v13, %v6357_v16  ;;  %v4017_v15 = vpop.f32.mrb[7].mxu0 }
0x1146   : > { %1802 = vrot.lane.b32.xlu0 %v1791_v14, %s5457_s11  ;;  %v1794_v20 = vadd.f32 %v1791_v14, %v1721_v19 }
0x1148   : > { %v3801_v7 = vmul.f32 -1.442695, %v1794_v20 }
0x114a   : > { %4586 = vpow2.f32 %v3801_v7 }
0x1154   : > { %v4587_v21 = vpop.eup %4586 }
0x1155   : > { %v1798_v8 = vadd.f32 1.0, %v4587_v21 }
0x1157   : > { %4588 = vrcp.f32 %v1798_v8 }
0x1161   : > { %v4589_v3 = vpop.eup %4588 }
0x1162   : > { %v1812_v27 = vsub.f32 1.0, %v4589_v3  ;;  %v1818_v29 = vmul.f32 %v4589_v3, %v1712_v10 }
0x11b8   : > { %v1803_v22 = vpop.permute.xlu0 %1802 }
0x11b9   : > { %v1805_v11 = vmul.f32 %v4589_v3, %v1803_v22 }
0x11bb   : > { %1807 = vrot.lane.b32.xlu1 %v1805_v11, %s5457_s11 }
0x122d   : > { %v1808_v24 = vpop.permute.xlu1 %1807 }
0x122e   : > { %v1810_v25 = vadd.f32 %v1808_v24, %v1721_v19 }
0x1230   : > { %4590 = vtanh.f32 %v1810_v25 }
0x123a   : > { %v4591_v26 = vpop.eup %4590 }
0x123b   : > { %1814 = vrot.lane.b32.xlu0 %v4591_v26, %s5458_s26 }
0x12ad   : > { %v1815_v28 = vpop.permute.xlu0 %1814 }
0x12ae   : > { %v1817_v30 = vmul.f32 %v1815_v28, %v1812_v27 }
0x12b0   : > { %v1819_v31 = vadd.f32 %v1818_v29, %v1817_v30 }
0x12b2   : > { %1821 = vrot.lane.b32.xlu1 %v1819_v31, %s5458_s26 }
0x1324   : > { %v1822_v32 = vpop.permute.xlu1 %1821 }
0x1325   : > { %1824 = vst.msk [vmem:[#allocation2 + $0x5] sm:$0x1] %vm1287_vm4, %v1822_v32  ;;  %4027 = vmatmul.mubr.msk.f32.vlgmr.msra.gmra.mrb[6].mxu1 %vm1183_vm6, %v1822_v32 }
0x1326   : > { %1825 = vst.msk [vmem:[#allocation2 + $0x2] sm:$0x1] %vm1289_vm5, %v1822_v32 }
0x13f8   : > { %v1897_v33 = vpop.f32.mrb[6].mxu1 }
0x13f9   : > { %v1898_v34 = vadd.f32 %v1897_v33, %v6357_v16  ;;  %v4028_v35 = vpop.f32.mrb[7].mxu1 }
0x13fb   : > { %1909 = vrot.lane.b32.xlu0 %v1898_v34, %s5457_s11  ;;  %v1901_v39 = vadd.f32 %v1898_v34, %v1828_v38 }
0x13fd   : > { %v3803_v40 = vmul.f32 -1.442695, %v1901_v39 }
0x13ff   : > { %4592 = vpow2.f32 %v3803_v40 }
0x1409   : > { %v4593_v41 = vpop.eup %4592 }
0x140a   : > { %v1905_v42 = vadd.f32 1.0, %v4593_v41 }
0x140c   : > { %4594 = vrcp.f32 %v1905_v42 }
0x1416   : > { %v4595_v43 = vpop.eup %4594 }
0x1417   : > { %v1919_v49 = vsub.f32 1.0, %v4595_v43  ;;  %v1925_v51 = vmul.f32 %v4595_v43, %v1819_v31 }
0x146d   : > { %v1910_v44 = vpop.permute.xlu0 %1909 }
0x146e   : > { %v1912_v45 = vmul.f32 %v4595_v43, %v1910_v44 }
0x1470   : > { %1914 = vrot.lane.b32.xlu1 %v1912_v45, %s5457_s11 }
0x14e2   : > { %v1915_v46 = vpop.permute.xlu1 %1914 }
0x14e3   : > { %v1917_v47 = vadd.f32 %v1915_v46, %v1828_v38 }
0x14e5   : > { %4596 = vtanh.f32 %v1917_v47 }
0x14ef   : > { %v4597_v48 = vpop.eup %4596 }
0x14f0   : > { %1921 = vrot.lane.b32.xlu0 %v4597_v48, %s5458_s26 }
0x1562   : > { %v1922_v50 = vpop.permute.xlu0 %1921 }
0x1563   : > { %v1924_v52 = vmul.f32 %v1922_v50, %v1919_v49 }
0x1565   : > { %v1926_v53 = vadd.f32 %v1925_v51, %v1924_v52 }
0x1567   : > { %1928 = vrot.lane.b32.xlu1 %v1926_v53, %s5458_s26 }
0x15d9   : > { %v1929_v54 = vpop.permute.xlu1 %1928 }
0x15da   : > { %1931 = vst.msk [vmem:[#allocation2 + $0x6] sm:$0x1] %vm1287_vm4, %v1929_v54  ;;  %4038 = vmatmul.mubr.msk.f32.vlgmr.msra.gmra.mrb[8].mxu0 %vm1183_vm6, %v1929_v54 }
0x15db   : > { %1932 = vst.msk [vmem:[#allocation2 + $0x1] sm:$0x1] %vm1289_vm5, %v1929_v54 }
0x16ad   : > { %v2004_v55 = vpop.f32.mrb[8].mxu0 }
0x16ae   : > { %v2005_v56 = vadd.f32 %v2004_v55, %v6357_v16  ;;  %v4039_v57 = vpop.f32.mrb[9].mxu0 }
0x16b0   : > { %2016 = vrot.lane.b32.xlu0 %v2005_v56, %s5457_s11  ;;  %v2008_v61 = vadd.f32 %v2005_v56, %v1935_v60 }
0x16b2   : > { %v3805_v62 = vmul.f32 -1.442695, %v2008_v61 }
0x16b4   : > { %4598 = vpow2.f32 %v3805_v62 }
0x16be   : > { %v4599_v63 = vpop.eup %4598 }
0x16bf   : > { %v2012_v0 = vadd.f32 1.0, %v4599_v63 }
0x16c1   : > { %4600 = vrcp.f32 %v2012_v0 }
0x16cb   : > { %v4601_v1 = vpop.eup %4600 }
0x16cc   : > { %v2026_v9 = vsub.f32 1.0, %v4601_v1  ;;  %v2032_v10 = vmul.f32 %v4601_v1, %v1926_v53 }
0x1722   : > { %v2017_v2 = vpop.permute.xlu0 %2016 }
0x1723   : > { %v2019_v4 = vmul.f32 %v4601_v1, %v2017_v2 }
0x1725   : > { %2021 = vrot.lane.b32.xlu1 %v2019_v4, %s5457_s11 }
0x1797   : > { %v2022_v16 = vpop.permute.xlu1 %2021 }
0x1798   : > { %v2024_v5 = vadd.f32 %v2022_v16, %v1935_v60 }
0x179a   : > { %4602 = vtanh.f32 %v2024_v5 }
0x17a4   : > { %v4603_v6 = vpop.eup %4602 }
0x17a5   : > { %2028 = vrot.lane.b32.xlu0 %v4603_v6, %s5458_s26 }
0x1817   : > { %v2029_v23 = vpop.permute.xlu0 %2028 }
0x1818   : > { %v2031_v12 = vmul.f32 %v2029_v23, %v2026_v9 }
0x181a   : > { %v2033_v13 = vadd.f32 %v2032_v10, %v2031_v12 }
0x181c   : > { %2035 = vrot.lane.b32.xlu1 %v2033_v13, %s5458_s26 }
0x188e   : > { %v2036_v14 = vpop.permute.xlu1 %2035 }
0x188f   : > { %2038 = vst.msk [vmem:[#allocation2 + $0x7] sm:$0x1] %vm1287_vm4, %v2036_v14 }
0x1890   : > { %2039 = vst.msk [vmem:[#allocation2] sm:$0x1] %vm1289_vm5, %v2036_v14 }
0x1891 PF: > { %s6906_s29 = sld [smem:[#allocation61_spill]]  ;;  %vm2047_vm7 = vcmask 261120   ;;  %v5459_v8 = vmov 0.0|0.0   ;;  %vm5460_vm8 = vmmov 0   ;;  %v5461_v24 = vmov 0.0  }
0x1892   : > { %4205 = vmatprep.subr.bf16.mxu1 %v5459_v8  ;;  %4217 = vmatprep.subr.bf16.mxu0 %v5459_v8  ;;  %vm2336_vm11 = vcmask 64512   ;;  %v2415_v2 = vlaneseq  ;;  %v2041_v4 = vld [vmem:[%s917_s24] sm:$0x1]  ;;  %v5462_v6 = vmov 0  }
0x1893   : > { %4048 = vmatprep.mubr.msk.f32.mxu1 %vm5460_vm8, %v5461_v24  ;;  %4070 = vmatprep.mubr.msk.f32.mxu0 %vm5460_vm8, %v5461_v24  ;;  %vm2042_vm12 = vcmp.eq.f32.partialorder %v2041_v4, 0.0 }
0x1894   : > { %v2416_v16 = vshrl.u32 %v2415_v2, 7  ;;  %v2414_v9 = vsel %vm2042_vm12, 1, %v5462_v6 }
0x1896   : > { %v2417_v5 = vsub.s32 0, %v2416_v16 }
0x1897   : > { %v6470_v15 = vld [vmem:[#allocation2] sm:$0xff]  ;;  %s6477_s15 = sshll.u32 %s6906_s29, 5  ;;  %s2043_s7 = scalar_lea.vmem [#allocation28], %s6906_s29 }
0x1898   : > { %v2048_v17 = vsel %vm2047_vm7, %v6470_v15, 0.0  ;;  %s2084_s9 = scalar_lea.vmem [#allocation16], %s6477_s15  ;;  %s2253_s13 = scalar_lea.vmem [#allocation22], %s6477_s15  ;;  %v3806_v42 = vld [vmem:[%s2043_s7] ss:$0 sm:$0xff]  ;;  %v6517_v23 = vrot.slane %v2414_v9, %v2417_v5 }
0x1899   : > { %2049 = vadd.xlane.f32.xlu0 %v2048_v17  ;;  %v2085_v3 = vld [vmem:[%s2084_s9] sm:$0xff]  ;;  %v2086_v22 = vld [vmem:[%s2084_s9 + $0x8] sm:$0xff]  ;;  %v2087_v11 = vld [vmem:[%s2084_s9 + $0x10] sm:$0xff]  ;;  %s2170_s6 = scalar_lea.vmem [#allocation19], %s6477_s15  ;;  %s2045_s12 = scalar_lea.vmem [#allocation29], %s6906_s29 }
0x189a   : > { %v4206_v25 = vpack.c.bf16 %v2086_v22, %v2085_v3  ;;  %v2254_v26 = vld [vmem:[%s2253_s13] sm:$0xff]  ;;  %v2255_v27 = vld [vmem:[%s2253_s13 + $0x8] sm:$0xff]  ;;  %v2088_v28 = vld [vmem:[%s2084_s9 + $0x18] sm:$0xff]  ;;  %s2258_s14 = scalar_lea.vmem [#allocation23], %s6906_s29  ;;  %s2175_s0 = scalar_lea.vmem [#allocation20], %s6906_s29  ;;  %vm2419_vm13 = vcmp.eq.s32.totalorder %v6517_v23, 1 }
0x189b   : > { %v4218_v29 = vpack.c.bf16 %v2255_v27, %v2254_v26  ;;  %v2256_v30 = vld [vmem:[%s2253_s13 + $0x10] sm:$0xff]  ;;  %v2257_v31 = vld [vmem:[%s2253_s13 + $0x18] sm:$0xff]  ;;  %v4209_v32 = vpack.c.bf16 %v2088_v28, %v2087_v11  ;;  %v2171_v44 = vld [vmem:[%s2170_s6] sm:$0xff]  ;;  %s2089_s25 = scalar_lea.vmem [#allocation17], %s6906_s29  ;;  %p3817_p10 = scmp.ne.s32.totalorder %s6906_s29, 1 }
0x189c   : > { %4207 = vmatpush3.bf16.msra.mxu1 %v4206_v25  ;;  %v4221_v33 = vpack.c.bf16 %v2257_v31, %v2256_v30  ;;  %v2172_v45 = vld [vmem:[%s2170_s6 + $0x8] sm:$0xff]  ;;  %v3807_v47 = vld [vmem:[%s2045_s12] ss:$0 sm:$0xff]  ;;  %v2173_v51 = vld [vmem:[%s2170_s6 + $0x10] sm:$0xff] }
0x189d   : > { %4219 = vmatpush3.bf16.msra.mxu0 %v4218_v29  ;;  %4208 = vmatprep.subr.bf16.mxu1 %v5459_v8  ;;  %v4212_v49 = vpack.c.bf16 %v2172_v45, %v2171_v44  ;;  %v2174_v52 = vld [vmem:[%s2170_s6 + $0x18] sm:$0xff]  ;;  %v3813_v54 = vld [vmem:[%s2258_s14] ss:$0 sm:$0xff] }
0x189e   : > { %4220 = vmatprep.subr.bf16.mxu0 %v5459_v8  ;;  %v4215_v53 = vpack.c.bf16 %v2174_v52, %v2173_v51  ;;  %v3811_v60 = vld [vmem:[%s2175_s0] ss:$0 sm:$0xff] }
0x189f   : > { %v3809_v62 = vld [vmem:[%s2089_s25] ss:$0 sm:$0xff] }
0x18a0   : > { %4210 = vmatpush3.bf16.msra.mxu1 %v4209_v32 }
0x18a1   : > { %4222 = vmatpush3.bf16.msra.mxu0 %v4221_v33  ;;  %4211 = vmatprep.subr.bf16.mxu1 %v5459_v8 }
0x1926   : > { %v2050_v18 = vpop.xlane.xlu0 %2049 }
0x1927   : > { %v2052_v19 = vmul.f32 0.03125, %v2050_v18 }
0x1929   : > { %v2053_v20 = vsub.f32 %v6470_v15, %v2052_v19 }
0x192b   : > { %v2054_v7 = vmul.f32 %v2053_v20, %v2053_v20  ;;  %v2074_v43 = vmul.f32 %v3806_v42, %v2053_v20 }
0x192d   : > { %v2055_v21 = vsel %vm2047_vm7, %v2054_v7, 0.0 }
0x192e   : > { %2056 = vadd.xlane.f32.xlu0 %v2055_v21 }
0x19bb   : > { %v2057_v34 = vpop.xlane.xlu0 %2056 }
0x19bc   : > { %v2058_v35 = vmul.f32 0.032258064, %v2057_v34 }
0x19be   : > { %4604 = vrsqrt.f32 %v2058_v35  ;;  %vm2061_vm9 = vcmp.eq.f32.partialorder %v2058_v35, inf  ;;  %v2064_v38 = vand.u32 2147483648, %v2058_v35  ;;  %vm2063_vm10 = vcmp.eq.f32.partialorder %v2058_v35, 0.0 }
0x19c8   : > { %v4605_v36 = vpop.eup %4604 }
0x19c9   : > { %v2060_v37 = vmul.f32 %v4605_v36, %v2058_v35 }
0x19cb   : > { %v2062_v39 = vsel %vm2061_vm9, %v2058_v35, %v2060_v37 }
0x19cc   : > { %v2065_v40 = vsel %vm2063_vm10, %v2064_v38, %v2062_v39 }
0x19cd   : > { %v2066_v41 = vadd.f32 1e-06, %v2065_v40 }
0x19cf   : > { %4606 = vrcp.f32 %v2066_v41 }
0x19d9   : > { %v4607_v46 = vpop.eup %4606 }
0x19da   : > { %v2075_v48 = vmul.f32 %v4607_v46, %v2074_v43 }
0x19dc   : > { %v2082_v50 = vadd.f32 %v3807_v47, %v2075_v48 }
0x19de   : > { %4049 = vmatmul.mubr.msk.f32.vlgmr.msra.gmra.mrb[0].mxu1 %vm2047_vm7, %v2082_v50  ;;  %4071 = vmatmul.mubr.msk.f32.vlgmr.msra.gmra.mrb[0].mxu0 %vm2047_vm7, %v2082_v50 }
0x19df   : > { %4213 = vmatpush3.bf16.msra.mxu1 %v4212_v49  ;;  %4059 = vmatprep.mubr.msk.f32.mxu1 %vm5460_vm8, %v5461_v24 }
0x19e0   : > { %4214 = vmatprep.subr.bf16.mxu1 %v5459_v8 }
0x19e3   : > { %4216 = vmatpush3.bf16.msra.mxu1 %v4215_v53 }
0x19e4   : > { %4073 = vmatprep.subr.mxu1 %v5461_v24 }
0x19e6   : > { %4060 = vmatmul.mubr.msk.f32.vlgmr.msra.gmra.mrb[2].mxu1 %vm2047_vm7, %v2082_v50 }
0x19e7   : > { %4075 = vmatprep.mubr.msk.f32.mxu1 %vm5460_vm8, %v5461_v24 }
0x1ab1   : > { %v2166_v55 = vpop.f32.mrb[0].mxu1  ;;  %v2332_v56 = vpop.f32.mrb[0].mxu0 }
0x1ab2   : > { %v6503_v57 = vadd.f32 %v3813_v54, %v2332_v56  ;;  %v4050_v58 = vpop.f32.mrb[1].mxu1  ;;  %v4072_v59 = vpop.f32.mrb[1].mxu0  ;;  %v6511_v1 = vadd.f32 %v3809_v62, %v2166_v55 }
0x1ab9   : > { %v2249_v61 = vpop.f32.mrb[2].mxu1 }
0x1aba   : > { %v6507_v63 = vadd.f32 %v3811_v60, %v2249_v61  ;;  %v4061_v0 = vpop.f32.mrb[3].mxu1 }
0x1abc   : > { %4074 = vmatpush3.xpose.msk.msra.mxu1 %vm2336_vm11, %v6507_v63 }
0x1abf   : > { %4076 = vmatmul.mubr.msk.f32.vlgmr.msra.gmra.mrb[4].mxu1 %vm2336_vm11, %v6511_v1 }
0x1b92   : > { %v2409_v10 = vpop.f32.mrb[4].mxu1 }
0x1b93   : > { %v2413_v12 = vmul.f32 0.35355338, %v2409_v10  ;;  %v4077_v13 = vpop.f32.mrb[5].mxu1 }
0x1b95   : > { %v2420_v14 = vsel %vm2419_vm13, -1e+09, %v2413_v12 }
0x1b96   : > { %v2421_v17 = vsel %vm2336_vm11, %v2420_v14, -inf }
0x1b97   : > { %2422 = vmax.xlane.f32.xlu1 %v2421_v17 }
0x1c24   : > { %v2423_v18 = vpop.xlane.xlu1 %2422 }
0x1c25   : > { %v2424_v19 = vsub.f32 %v2420_v14, %v2423_v18 }
0x1c27   : > { %v2425_v20 = vmul.f32 1.442695, %v2424_v19 }
0x1c29   : > { %4608 = vpow2.f32 %v2425_v20 }
0x1c33   : > { %v4609_v7 = vpop.eup %4608 }
0x1c34   : > { %v2427_v21 = vsel %vm2336_vm11, %v4609_v7, 0.0 }
0x1c35   : > { %2428 = vadd.xlane.f32.xlu1 %v2427_v21 }
0x1cc2   : > { %v2429_v3 = vpop.xlane.xlu1 %2428 }
0x1cc3   : > { %4610 = vrcp.f32 %v2429_v3 }
0x1cc8   : > { %2434 = sbr.rel (%p3817_p10) target bundleno = 7377 (0x1cd1), region = 204 }
0x1ccd   : > { %v4611_v22 = vpop.eup %4610 }
0x1cce   : > { %v2431_v11 = vmul.f32 %v4611_v22, %v4609_v7 }
0x1cd0   : > { %2435 = vst.msk [vmem:[%s6325_s30] sm:$0xff] %vm2336_vm11, %v2431_v11 }
0x1cd1 PF: > { %4083 = vmatprep.subr.mxu0 %v5461_v24  ;;  %4085 = vmatprep.mubr.msk.f32.mxu0 %vm5460_vm8, %v5461_v24  ;;  %s5463_s24 = smov 120  }
0x1cd2   : > { %2512 = vrot.lane.b32.xlu0 %v6507_v63, %s5463_s24  ;;  %4078 = vmatprep.subr.mxu1 %v5461_v24 }
0x1cd3   : > { %4079 = vmatpush3.msra.mxu1 %v6503_v57  ;;  %4080 = vmatprep.mubr.msk.f32.mxu1 %vm5460_vm8, %v5461_v24 }
0x1cd4   : > { %4081 = vmatmul.mubr.msk.f32.vlgmr.msra.gmra.mrb[6].mxu1 %vm2336_vm11, %v2431_v11 }
0x1cd6   : > { %2510 = vrot.lane.b32.xlu0 %v6511_v1, %s5463_s24 }
0x1d44   : > { %v2513_v25 = vpop.permute.xlu0 %2512 }
0x1d45   : > { %4084 = vmatpush3.xpose.msk.msra.mxu0 %vm2336_vm11, %v2513_v25 }
0x1d48   : > { %v2511_v26 = vpop.permute.xlu0 %2510 }
0x1d49   : > { %4086 = vmatmul.mubr.msk.f32.vlgmr.msra.gmra.mrb[2].mxu0 %vm2336_vm11, %v2511_v26 }
0x1da7   : > { %v2505_v37 = vpop.f32.mrb[6].mxu1 }
0x1da8   : > { %2509 = vst.msk [vmem:[#allocation4] sm:$0xff] %vm2336_vm11, %v2505_v37  ;;  %v4082_v38 = vpop.f32.mrb[7].mxu1 }
0x1e1c   : > { %v2584_v27 = vpop.f32.mrb[2].mxu0 }
0x1e1d   : > { %v2588_v28 = vmul.f32 0.35355338, %v2584_v27  ;;  %v4087_v29 = vpop.f32.mrb[3].mxu0 }
0x1e1f   : > { %v2589_v30 = vsel %vm2419_vm13, -1e+09, %v2588_v28 }
0x1e20   : > { %v2590_v31 = vsel %vm2336_vm11, %v2589_v30, -inf }
0x1e21   : > { %2591 = vmax.xlane.f32.xlu1 %v2590_v31 }
0x1eae   : > { %v2592_v32 = vpop.xlane.xlu1 %2591 }
0x1eaf   : > { %v2593_v33 = vsub.f32 %v2589_v30, %v2592_v32 }
0x1eb1   : > { %v2594_v34 = vmul.f32 1.442695, %v2593_v33 }
0x1eb3   : > { %4612 = vpow2.f32 %v2594_v34 }
0x1ebd   : > { %v4613_v35 = vpop.eup %4612 }
0x1ebe   : > { %v2596_v36 = vsel %vm2336_vm11, %v4613_v35, 0.0 }
0x1ebf   : > { %2597 = vadd.xlane.f32.xlu1 %v2596_v36 }
0x1f4c   : > { %v2598_v39 = vpop.xlane.xlu1 %2597 }
0x1f4d   : > { %4614 = vrcp.f32 %v2598_v39 }
0x1f52   : > { %2603 = sbr.rel (%p3817_p10) target bundleno = 8027 (0x1f5b), region = 208 }
0x1f57   : > { %v4615_v40 = vpop.eup %4614 }
0x1f58   : > { %v2600_v41 = vmul.f32 %v4615_v40, %v4613_v35 }
0x1f5a   : > { %3822 = vst.msk [vmem:[%s6325_s30 + $0x8] sm:$0xff] %vm2336_vm11, %v2600_v41 }
0x1f5b PF: > { %4093 = vmatprep.subr.mxu0 %v5461_v24  ;;  %4095 = vmatprep.mubr.msk.f32.mxu0 %vm5460_vm8, %v5461_v24  ;;  %s5464_s11 = smov 112   ;;  %s5465_s26 = smov 8   ;;  %vm2687_vm14 = vcmask 130112  }
0x1f5c   : > { %2691 = vrot.lane.b32.xlu0 %v6507_v63, %s5464_s11  ;;  %2607 = vrot.lane.b32.xlu1 %v6503_v57, %s5463_s24 }
0x1f5d   : > { %4088 = vmatprep.subr.mxu1 %v5461_v24  ;;  %4090 = vmatprep.mubr.msk.f32.mxu1 %vm5460_vm8, %v5461_v24 }
0x1f60   : > { %2689 = vrot.lane.b32.xlu0 %v6511_v1, %s5464_s11 }
0x1fce   : > { %v2692_v42 = vpop.permute.xlu0 %2691  ;;  %v2608_v43 = vpop.permute.xlu1 %2607 }
0x1fcf   : > { %4094 = vmatpush3.xpose.msk.msra.mxu0 %vm2336_vm11, %v2692_v42  ;;  %4089 = vmatpush3.msra.mxu1 %v2608_v43 }
0x1fd0   : > { %4091 = vmatmul.mubr.msk.f32.vlgmr.msra.gmra.mrb[8].mxu1 %vm2336_vm11, %v2600_v41 }
0x1fd2   : > { %v2690_v44 = vpop.permute.xlu0 %2689 }
0x1fd3   : > { %4096 = vmatmul.mubr.msk.f32.vlgmr.msra.gmra.mrb[4].mxu0 %vm2336_vm11, %v2690_v44 }
0x20a3   : > { %v2679_v50 = vpop.f32.mrb[8].mxu1 }
0x20a4   : > { %v4092_v51 = vpop.f32.mrb[9].mxu1 }
0x20a6   : > { %v2763_v45 = vpop.f32.mrb[4].mxu0 }
0x20a7   : > { %v2767_v46 = vmul.f32 0.35355338, %v2763_v45  ;;  %v4097_v47 = vpop.f32.mrb[5].mxu0 }
0x20a9   : > { %v2768_v48 = vsel %vm2419_vm13, -1e+09, %v2767_v46 }
0x20aa   : > { %v2769_v49 = vsel %vm2336_vm11, %v2768_v48, -inf }
0x20ab   : > { %2770 = vmax.xlane.f32.xlu1 %v2769_v49 }
0x2138   : > { %v2771_v52 = vpop.xlane.xlu1 %2770 }
0x2139   : > { %v2772_v53 = vsub.f32 %v2768_v48, %v2771_v52 }
0x213b   : > { %v2773_v54 = vmul.f32 1.442695, %v2772_v53 }
0x213d   : > { %4616 = vpow2.f32 %v2773_v54 }
0x2147   : > { %v4617_v55 = vpop.eup %4616 }
0x2148   : > { %v2775_v56 = vsel %vm2336_vm11, %v4617_v55, 0.0 }
0x2149   : > { %2776 = vadd.xlane.f32.xlu0 %v2775_v56 }
0x215f   : > { %2684 = vrot.lane.b32.xlu0 %v2679_v50, %s5465_s26 }
0x21d6   : > { %v2777_v58 = vpop.xlane.xlu0 %2776 }
0x21d7   : > { %4618 = vrcp.f32 %v2777_v58 }
0x21da   : > { %v2685_v59 = vpop.permute.xlu0 %2684 }
0x21db   : > { %2688 = vst.msk [vmem:[#allocation4] sm:$0xff] %vm2687_vm14, %v2685_v59 }
0x21dc   : > { %2782 = sbr.rel (%p3817_p10) target bundleno = 8677 (0x21e5), region = 212 }
0x21e1   : > { %v4619_v60 = vpop.eup %4618 }
0x21e2   : > { %v2779_v61 = vmul.f32 %v4619_v60, %v4617_v55 }
0x21e4   : > { %3827 = vst.msk [vmem:[%s6325_s30 + $0x10] sm:$0xff] %vm2336_vm11, %v2779_v61 }
0x21e5 PF: > { %4103 = vmatprep.subr.mxu0 %v5461_v24  ;;  %4105 = vmatprep.mubr.msk.f32.mxu0 %vm5460_vm8, %v5461_v24  ;;  %s5466_s9 = smov 104   ;;  %s5467_s13 = smov 16   ;;  %vm2865_vm15 = vcmask 195712  }
0x21e6   : > { %2869 = vrot.lane.b32.xlu0 %v6507_v63, %s5466_s9  ;;  %2785 = vrot.lane.b32.xlu1 %v6503_v57, %s5464_s11 }
0x21e7   : > { %4098 = vmatprep.subr.mxu1 %v5461_v24  ;;  %4100 = vmatprep.mubr.msk.f32.mxu1 %vm5460_vm8, %v5461_v24 }
0x21ea   : > { %2867 = vrot.lane.b32.xlu0 %v6511_v1, %s5466_s9 }
0x2258   : > { %v2870_v62 = vpop.permute.xlu0 %2869  ;;  %v2786_v0 = vpop.permute.xlu1 %2785 }
0x2259   : > { %4104 = vmatpush3.xpose.msk.msra.mxu0 %vm2336_vm11, %v2870_v62  ;;  %4099 = vmatpush3.msra.mxu1 %v2786_v0 }
0x225a   : > { %4101 = vmatmul.mubr.msk.f32.vlgmr.msra.gmra.mrb[10].mxu1 %vm2336_vm11, %v2779_v61 }
0x225c   : > { %v2868_v2 = vpop.permute.xlu0 %2867 }
0x225d   : > { %4106 = vmatmul.mubr.msk.f32.vlgmr.msra.gmra.mrb[6].mxu0 %vm2336_vm11, %v2868_v2 }
0x232d   : > { %v2857_v1 = vpop.f32.mrb[10].mxu1 }
0x232e   : > { %v4102_v9 = vpop.f32.mrb[11].mxu1 }
0x2330   : > { %v2941_v63 = vpop.f32.mrb[6].mxu0 }
0x2331   : > { %v2945_v4 = vmul.f32 0.35355338, %v2941_v63  ;;  %v4107_v16 = vpop.f32.mrb[7].mxu0 }
0x2333   : > { %v2946_v5 = vsel %vm2419_vm13, -1e+09, %v2945_v4 }
0x2334   : > { %v2947_v6 = vsel %vm2336_vm11, %v2946_v5, -inf }
0x2335   : > { %2948 = vmax.xlane.f32.xlu1 %v2947_v6 }
0x23c2   : > { %v2949_v10 = vpop.xlane.xlu1 %2948 }
0x23c3   : > { %v2950_v12 = vsub.f32 %v2946_v5, %v2949_v10 }
0x23c5   : > { %v2951_v13 = vmul.f32 1.442695, %v2950_v12 }
0x23c7   : > { %4620 = vpow2.f32 %v2951_v13 }
0x23d1   : > { %v4621_v14 = vpop.eup %4620 }
0x23d2   : > { %v2953_v17 = vsel %vm2336_vm11, %v4621_v14, 0.0 }
0x23d3   : > { %2954 = vadd.xlane.f32.xlu0 %v2953_v17 }
0x23e9   : > { %2862 = vrot.lane.b32.xlu0 %v2857_v1, %s5467_s13 }
0x2460   : > { %v2955_v18 = vpop.xlane.xlu0 %2954 }
0x2461   : > { %4622 = vrcp.f32 %v2955_v18 }
0x2464   : > { %v2863_v23 = vpop.permute.xlu0 %2862 }
0x2465   : > { %2866 = vst.msk [vmem:[#allocation4] sm:$0xff] %vm2865_vm15, %v2863_v23 }
0x2466   : > { %2960 = sbr.rel (%p3817_p10) target bundleno = 9327 (0x246f), region = 216 }
0x246b   : > { %v4623_v19 = vpop.eup %4622 }
0x246c   : > { %v2957_v20 = vmul.f32 %v4623_v19, %v4621_v14 }
0x246e   : > { %3832 = vst.msk [vmem:[%s6325_s30 + $0x18] sm:$0xff] %vm2336_vm11, %v2957_v20 }
0x246f PF: > { %2963 = vrot.lane.b32.xlu0 %v6503_v57, %s5466_s9  ;;  %4108 = vmatprep.subr.mxu1 %v5461_v24  ;;  %s3046_s6 = scalar_lea.vmem [#allocation25], %s6477_s15  ;;  %s6910_s12 = sld [smem:[#allocation61_spill]]  ;;  %vm3043_vm0 = vcmask 261312   ;;  %vm3268_vm3 = vcmask 523264  }
0x2470   : > { %4110 = vmatprep.mubr.msk.f32.mxu1 %vm5460_vm8, %v5461_v24  ;;  %4223 = vmatprep.subr.bf16.mxu0 %v5459_v8  ;;  %v3047_v57 = vld [vmem:[%s3046_s6] sm:$0xff]  ;;  %v3048_v21 = vld [vmem:[%s3046_s6 + $0x8] sm:$0xff]  ;;  %v3049_v22 = vld [vmem:[%s3046_s6 + $0x10] sm:$0xff]  ;;  %s5468_s14 = smov 24   ;;  %s3171_s25 = scalar_lea.vmem [#allocation31], %s6477_s15 }
0x2471   : > { %4121 = vmatprep.mubr.msk.f32.mxu0 %vm5460_vm8, %v5461_v24  ;;  %v4224_v3 = vpack.c.bf16 %v3048_v21, %v3047_v57  ;;  %v3050_v11 = vld [vmem:[%s3046_s6 + $0x18] sm:$0xff]  ;;  %v3172_v40 = vld [vmem:[%s3171_s25] sm:$0xff]  ;;  %v3173_v41 = vld [vmem:[%s3171_s25 + $0x8] sm:$0xff] }
0x2472   : > { %v4227_v25 = vpack.c.bf16 %v3050_v11, %v3049_v22  ;;  %v3174_v42 = vld [vmem:[%s3171_s25 + $0x10] sm:$0xff]  ;;  %v4230_v43 = vpack.c.bf16 %v3173_v41, %v3172_v40 }
0x2473   : > { %4225 = vmatpush3.bf16.msra.mxu0 %v4224_v3 }
0x2474   : > { %4226 = vmatprep.subr.bf16.mxu0 %v5459_v8 }
0x2475   : > { %s3051_s0 = scalar_lea.vmem [#allocation26], %s6910_s12  ;;  %s3840_s24 = sshll.u32 %s6910_s12, 6 }
0x2476   : > { %v3834_v30 = vld [vmem:[%s3051_s0] ss:$0 sm:$0xff]  ;;  %s6628_s4 = scalar_lea.vmem [#allocation34], %s3840_s24  ;;  %s3133_s15 = scalar_lea.vmem [#allocation37], %s6910_s12 }
0x2477   : > { %4228 = vmatpush3.bf16.msra.mxu0 %v4227_v25  ;;  %v3260_v45 = vld [vmem:[%s6628_s4] sm:$0xff]  ;;  %v3261_v46 = vld [vmem:[%s6628_s4 + $0x8] sm:$0xff]  ;;  %v3262_v47 = vld [vmem:[%s6628_s4 + $0x10] sm:$0xff]  ;;  %s3135_s11 = scalar_lea.vmem [#allocation38], %s6910_s12  ;;  %s3176_s29 = scalar_lea.vmem [#allocation32], %s6910_s12 }
0x2478   : > { %4235 = vmatprep.subr.bf16.mxu0 %v5459_v8  ;;  %v4236_v48 = vpack.c.bf16 %v3261_v46, %v3260_v45  ;;  %v3263_v49 = vld [vmem:[%s6628_s4 + $0x18] sm:$0xff]  ;;  %v3264_v51 = vld [vmem:[%s6628_s4 + $0x20] sm:$0xff]  ;;  %v3265_v52 = vld [vmem:[%s6628_s4 + $0x28] sm:$0xff]  ;;  %s3343_s9 = scalar_lea.vmem [#allocation35], %s6910_s12 }
0x2479   : > { %v4239_v50 = vpack.c.bf16 %v3263_v49, %v3262_v47  ;;  %v4242_v53 = vpack.c.bf16 %v3265_v52, %v3264_v51  ;;  %v3836_v0 = vld [vmem:[%s3133_s15] ss:$0 sm:$0xff]  ;;  %v3266_v5 = vld [vmem:[%s6628_s4 + $0x30] sm:$0xff]  ;;  %v3267_v6 = vld [vmem:[%s6628_s4 + $0x38] sm:$0xff] }
0x247a   : > { %v3837_v63 = vld [vmem:[%s3135_s11] ss:$0 sm:$0xff]  ;;  %v4245_v1 = vpack.c.bf16 %v3267_v6, %v3266_v5 }
0x247b   : > { %v3838_v9 = vld [vmem:[%s3176_s29] ss:$0 sm:$0xff] }
0x247c   : > { %v3842_v18 = vld [vmem:[%s3343_s9] ss:$0 sm:$0xff] }
0x24e1   : > { %v2964_v7 = vpop.permute.xlu0 %2963 }
0x24e2   : > { %4109 = vmatpush3.msra.mxu1 %v2964_v7 }
0x24e3   : > { %4111 = vmatmul.mubr.msk.f32.vlgmr.msra.gmra.mrb[12].mxu1 %vm2336_vm11, %v2957_v20  ;;  %4229 = vmatprep.subr.bf16.mxu1 %v5459_v8 }
0x24e4   : > { %4132 = vmatprep.mubr.msk.f32.mxu1 %vm5460_vm8, %v5461_v24  ;;  %4231 = vmatpush3.bf16.msra.mxu1 %v4230_v43 }
0x24e5   : > { %4232 = vmatprep.subr.bf16.mxu1 %v5459_v8 }
0x25b6   : > { %v3035_v26 = vpop.f32.mrb[12].mxu1 }
0x25b7   : > { %3040 = vrot.lane.b32.xlu0 %v3035_v26, %s5468_s14  ;;  %v4112_v27 = vpop.f32.mrb[13].mxu1 }
0x2629   : > { %v3041_v28 = vpop.permute.xlu0 %3040 }
0x262a   : > { %3044 = vst.msk [vmem:[#allocation4] sm:$0xff] %vm3043_vm0, %v3041_v28 }
0x2631   : > { %v3045_v29 = vld [vmem:[#allocation4] sm:$0xff] }
0x2632   : > { %4122 = vmatmul.mubr.msk.f32.vlgmr.msra.gmra.mrb[8].mxu0 %vm2047_vm7, %v3045_v29 }
0x2633   : > { %4151 = vmatprep.mubr.msk.f32.mxu0 %vm5460_vm8, %v5461_v24  ;;  %4237 = vmatpush3.bf16.msra.mxu0 %v4236_v48 }
0x2634   : > { %4238 = vmatprep.subr.bf16.mxu0 %v5459_v8 }
0x2637   : > { %4240 = vmatpush3.bf16.msra.mxu0 %v4239_v50 }
0x2638   : > { %4241 = vmatprep.subr.bf16.mxu0 %v5459_v8 }
0x263b   : > { %4243 = vmatpush3.bf16.msra.mxu0 %v4242_v53 }
0x263c   : > { %4244 = vmatprep.subr.bf16.mxu0 %v5459_v8 }
0x263f   : > { %4246 = vmatpush3.bf16.msra.mxu0 %v4245_v1 }
0x2705   : > { %v3128_v31 = vpop.f32.mrb[8].mxu0 }
0x2706   : > { %v3129_v32 = vadd.f32 %v3834_v30, %v3128_v31  ;;  %v4123_v33 = vpop.f32.mrb[9].mxu0 }
0x2708   : > { %v6619_v34 = vadd.f32 %v3129_v32, %v6470_v15  ;;  %v3175_v15 = vld [vmem:[%s3171_s25 + $0x18] sm:$0xff] }
0x2709   : > { %v4233_v44 = vpack.c.bf16 %v3175_v15, %v3174_v42 }
0x270a   : > { %v3137_v35 = vsel %vm2047_vm7, %v6619_v34, 0.0 }
0x270b   : > { %3138 = vadd.xlane.f32.xlu1 %v3137_v35  ;;  %4234 = vmatpush3.bf16.msra.mxu1 %v4233_v44 }
0x2798   : > { %v3139_v36 = vpop.xlane.xlu1 %3138 }
0x2799   : > { %v3140_v37 = vmul.f32 0.03125, %v3139_v36 }
0x279b   : > { %v3141_v38 = vsub.f32 %v6619_v34, %v3140_v37 }
0x279d   : > { %v3142_v39 = vmul.f32 %v3141_v38, %v3141_v38  ;;  %v3162_v2 = vmul.f32 %v3836_v0, %v3141_v38 }
0x279f   : > { %v3143_v24 = vsel %vm2047_vm7, %v3142_v39, 0.0 }
0x27a0   : > { %3144 = vadd.xlane.f32.xlu1 %v3143_v24 }
0x282d   : > { %v3145_v54 = vpop.xlane.xlu1 %3144 }
0x282e   : > { %v3146_v55 = vmul.f32 0.032258064, %v3145_v54 }
0x2830   : > { %4624 = vrsqrt.f32 %v3146_v55  ;;  %vm3149_vm1 = vcmp.eq.f32.partialorder %v3146_v55, inf  ;;  %v3152_v59 = vand.u32 2147483648, %v3146_v55  ;;  %vm3151_vm2 = vcmp.eq.f32.partialorder %v3146_v55, 0.0 }
0x283a   : > { %v4625_v56 = vpop.eup %4624 }
0x283b   : > { %v3148_v58 = vmul.f32 %v4625_v56, %v3146_v55 }
0x283d   : > { %v3150_v60 = vsel %vm3149_vm1, %v3146_v55, %v3148_v58 }
0x283e   : > { %v3153_v61 = vsel %vm3151_vm2, %v3152_v59, %v3150_v60 }
0x283f   : > { %v3154_v62 = vadd.f32 1e-06, %v3153_v61 }
0x2841   : > { %4626 = vrcp.f32 %v3154_v62 }
0x284b   : > { %v4627_v8 = vpop.eup %4626 }
0x284c   : > { %v3163_v4 = vmul.f32 %v4627_v8, %v3162_v2 }
0x284e   : > { %v3170_v16 = vadd.f32 %v3837_v63, %v3163_v4 }
0x2850   : > { %4133 = vmatmul.mubr.msk.f32.vlgmr.msra.gmra.mrb[14].mxu1 %vm2047_vm7, %v3170_v16 }
0x2923   : > { %v3253_v10 = vpop.f32.mrb[14].mxu1 }
0x2924   : > { %v3254_v12 = vadd.f32 %v3838_v9, %v3253_v10  ;;  %v4134_v13 = vpop.f32.mrb[15].mxu1 }
0x2926   : > { %v3257_v14 = vmax.f32 %v3254_v12, 0.0 }
0x2928   : > { %4152 = vmatmul.mubr.msk.f32.vlgmr.msra.gmra.mrb[10].mxu0 %vm3268_vm3, %v3257_v14 }
0x29fa   : > { %3355 = sbr.rel (%p3817_p10) target bundleno = 10753 (0x2a01), region = 220 }
0x29fb   : > { %v3338_v17 = vpop.f32.mrb[10].mxu0 }
0x29fc   : > { %v3342_v23 = vadd.f32 %v3338_v17, %v6619_v34  ;;  %v4153_v19 = vpop.f32.mrb[11].mxu0 }
0x29fe   : > { %v3351_v20 = vadd.f32 %v3842_v18, %v3342_v23 }
0x2a00   : > { %3352 = vst.msk [vmem:[#allocation2] sm:$0xff] %vm2047_vm7, %v3351_v20  ;;  %3356 = vst.msk [vmem:[%s6323_s2] sm:$0xff] (!%p3817_p10), %vm2047_vm7, %v3351_v20 }
0x2a01 PF: > { %s6911_s13 = sld [smem:[#allocation62_spill]]  ;;  %s3376_s24 = sshll.u32 %s6323_s2, 4  ;;  %s3377_s24 = int_to_ptr.vmem [resolvable:$true] %s3376_s24 }
0x2a02   : > { %s6912_s0 = sld [smem:[#allocation86_spill]]  ;;  %s3358_s4 = scalar_lea.sflag [#allocation7], %s6258_s1 }
0x2a03   : > { %s5248_s15 = scalar_lea.vmem %s3377_s24, 128  ;;  %p6913_p8 = scmp.ne.s32.totalorder %s6871_s5, 0 }
0x2a04   : > { %p5249_p6 = scmp.ne.s32.totalorder %s3377_s24, %s5248_s15  ;;  %s5469_s12 = smov [#allocation40]  }
0x2a05   : > { %s5252_s11 = sshll.u32 %s5469_s12, 4  ;;  %s5253_s11 = int_to_ptr.vmem [resolvable:$false] %s5252_s11 }
0x2a06   : > { %p5250_p12 = pnand %p5249_p6, %p6913_p8  ;;  %s5254_s29 = scalar_lea.vmem %s5253_s11, 256 }
0x2a07   : > { %s3846_s7 = sshll.u32 %s6911_s13, 7  ;;  %p5255_p7 = scmp.lt.s32.totalorder %s3377_s24, %s5253_s11 }
0x2a08   : > { %s6656_s25 = scalar_lea.hbm %s6912_s0, %s3846_s7  ;;  %p5251_p2 = pneg %p5250_p12 }
0x2a09   : > { %p5256_p1 = scmp.lt.s32.totalorder %s5254_s29, %s5248_s15 }
0x2a0b   : > { %p5257_p9 = por %p5256_p1, %p5255_p7 }
0x2a0d   : > { %p5258_p11 = pnand %p5257_p9, %p5251_p2 }
0x2a0f   : > { %5261 = shalt.err (!%p5258_p11)
}
0x2a10   : > { %s5262_s2 = scalar_lea.hbm %s6656_s25, 128  ;;  %s5266_s6 = scalar_lea.hbm %s6912_s0, 256 }
0x2a11   : > { %p5263_p3 = scmp.ne.s32.totalorder %s6656_s25, %s5262_s2  ;;  %p5267_p5 = scmp.lt.u32.totalorder %s6656_s25, %s6912_s0 }
0x2a12   : > { %p5268_p4 = scmp.lt.u32.totalorder %s5266_s6, %s5262_s2  ;;  %p5270_p6 = scmp.lt.u32.totalorder %s5262_s2, %s6656_s25 }
0x2a13   : > { %p5264_p13 = pnand %p5263_p3, %p6913_p8 }
0x2a14   : > { %p5269_p10 = por %p5268_p4, %p5267_p5 }
0x2a15   : > { %p5265_p0 = pneg %p5264_p13 }
0x2a16   : > { %p5271_p12 = por %p5270_p6, %p5269_p10 }
0x2a18   : > { %p5272_p2 = pnand %p5271_p12, %p5265_p0 }
0x2a1a   : > { %5275 = shalt.err (!%p5272_p2)
}
0x2a1b   : > { %4331 = dma.vmem_to_hbm [thread:$0]  (%p6913_p8), %s3377_s24, 128, %s6656_s25, %s3358_s4  }
0x2a1c   : > { %s3851_s15 = sshll.u32 %s6911_s13, 9  ;;  %s3389_s11 = sshll.u32 %s6325_s30, 4  ;;  %s6684_s11 = int_to_ptr.vmem [resolvable:$true] %s3389_s11 }
0x2a1d   : > { %s6914_s7 = sld [smem:[#allocation87_spill]]  ;;  %s3363_s2 = scalar_lea.sflag [#allocation42], %s6258_s1 }
0x2a1e   : > { %s5276_s6 = scalar_lea.vmem %s6684_s11, 512  ;;  %s5470_s12 = smov [#allocation41]  }
0x2a1f   : > { %p5277_p7 = scmp.ne.s32.totalorder %s6684_s11, %s5276_s6  ;;  %s5280_s25 = sshll.u32 %s5470_s12, 4  ;;  %s5281_s25 = int_to_ptr.vmem [resolvable:$false] %s5280_s25 }
0x2a20   : > { %s5282_s30 = scalar_lea.vmem %s5281_s25, 1024  ;;  %p5283_p11 = scmp.lt.s32.totalorder %s6684_s11, %s5281_s25 }
0x2a21   : > { %p5278_p1 = pnand %p5277_p7, %p6913_p8  ;;  %p5284_p3 = scmp.lt.s32.totalorder %s5282_s30, %s5276_s6 }
0x2a23   : > { %s6682_s14 = scalar_lea.hbm %s6914_s7, %s3851_s15  ;;  %p5279_p9 = pneg %p5278_p1 }
0x2a24   : > { %p5285_p13 = por %p5284_p3, %p5283_p11 }
0x2a26   : > { %p5286_p0 = pnand %p5285_p13, %p5279_p9 }
0x2a28   : > { %5289 = shalt.err (!%p5286_p0)
}
0x2a29   : > { %s5290_s13 = scalar_lea.hbm %s6682_s14, 512  ;;  %s5294_s15 = scalar_lea.hbm %s6914_s7, 1024 }
0x2a2a   : > { %p5291_p5 = scmp.ne.s32.totalorder %s6682_s14, %s5290_s13  ;;  %p5295_p6 = scmp.lt.u32.totalorder %s6682_s14, %s6914_s7 }
0x2a2b   : > { %p5296_p12 = scmp.lt.u32.totalorder %s5294_s15, %s5290_s13  ;;  %p5298_p7 = scmp.lt.u32.totalorder %s5290_s13, %s6682_s14 }
0x2a2c   : > { %p5292_p4 = pnand %p5291_p5, %p6913_p8 }
0x2a2d   : > { %p5297_p2 = por %p5296_p12, %p5295_p6 }
0x2a2e   : > { %p5293_p10 = pneg %p5292_p4 }
0x2a2f   : > { %p5299_p1 = por %p5298_p7, %p5297_p2 }
0x2a31   : > { %p5300_p9 = pnand %p5299_p1, %p5293_p10 }
0x2a33   : > { %5303 = shalt.err (!%p5300_p9)
}
0x2a34   : > { %s5471_s6 = smov 128  }
0x2a35   : > { %4332 = dma.vmem_to_hbm [thread:$0]  (%p6913_p8), %s6684_s11, 512, %s6682_s14, %s3363_s2, %s5471_s6, %s5471_s6, %s5465_s26  }
0x2a36 PF: > { %s6915_s12 = sld [smem:[#allocation65_spill]]  ;;  %s6916_s25 = sld [smem:[#allocation58_spill]] }
0x2a37   : > { %p6917_p3 = scmp.ne.s32.totalorder %s6872_s3, 0 }
0x2a3c   : > { %p4451_p11 = scmp.ge.s32.totalorder %s6915_s12, 2  ;;  %s3404_s30 = sand.u32 1, %s6916_s25  }
0x2a3d   : > { %s3405_s13 = scalar_lea.sflag [#allocation7], %s3404_s30 }
0x2a3e   : > { %p4404_p13 = pnand %p4451_p11, %p6917_p3 }
0x2a40   : > { %5389 = dma.done.wait (!%p4404_p13), %s3405_s13, 128  }
0x2a41   : > { %5391 = vsyncadd (!%p4404_p13), %s3405_s13, 4294967168  ;;  %s3414_s24 = scalar_lea.sflag [#allocation42], %s3404_s30 }
0x2a42   : > { %5393 = dma.done.wait (!%p4404_p13), %s3414_s24, 512  }
0x2a43   : > { %5395 = vsyncadd (!%p4404_p13), %s3414_s24, 4294966784  ;;  %s56_s2 = sadd.s32 1, %s6915_s12   ;;  %s6918_s4 = sld [smem:[#allocation59_spill]] }
0x2a44   : > { %p53_p0 = scmp.ge.s32.totalorder %s56_s2, 6   ;;  %s6919_s30 = sld [smem:[#allocation60_spill]] }
0x2a45   : > { %s6920_s25 = sld [smem:[#allocation63_spill]]  ;;  %s6921_s5 = sld [smem:[#allocation64_spill]] }
0x2a46   : > { %s6922_s24 = smov %s6932_s10  ;;  %s6923_s1 = smov %s6926_s28 }
0x2a47   : > { %s6924_s26 = smov %s6930_s22  ;;  %55 = sbr.rel (!%p53_p0) target bundleno = 42 (0x2a), region = 306 }
0x2a4e   :  { %3419 = vsyncpa [#allocation6], 1 }
0x2a4f   :  { %3421 = vsyncpa [#allocation6 + $0x1], 1 }
0x2a50   :  { %3422 = vsyncpa [#allocation9], 1 }
0x2a51   :  { %3424 = vsyncpa [#allocation9 + $0x1], 1 }
0x2a52   :  { %3425 = vsyncpa [#allocation12], 1 }
0x2a53   :  { %3426 = vsyncpa [#allocation15], 1 }
0x2a54   :  { %3427 = vsyncpa [#allocation18], 1 }
0x2a55   :  { %3428 = vsyncpa [#allocation21], 1 }
0x2a56   :  { %3429 = vsyncpa [#allocation24], 1 }
0x2a57   :  { %3430 = vsyncpa [#allocation27], 1 }
0x2a58   :  { %3431 = vsyncpa [#allocation30], 1 }
0x2a59   :  { %3432 = vsyncpa [#allocation33], 1 }
0x2a5a   :  { %3433 = vsyncpa [#allocation36], 1 }
0x2a5b   :  { %3434 = vsyncpa [#allocation39], 1 }
0x2a5c   :  { %3435 = vsyncpa [#allocation7], 1 }
0x2a5d   :  { %3437 = vsyncpa [#allocation7 + $0x1], 1 }
0x2a5e   :  { %3438 = vsyncpa [#allocation42], 1 }
0x2a5f   :  { %3440 = vsyncpa [#allocation42 + $0x1], 1 }

</bundles_post_ra>
